<compile_context>
chip_gen: v7x
topology: tpu7x:2x2x1
jax: 0.10.0
libtpu: 0.0.40
codegen_flags: <defaults>
</compile_context>

<pallas_src>
import functools

import jax
import jax.numpy as jnp
from jax.experimental import pallas as pl
from jax.experimental.pallas import tpu as pltpu


# ----------------------------------------------------------------------------
# VMEM sizing helpers (generation-aware: 64 MiB/TC on v7x, 128 MiB on v5e/v6e).
# ----------------------------------------------------------------------------
def _tpu_vmem_capacity():
    try:
        return int(pltpu.get_tpu_info().vmem_capacity_bytes)
    except Exception:            # unknown platform / interpret mode: be conservative
        return 64 << 20


def _vmem_budget():
    """Bytes of VMEM a kernel's working set may target (leaves headroom)."""
    cap = _tpu_vmem_capacity()
    return int(max(cap // 2, cap - (32 << 20)))      # ~32 MiB (v7x) / ~96 MiB (v5e/v6e)


def _vmem_limit(needed_bytes):
    """Scoped-VMEM limit: working set + margin, capped well below physical."""
    cap = _tpu_vmem_capacity()
    return int(min(max(needed_bytes + (4 << 20), 16 << 20), cap - (8 << 20)))


# ----------------------------------------------------------------------------
# Fused LSTM kernel: per grid step (one block of T time steps)
#   1) block input projection  (B*T, F) @ (F, 4H)   (MXU, bf16 operands, f32 acc)
#   2) static loop over T: gates = gx[:, t] + h @ W_hh ; gate nonlinearities.
# h/c carry lives in VMEM scratch across grid steps (grid axis is "arbitrary",
# i.e. strictly sequential on one core).  PyTorch gate order: i, f, g, o.
# ----------------------------------------------------------------------------
def _lstm_fused_kernel(x_ref, wih_ref, whh_ref, b_ref, out_ref, h_scr, c_scr,
                       *, t_block, hidden):
    @pl.when(pl.program_id(0) == 0)
    def _():
        h_scr[...] = jnp.zeros_like(h_scr)
        c_scr[...] = jnp.zeros_like(c_scr)

    wih = wih_ref[...]                     # (F, 4H) resident, compute dtype
    whh = whh_ref[...]                     # (H, 4H) resident, compute dtype
    cdt = wih.dtype
    H = hidden

    x = x_ref[...].astype(cdt)             # (B, T, F)
    B, T, F = x.shape
    # Hoisted input projection for the whole time block: one big MXU matmul.
    gx = jnp.dot(x.reshape(B * T, F), wih,
                 preferred_element_type=jnp.float32)          # (B*T, 4H) f32
    gx = gx.reshape(B, T, 4 * H) + b_ref[...]                 # bias broadcast

    def sig(z):                            # sigmoid via tanh: 1 EUP push, not 2
        return 0.5 * (jnp.tanh(0.5 * z) + 1.0)

    h = h_scr[...]
    c = c_scr[...]
    # Static loop: all ref/value indices stay compile-time constants (t_block
    # is small, so full unroll is the same codegen the pipeliner wants anyway).
    for t in range(t_block):
        gates = gx[:, t, :] + jnp.dot(h.astype(cdt), whh,
                                      preferred_element_type=jnp.float32)
        i = sig(gates[:, 0 * H:1 * H])
        f = sig(gates[:, 1 * H:2 * H])
        g = jnp.tanh(gates[:, 2 * H:3 * H])
        o = sig(gates[:, 3 * H:4 * H])
        c = f * c + i * g
        h = o * jnp.tanh(c)
        out_ref[:, t, :] = h.astype(out_ref.dtype)
    h_scr[...] = h
    c_scr[...] = c


def _choose_t_block(L, block_bytes_fn, t_max, budget):
    """Largest sublane-legal time block under the VMEM budget.

    Prefers a block that divides L (avoids an HBM pad copy of the input);
    otherwise pads L up to a multiple of an 8-aligned block.
    Returns (t_block, padded_L)."""
    t_max = max(1, min(t_max, L))
    cands = [T for T in range(t_max, 0, -1) if (T % 8 == 0 or T == L)]
    if not cands:
        cands = [8] if L >= 8 else [L]
    for T in cands:                        # exact divisors first: no padding
        if L % T == 0 and block_bytes_fn(T) <= budget:
            return T, L
    for T in cands:                        # pad L to a multiple of T
        if block_bytes_fn(T) <= budget:
            return T, ((L + T - 1) // T) * T
    T = cands[-1]                          # nothing fits: smallest legal block;
    return T, ((L + T - 1) // T) * T       # the scoped limit is raised instead.


def lstm_fused_pallas(x, w_ih, w_hh, b, *, compute_dtype=jnp.bfloat16,
                      out_dtype=None, t_block_max=16):
    """x: (B, L, F) batch-major.  w_ih: (F, 4H), w_hh: (H, 4H), b: (1, 4H).
    Returns hidden states (B, L, H) batch-major (h0 = c0 = 0)."""
    B, L, F = x.shape
    H = w_hh.shape[0]
    G = 4 * H
    out_dtype = out_dtype or x.dtype
    cdt = compute_dtype

    w_ih_c = w_ih.astype(cdt)
    w_hh_c = w_hh.astype(cdt)
    b_f32 = b.astype(jnp.float32)

    x_item = jnp.dtype(x.dtype).itemsize
    out_item = jnp.dtype(out_dtype).itemsize
    w_item = jnp.dtype(cdt).itemsize

    def block_bytes(T):
        return (2 * B * T * F * x_item        # double-buffered x tile
                + 2 * B * T * H * out_item    # double-buffered output tile
                + B * T * G * 4               # in-kernel gx intermediate (f32)
                + (F + H) * G * w_item        # resident W_ih + W_hh (Buffered(1))
                + G * 4                       # bias
                + 4 * B * H * 4)              # h/c scratch + live f32 temporaries

    T, Lp = _choose_t_block(L, block_bytes, t_block_max, _vmem_budget())
    if Lp != L:
        x = jnp.pad(x, ((0, 0), (0, Lp - L), (0, 0)))   # trailing pad steps are discarded

    out = pl.pallas_call(
        functools.partial(_lstm_fused_kernel, t_block=T, hidden=H),
        out_shape=jax.ShapeDtypeStruct((B, Lp, H), out_dtype),
        grid_spec=pltpu.PrefetchScalarGridSpec(
            num_scalar_prefetch=0,
            grid=(Lp // T,),
            in_specs=[
                pl.BlockSpec((B, T, F), lambda t: (0, t, 0)),
                pl.BlockSpec((F, G), lambda t: (0, 0),
                             pipeline_mode=pl.Buffered(1)),
                pl.BlockSpec((H, G), lambda t: (0, 0),
                             pipeline_mode=pl.Buffered(1)),
                pl.BlockSpec((1, G), lambda t: (0, 0),
                             pipeline_mode=pl.Buffered(1)),
            ],
            out_specs=pl.BlockSpec((B, T, H), lambda t: (0, t, 0)),
            scratch_shapes=[pltpu.VMEM((B, H), jnp.float32),
                            pltpu.VMEM((B, H), jnp.float32)],
        ),
        compiler_params=pltpu.CompilerParams(
            dimension_semantics=("arbitrary",),     # sequential recurrence
            vmem_limit_bytes=_vmem_limit(block_bytes(T))),
    )(x, w_ih_c, w_hh_c, b_f32)
    return out[:, :L, :] if Lp != L else out


# ----------------------------------------------------------------------------
# SoftDotAttention kernel (fused linear_in, per-row dot-attn, softmax, weighted
# context, linear_out, tanh).  Tiled over the flattened B*L rows.  The per-row
# (q=1) contractions stay on the VPU/XLU (F on lanes); only the shared-weight
# projections use the MXU (bf16 operands, f32 accumulation).
# ----------------------------------------------------------------------------
def _attn_kernel(h_ref, ctx_ref, win_ref, woutc_ref, wouth_ref, out_ref):
    win = win_ref[...]
    cdt = win.dtype
    h = h_ref[...]                                   # (tn, H)
    ctx = ctx_ref[...]                               # (tn, S, F), f32 or bf16

    # target = linear_in(h)                          (tn, F) f32
    target = jnp.dot(h.astype(cdt), win, preferred_element_type=jnp.float32)

    # attn logits: per-row dot over F (VPU multiply + lane reduce, f32 accum).
    logits = jnp.sum(ctx * target.astype(ctx.dtype)[:, None, :],
                     axis=-1, dtype=jnp.float32)     # (tn, S)
    attn = jax.nn.softmax(logits, axis=-1)           # (tn, S) f32

    # weighted_context: per-row reduce over S (sublane reduce, f32 accum).
    wc = jnp.sum(ctx * attn.astype(ctx.dtype)[:, :, None],
                 axis=1, dtype=jnp.float32)          # (tn, F)

    # h_tilde = tanh(linear_out(cat(wc, h)))         (tn, H)
    h_tilde = jnp.tanh(
        jnp.dot(wc.astype(cdt), woutc_ref[...], preferred_element_type=jnp.float32)
        + jnp.dot(h.astype(cdt), wouth_ref[...], preferred_element_type=jnp.float32))

    out_ref[...] = h_tilde.astype(out_ref.dtype)


def _choose_row_tile(N, per_row_bytes, weight_bytes, tn_max, budget):
    """Row tile for the attention kernel (8-aligned or == N)."""
    limit = min(tn_max, N)
    feas = int(max(budget - weight_bytes, 0) // max(per_row_bytes, 1))
    feas = max(8, min((feas // 8) * 8, tn_max)) if feas >= 8 else 8
    # Prefer a divisor of N (no padded HBM copy of the feature tensor).
    best_div = 0
    for tn in range(min(limit, feas), 0, -1):
        if N % tn == 0 and (tn % 8 == 0 or tn == N):
            best_div = tn
            break
    if best_div and (best_div == N or 2 * best_div >= min(feas, limit)):
        return best_div
    # Otherwise the largest feasible 8-aligned tile; the caller pads N up to it.
    return min(feas, ((limit + 7) // 8) * 8)


def soft_dot_attention_pallas(h, ctx, w_in_t, w_out_c_t, w_out_h_t, *, tn_max=256):
    """h: (N, H); ctx: (N, S, F) (f32 or bf16) -> h_tilde: (N, H) in h.dtype."""
    N, H = h.shape
    _, S, F = ctx.shape
    ctx_item = jnp.dtype(ctx.dtype).itemsize
    h_item = jnp.dtype(h.dtype).itemsize
    w_item = jnp.dtype(w_in_t.dtype).itemsize

    weight_bytes = (H * F + F * H + H * H) * w_item   # resident (Buffered(1))
    per_row = (2 * S * F * ctx_item    # double-buffered ctx tile (dominant HBM stream)
               + S * F * 4             # worst-case f32 product intermediate
               + 4 * H * h_item        # double-buffered h-in and h_tilde-out tiles
               + 2 * F * 4             # target + weighted-context (f32)
               + 2 * S * 4             # logits + attn (f32)
               + H * 4)                # h_tilde (f32)

    tn = _choose_row_tile(N, per_row, weight_bytes, tn_max, _vmem_budget())
    Np = ((N + tn - 1) // tn) * tn
    if Np != N:
        # Zero pad rows: uniform softmax over zero ctx -> h_tilde = tanh(0) = 0,
        # and the rows are sliced off below.
        h = jnp.pad(h, ((0, Np - N), (0, 0)))
        ctx = jnp.pad(ctx, ((0, Np - N), (0, 0), (0, 0)))

    out = pl.pallas_call(
        _attn_kernel,
        out_shape=jax.ShapeDtypeStruct((Np, H), h.dtype),
        grid_spec=pltpu.PrefetchScalarGridSpec(
            num_scalar_prefetch=0,
            grid=(Np // tn,),
            in_specs=[
                pl.BlockSpec((tn, H), lambda i: (i, 0)),
                pl.BlockSpec((tn, S, F), lambda i: (i, 0, 0)),
                pl.BlockSpec((H, F), lambda i: (0, 0),
                             pipeline_mode=pl.Buffered(1)),
                pl.BlockSpec((F, H), lambda i: (0, 0),
                             pipeline_mode=pl.Buffered(1)),
                pl.BlockSpec((H, H), lambda i: (0, 0),
                             pipeline_mode=pl.Buffered(1)),
            ],
            out_specs=pl.BlockSpec((tn, H), lambda i: (i, 0)),
        ),
        compiler_params=pltpu.CompilerParams(
            dimension_semantics=("parallel",),      # row blocks independent -> megacore
            vmem_limit_bytes=_vmem_limit(weight_bytes + tn * per_row)),
    )(h, ctx, w_in_t, w_out_c_t, w_out_h_t)
    return out[:N] if Np != N else out


# ----------------------------------------------------------------------------
# SpeakerEncoder forward (dropout == identity, unidirectional LSTMs).
# Activations stay batch-major throughout; no layout transposes in HBM.
# ----------------------------------------------------------------------------
def speaker_encoder_forward(params, action_embeds, feature, lengths=None,
                            already_dropfeat=False, compute_dtype=jnp.bfloat16):
    del lengths, already_dropfeat          # lengths unused (as in the PyTorch forward)
    B, L, F = action_embeds.shape
    S = feature.shape[2]
    lstm_p, attn_p, post_p = params["lstm"], params["attn"], params["post_lstm"]
    H = post_p["w_hh"].shape[0]
    cdt = compute_dtype

    # --- LSTM 1: fused input projection + recurrence, batch-major in/out.
    ctx = lstm_fused_pallas(action_embeds, lstm_p["w_ih"], lstm_p["w_hh"],
                            lstm_p["b"], compute_dtype=cdt)

    # --- Attention over the per-step view features (feature may be passed bf16
    #     by the caller to halve the dominant HBM read; it is never transposed).
    h_flat = ctx.reshape(B * L, H)
    ctx_flat = feature.reshape(B * L, S, F)
    h_tilde = soft_dot_attention_pallas(
        h_flat, ctx_flat,
        attn_p["w_in_t"].astype(cdt),
        attn_p["w_out_c_t"].astype(cdt),
        attn_p["w_out_h_t"].astype(cdt))

    # --- LSTM 2 (same fused kernel); output already batch_first.
    x2 = h_tilde.reshape(B, L, H)
    out = lstm_fused_pallas(x2, post_p["w_ih"], post_p["w_hh"], post_p["b"],
                            compute_dtype=cdt)
    return out


# ----------------------------------------------------------------------------
# Pure-JAX reference (for correctness check).
# ----------------------------------------------------------------------------
def _lstm_ref(x, w_ih, w_hh, b):
    B, L, D = x.shape
    H = w_hh.shape[0]

    def step(carry, x_t):
        h, c = carry
        gates = x_t @ w_ih + h @ w_hh + b[0]
        i = jax.nn.sigmoid(gates[:, :H])
        f = jax.nn.sigmoid(gates[:, H:2 * H])
        g = jnp.tanh(gates[:, 2 * H:3 * H])
        o = jax.nn.sigmoid(gates[:, 3 * H:])
        c = f * c + i * g
        h = o * jnp.tanh(c)
        return (h, c), h

    init = (jnp.zeros((B, H), jnp.float32), jnp.zeros((B, H), jnp.float32))
    _, hs = jax.lax.scan(step, init, jnp.transpose(x, (1, 0, 2)))
    return jnp.transpose(hs, (1, 0, 2)).astype(x.dtype)


def _forward_ref(params, action_embeds, feature):
    B, L, F = action_embeds.shape
    S = feature.shape[2]
    H = params["post_lstm"]["w_hh"].shape[0]
    ctx = _lstm_ref(action_embeds, **params["lstm"])
    h = ctx.reshape(B * L, H)
    c = feature.reshape(B * L, S, F)
    p = params["attn"]
    target = h @ p["w_in_t"]
    attn = jax.nn.softmax(jnp.einsum("nsf,nf->ns", c, target), axis=-1)
    wc = jnp.einsum("ns,nsf->nf", attn, c)
    h_tilde = jnp.tanh(wc @ p["w_out_c_t"] + h @ p["w_out_h_t"])
    x = h_tilde.reshape(B, L, H)
    return _lstm_ref(x, **params["post_lstm"])


# ----------------------------------------------------------------------------
# Deterministic parameter construction (synthetic weights, no checkpoint).
# ----------------------------------------------------------------------------
def init_params(key, feature_size, hidden_size):
    F, H = feature_size, hidden_size
    ks = jax.random.split(key, 9)
    scale = 0.1

    def mk(k, shape):
        return (scale * jax.random.normal(k, shape)).astype(jnp.float32)

    return {
        "lstm": {  # nn.LSTM(F, H): W_ih (4H,F) stored transposed; bias = b_ih + b_hh
            "w_ih": mk(ks[0], (F, 4 * H)),
            "w_hh": mk(ks[1], (H, 4 * H)),
            "b": mk(ks[2], (1, 4 * H)),
        },
        "attn": {  # SoftDotAttention(H, F)
            "w_in_t": mk(ks[3], (H, F)),       # linear_in.weight.T   (H,F)
            "w_out_c_t": mk(ks[4], (F, H)),    # linear_out.weight[:, :F].T
            "w_out_h_t": mk(ks[5], (H, H)),    # linear_out.weight[:, F:].T
        },
        "post_lstm": {  # nn.LSTM(H, H)
            "w_ih": mk(ks[6], (H, 4 * H)),
            "w_hh": mk(ks[7], (H, 4 * H)),
            "b": mk(ks[8], (1, 4 * H)),
        },
    }


if __name__ == "__main__":
    B, L, S = 2, 8, 8          # batch, sequence length, #candidate views
    feature_size, hidden_size = 32, 32

    key = jax.random.PRNGKey(0)
    k_p, k_a, k_f = jax.random.split(key, 3)
    params = init_params(k_p, feature_size, hidden_size)

    action_embeds = jax.random.normal(k_a, (B, L, feature_size), jnp.float32)
    feature = jax.random.normal(k_f, (B, L, S, feature_size), jnp.float32)
    lengths = jnp.full((B,), L, jnp.int32)   # unused, mirrors PyTorch signature

    ref = _forward_ref(params, action_embeds, feature)

    # f32 compute path: tight check against the pure-JAX reference.
    fwd_f32 = jax.jit(functools.partial(speaker_encoder_forward, params,
                                        compute_dtype=jnp.float32))
    out_f32 = jax.block_until_ready(fwd_f32(action_embeds, feature, lengths))
    assert out_f32.shape == (B, L, hidden_size)
    assert jnp.allclose(out_f32, ref, atol=2e-3, rtol=2e-3), (
        float(jnp.max(jnp.abs(out_f32 - ref))))

    # Default (bf16 weights on the MXU) production path: looser tolerance.
    fwd = jax.jit(functools.partial(speaker_encoder_forward, params))
    out = jax.block_until_ready(fwd(action_embeds, feature, lengths))
    assert out.shape == (B, L, hidden_size)
    assert jnp.allclose(out, ref, atol=1e-1, rtol=1e-1), (
        float(jnp.max(jnp.abs(out - ref))))

    print("KERNEL_OK")
</pallas_src>

<mosaic_0001>
module attributes {stable_mosaic.version = 11 : i64} {
  func.func @_attn_kernel(%arg0: i32, %arg1: memref<16x32xf32, #tpu.memory_space<vmem>>, %arg2: memref<16x8x32xf32, #tpu.memory_space<vmem>>, %arg3: memref<32x32xf32, #tpu.memory_space<vmem>>, %arg4: memref<32x32xf32, #tpu.memory_space<vmem>>, %arg5: memref<32x32xf32, #tpu.memory_space<vmem>>, %arg6: memref<16x32xf32, #tpu.memory_space<vmem>>) attributes {dimension_semantics = [#tpu.dimension_semantics<parallel>], iteration_bounds = array<i64: 1>, scalar_prefetch = 0 : i64, scratch_operands = 0 : i64, tpu.core_type = #tpu.core_type<tc>, window_params = [{transform_indices = @transform_0, window_bounds = array<i64: 16, 32>}, {transform_indices = @transform_1, window_bounds = array<i64: 16, 8, 32>}, {pipeline_mode = #tpu.pipeline_mode<synchronous>, transform_indices = @transform_2, window_bounds = array<i64: 32, 32>}, {pipeline_mode = #tpu.pipeline_mode<synchronous>, transform_indices = @transform_3, window_bounds = array<i64: 32, 32>}, {pipeline_mode = #tpu.pipeline_mode<synchronous>, transform_indices = @transform_4, window_bounds = array<i64: 32, 32>}, {transform_indices = @transform_5, window_bounds = array<i64: 16, 32>}]} {
    %c0 = arith.constant 0 : index
    %c0_0 = arith.constant 0 : index
    %0 = vector.load %arg3[%c0, %c0_0] : memref<32x32xf32, #tpu.memory_space<vmem>>, vector<32x32xf32>
    %c0_1 = arith.constant 0 : index
    %c0_2 = arith.constant 0 : index
    %1 = vector.load %arg1[%c0_1, %c0_2] : memref<16x32xf32, #tpu.memory_space<vmem>>, vector<16x32xf32>
    %c0_3 = arith.constant 0 : index
    %c0_4 = arith.constant 0 : index
    %c0_5 = arith.constant 0 : index
    %2 = vector.load %arg2[%c0_3, %c0_4, %c0_5] : memref<16x8x32xf32, #tpu.memory_space<vmem>>, vector<16x8x32xf32>
    %cst = arith.constant dense<0.000000e+00> : vector<16x32xf32>
    %3 = tpu.matmul %1, %0, %cst {dimension_numbers = #tpu.dot_dimension_numbers<[1], [0], [0], [1], [0, 0, 1, 1], [], []>} : vector<16x32xf32>, vector<32x32xf32>, vector<16x32xf32> -> vector<16x32xf32>
    %4 = vector.shape_cast %3 : vector<16x32xf32> to vector<16x1x32xf32>
    %5 = vector.broadcast %4 : vector<16x1x32xf32> to vector<16x8x32xf32>
    %6 = arith.mulf %2, %5 : vector<16x8x32xf32>
    %cst_6 = arith.constant dense<0.000000e+00> : vector<16x8xf32>
    %7 = vector.multi_reduction <add>, %6, %cst_6 [2] : vector<16x8x32xf32> to vector<16x8xf32>
    %cst_7 = arith.constant dense<0xFF800000> : vector<16xf32>
    %8 = vector.multi_reduction <maximumf>, %7, %cst_7 [1] : vector<16x8xf32> to vector<16xf32>
    %cst_8 = arith.constant 0xFF800000 : f32
    %9 = vector.broadcast %cst_8 : f32 to vector<16xf32>
    %10 = arith.maximumf %9, %8 : vector<16xf32>
    %11 = vector.shape_cast %10 : vector<16xf32> to vector<16x1xf32>
    %12 = vector.broadcast %11 : vector<16x1xf32> to vector<16x8xf32>
    %13 = arith.subf %7, %12 : vector<16x8xf32>
    %14 = math.exp %13 : vector<16x8xf32>
    %cst_9 = arith.constant dense<0.000000e+00> : vector<16xf32>
    %15 = vector.multi_reduction <add>, %14, %cst_9 [1] : vector<16x8xf32> to vector<16xf32>
    %16 = vector.shape_cast %15 : vector<16xf32> to vector<16x1xf32>
    %17 = vector.broadcast %16 : vector<16x1xf32> to vector<16x8xf32>
    %18 = arith.divf %14, %17 : vector<16x8xf32>
    %19 = vector.shape_cast %18 : vector<16x8xf32> to vector<16x8x1xf32>
    %20 = vector.broadcast %19 : vector<16x8x1xf32> to vector<16x8x32xf32>
    %21 = arith.mulf %2, %20 : vector<16x8x32xf32>
    %cst_10 = arith.constant dense<0.000000e+00> : vector<16x32xf32>
    %22 = vector.multi_reduction <add>, %21, %cst_10 [1] : vector<16x8x32xf32> to vector<16x32xf32>
    %c0_11 = arith.constant 0 : index
    %c0_12 = arith.constant 0 : index
    %23 = vector.load %arg4[%c0_11, %c0_12] : memref<32x32xf32, #tpu.memory_space<vmem>>, vector<32x32xf32>
    %cst_13 = arith.constant dense<0.000000e+00> : vector<16x32xf32>
    %24 = tpu.matmul %22, %23, %cst_13 {dimension_numbers = #tpu.dot_dimension_numbers<[1], [0], [0], [1], [0, 0, 1, 1], [], []>} : vector<16x32xf32>, vector<32x32xf32>, vector<16x32xf32> -> vector<16x32xf32>
    %c0_14 = arith.constant 0 : index
    %c0_15 = arith.constant 0 : index
    %25 = vector.load %arg5[%c0_14, %c0_15] : memref<32x32xf32, #tpu.memory_space<vmem>>, vector<32x32xf32>
    %cst_16 = arith.constant dense<0.000000e+00> : vector<16x32xf32>
    %26 = tpu.matmul %1, %25, %cst_16 {dimension_numbers = #tpu.dot_dimension_numbers<[1], [0], [0], [1], [0, 0, 1, 1], [], []>} : vector<16x32xf32>, vector<32x32xf32>, vector<16x32xf32> -> vector<16x32xf32>
    %27 = arith.addf %24, %26 : vector<16x32xf32>
    %28 = math.tanh %27 : vector<16x32xf32>
    %c0_17 = arith.constant 0 : index
    %c0_18 = arith.constant 0 : index
    %29 = vector.load %arg6[%c0_17, %c0_18] : memref<16x32xf32, #tpu.memory_space<vmem>>, vector<16x32xf32>
    tpu.vector_store %arg6[%c0_17, %c0_18], %28 {strides = array<i32>} : memref<16x32xf32, #tpu.memory_space<vmem>>, vector<16x32xf32>,
    return
  }
  func.func @transform_0(%arg0: i32) -> (i32, i32) {
    %c0_i32 = arith.constant 0 : i32
    %c0_i32_0 = arith.constant 0 : i32
    return %arg0, %c0_i32 : i32, i32
  }
  func.func @transform_1(%arg0: i32) -> (i32, i32, i32) {
    %c0_i32 = arith.constant 0 : i32
    %c0_i32_0 = arith.constant 0 : i32
    %c0_i32_1 = arith.constant 0 : i32
    return %arg0, %c0_i32, %c0_i32_0 : i32, i32, i32
  }
  func.func @transform_2(%arg0: i32) -> (i32, i32) {
    %c0_i32 = arith.constant 0 : i32
    %c0_i32_0 = arith.constant 0 : i32
    %c0_i32_1 = arith.constant 0 : i32
    return %c0_i32, %c0_i32_0 : i32, i32
  }
  func.func @transform_3(%arg0: i32) -> (i32, i32) {
    %c0_i32 = arith.constant 0 : i32
    %c0_i32_0 = arith.constant 0 : i32
    %c0_i32_1 = arith.constant 0 : i32
    return %c0_i32, %c0_i32_0 : i32, i32
  }
  func.func @transform_4(%arg0: i32) -> (i32, i32) {
    %c0_i32 = arith.constant 0 : i32
    %c0_i32_0 = arith.constant 0 : i32
    %c0_i32_1 = arith.constant 0 : i32
    return %c0_i32, %c0_i32_0 : i32, i32
  }
  func.func @transform_5(%arg0: i32) -> (i32, i32) {
    %c0_i32 = arith.constant 0 : i32
    %c0_i32_0 = arith.constant 0 : i32
    return %arg0, %c0_i32 : i32, i32
  }
}

module attributes {stable_mosaic.version = 11 : i64} {
  func.func @_lstm_fused_kernel(%arg0: i32, %arg1: memref<2x8x32xf32, #tpu.memory_space<vmem>>, %arg2: memref<32x128xf32, #tpu.memory_space<vmem>>, %arg3: memref<32x128xf32, #tpu.memory_space<vmem>>, %arg4: memref<1x128xf32, #tpu.memory_space<vmem>>, %arg5: memref<2x8x32xf32, #tpu.memory_space<vmem>>, %arg6: memref<2x32xf32, #tpu.memory_space<vmem>>, %arg7: memref<2x32xf32, #tpu.memory_space<vmem>>) attributes {dimension_semantics = [#tpu.dimension_semantics<arbitrary>], iteration_bounds = array<i64: 1>, scalar_prefetch = 0 : i64, scratch_operands = 2 : i64, tpu.core_type = #tpu.core_type<tc>, window_params = [{transform_indices = @transform_0, window_bounds = array<i64: 2, 8, 32>}, {pipeline_mode = #tpu.pipeline_mode<synchronous>, transform_indices = @transform_1, window_bounds = array<i64: 32, 128>}, {pipeline_mode = #tpu.pipeline_mode<synchronous>, transform_indices = @transform_2, window_bounds = array<i64: 32, 128>}, {pipeline_mode = #tpu.pipeline_mode<synchronous>, transform_indices = @transform_3, window_bounds = array<i64: 1, 128>}, {transform_indices = @transform_4, window_bounds = array<i64: 2, 8, 32>}]} {
    %c0_i32 = arith.constant 0 : i32
    %0 = arith.cmpi eq, %arg0, %c0_i32 : i32
    %1 = arith.extui %0 : i1 to i32
    %c0_i32_0 = arith.constant 0 : i32
    %2 = arith.cmpi ne, %1, %c0_i32_0 : i32
    scf.if %2 {
      %cst_114 = arith.constant 0.000000e+00 : f32
      %321 = vector.broadcast %cst_114 : f32 to vector<2x32xf32>
      %c0_115 = arith.constant 0 : index
      %c0_116 = arith.constant 0 : index
      %322 = vector.load %arg6[%c0_115, %c0_116] : memref<2x32xf32, #tpu.memory_space<vmem>>, vector<2x32xf32>
      tpu.vector_store %arg6[%c0_115, %c0_116], %321 {strides = array<i32>} : memref<2x32xf32, #tpu.memory_space<vmem>>, vector<2x32xf32>,
      %cst_117 = arith.constant 0.000000e+00 : f32
      %323 = vector.broadcast %cst_117 : f32 to vector<2x32xf32>
      %c0_118 = arith.constant 0 : index
      %c0_119 = arith.constant 0 : index
      %324 = vector.load %arg7[%c0_118, %c0_119] : memref<2x32xf32, #tpu.memory_space<vmem>>, vector<2x32xf32>
      tpu.vector_store %arg7[%c0_118, %c0_119], %323 {strides = array<i32>} : memref<2x32xf32, #tpu.memory_space<vmem>>, vector<2x32xf32>,
    } else {
    }
    %c0 = arith.constant 0 : index
    %c0_1 = arith.constant 0 : index
    %3 = vector.load %arg2[%c0, %c0_1] : memref<32x128xf32, #tpu.memory_space<vmem>>, vector<32x128xf32>
    %c0_2 = arith.constant 0 : index
    %c0_3 = arith.constant 0 : index
    %4 = vector.load %arg3[%c0_2, %c0_3] : memref<32x128xf32, #tpu.memory_space<vmem>>, vector<32x128xf32>
    %c0_4 = arith.constant 0 : index
    %c0_5 = arith.constant 0 : index
    %c0_6 = arith.constant 0 : index
    %5 = vector.load %arg1[%c0_4, %c0_5, %c0_6] : memref<2x8x32xf32, #tpu.memory_space<vmem>>, vector<2x8x32xf32>
    %6 = vector.shape_cast %5 : vector<2x8x32xf32> to vector<16x32xf32>
    %cst = arith.constant dense<0.000000e+00> : vector<16x128xf32>
    %7 = tpu.matmul %6, %3, %cst {dimension_numbers = #tpu.dot_dimension_numbers<[1], [0], [0], [1], [0, 0, 1, 1], [], []>} : vector<16x32xf32>, vector<32x128xf32>, vector<16x128xf32> -> vector<16x128xf32>
    %8 = vector.shape_cast %7 : vector<16x128xf32> to vector<2x8x128xf32>
    %c0_7 = arith.constant 0 : index
    %c0_8 = arith.constant 0 : index
    %9 = vector.load %arg4[%c0_7, %c0_8] : memref<1x128xf32, #tpu.memory_space<vmem>>, vector<1x128xf32>
    %10 = vector.shape_cast %9 : vector<1x128xf32> to vector<1x1x128xf32>
    %11 = vector.broadcast %10 : vector<1x1x128xf32> to vector<2x8x128xf32>
    %12 = arith.addf %8, %11 : vector<2x8x128xf32>
    %c0_9 = arith.constant 0 : index
    %c0_10 = arith.constant 0 : index
    %13 = vector.load %arg6[%c0_9, %c0_10] : memref<2x32xf32, #tpu.memory_space<vmem>>, vector<2x32xf32>
    %c0_11 = arith.constant 0 : index
    %c0_12 = arith.constant 0 : index
    %14 = vector.load %arg7[%c0_11, %c0_12] : memref<2x32xf32, #tpu.memory_space<vmem>>, vector<2x32xf32>
    %15 = vector.extract_strided_slice %12 {offsets = [0, 0, 0], sizes = [2, 1, 128], strides = [1, 1, 1]} : vector<2x8x128xf32> to vector<2x1x128xf32>
    %16 = vector.shape_cast %15 : vector<2x1x128xf32> to vector<2x128xf32>
    %cst_13 = arith.constant dense<0.000000e+00> : vector<2x128xf32>
    %17 = tpu.matmul %13, %4, %cst_13 {dimension_numbers = #tpu.dot_dimension_numbers<[1], [0], [0], [1], [0, 0, 1, 1], [], []>} : vector<2x32xf32>, vector<32x128xf32>, vector<2x128xf32> -> vector<2x128xf32>
    %18 = arith.addf %16, %17 : vector<2x128xf32>
    %19 = vector.extract_strided_slice %18 {offsets = [0, 0], sizes = [2, 32], strides = [1, 1]} : vector<2x128xf32> to vector<2x32xf32>
    %cst_14 = arith.constant 5.000000e-01 : f32
    %20 = vector.broadcast %cst_14 : f32 to vector<2x32xf32>
    %21 = arith.mulf %20, %19 : vector<2x32xf32>
    %22 = math.tanh %21 : vector<2x32xf32>
    %cst_15 = arith.constant 1.000000e+00 : f32
    %23 = vector.broadcast %cst_15 : f32 to vector<2x32xf32>
    %24 = arith.addf %22, %23 : vector<2x32xf32>
    %cst_16 = arith.constant 5.000000e-01 : f32
    %25 = vector.broadcast %cst_16 : f32 to vector<2x32xf32>
    %26 = arith.mulf %25, %24 : vector<2x32xf32>
    %27 = vector.extract_strided_slice %18 {offsets = [0, 32], sizes = [2, 32], strides = [1, 1]} : vector<2x128xf32> to vector<2x32xf32>
    %cst_17 = arith.constant 5.000000e-01 : f32
    %28 = vector.broadcast %cst_17 : f32 to vector<2x32xf32>
    %29 = arith.mulf %28, %27 : vector<2x32xf32>
    %30 = math.tanh %29 : vector<2x32xf32>
    %cst_18 = arith.constant 1.000000e+00 : f32
    %31 = vector.broadcast %cst_18 : f32 to vector<2x32xf32>
    %32 = arith.addf %30, %31 : vector<2x32xf32>
    %cst_19 = arith.constant 5.000000e-01 : f32
    %33 = vector.broadcast %cst_19 : f32 to vector<2x32xf32>
    %34 = arith.mulf %33, %32 : vector<2x32xf32>
    %35 = vector.extract_strided_slice %18 {offsets = [0, 64], sizes = [2, 32], strides = [1, 1]} : vector<2x128xf32> to vector<2x32xf32>
    %36 = math.tanh %35 : vector<2x32xf32>
    %37 = vector.extract_strided_slice %18 {offsets = [0, 96], sizes = [2, 32], strides = [1, 1]} : vector<2x128xf32> to vector<2x32xf32>
    %cst_20 = arith.constant 5.000000e-01 : f32
    %38 = vector.broadcast %cst_20 : f32 to vector<2x32xf32>
    %39 = arith.mulf %38, %37 : vector<2x32xf32>
    %40 = math.tanh %39 : vector<2x32xf32>
    %cst_21 = arith.constant 1.000000e+00 : f32
    %41 = vector.broadcast %cst_21 : f32 to vector<2x32xf32>
    %42 = arith.addf %40, %41 : vector<2x32xf32>
    %cst_22 = arith.constant 5.000000e-01 : f32
    %43 = vector.broadcast %cst_22 : f32 to vector<2x32xf32>
    %44 = arith.mulf %43, %42 : vector<2x32xf32>
    %45 = arith.mulf %34, %14 : vector<2x32xf32>
    %46 = arith.mulf %26, %36 : vector<2x32xf32>
    %47 = arith.addf %45, %46 : vector<2x32xf32>
    %48 = math.tanh %47 : vector<2x32xf32>
    %49 = arith.mulf %44, %48 : vector<2x32xf32>
    %c0_23 = arith.constant 0 : index
    %c0_24 = arith.constant 0 : index
    %c0_25 = arith.constant 0 : index
    %50 = vector.load %arg5[%c0_23, %c0_24, %c0_25] : memref<2x8x32xf32, #tpu.memory_space<vmem>>, vector<2x1x32xf32>
    %51 = vector.shape_cast %50 : vector<2x1x32xf32> to vector<2x32xf32>
    %52 = vector.shape_cast %49 : vector<2x32xf32> to vector<2x1x32xf32>
    tpu.vector_store %arg5[%c0_23, %c0_24, %c0_25], %52 {strides = array<i32>} : memref<2x8x32xf32, #tpu.memory_space<vmem>>, vector<2x1x32xf32>,
    %53 = vector.extract_strided_slice %12 {offsets = [0, 1, 0], sizes = [2, 1, 128], strides = [1, 1, 1]} : vector<2x8x128xf32> to vector<2x1x128xf32>
    %54 = vector.shape_cast %53 : vector<2x1x128xf32> to vector<2x128xf32>
    %cst_26 = arith.constant dense<0.000000e+00> : vector<2x128xf32>
    %55 = tpu.matmul %49, %4, %cst_26 {dimension_numbers = #tpu.dot_dimension_numbers<[1], [0], [0], [1], [0, 0, 1, 1], [], []>} : vector<2x32xf32>, vector<32x128xf32>, vector<2x128xf32> -> vector<2x128xf32>
    %56 = arith.addf %54, %55 : vector<2x128xf32>
    %57 = vector.extract_strided_slice %56 {offsets = [0, 0], sizes = [2, 32], strides = [1, 1]} : vector<2x128xf32> to vector<2x32xf32>
    %cst_27 = arith.constant 5.000000e-01 : f32
    %58 = vector.broadcast %cst_27 : f32 to vector<2x32xf32>
    %59 = arith.mulf %58, %57 : vector<2x32xf32>
    %60 = math.tanh %59 : vector<2x32xf32>
    %cst_28 = arith.constant 1.000000e+00 : f32
    %61 = vector.broadcast %cst_28 : f32 to vector<2x32xf32>
    %62 = arith.addf %60, %61 : vector<2x32xf32>
    %cst_29 = arith.constant 5.000000e-01 : f32
    %63 = vector.broadcast %cst_29 : f32 to vector<2x32xf32>
    %64 = arith.mulf %63, %62 : vector<2x32xf32>
    %65 = vector.extract_strided_slice %56 {offsets = [0, 32], sizes = [2, 32], strides = [1, 1]} : vector<2x128xf32> to vector<2x32xf32>
    %cst_30 = arith.constant 5.000000e-01 : f32
    %66 = vector.broadcast %cst_30 : f32 to vector<2x32xf32>
    %67 = arith.mulf %66, %65 : vector<2x32xf32>
    %68 = math.tanh %67 : vector<2x32xf32>
    %cst_31 = arith.constant 1.000000e+00 : f32
    %69 = vector.broadcast %cst_31 : f32 to vector<2x32xf32>
    %70 = arith.addf %68, %69 : vector<2x32xf32>
    %cst_32 = arith.constant 5.000000e-01 : f32
    %71 = vector.broadcast %cst_32 : f32 to vector<2x32xf32>
    %72 = arith.mulf %71, %70 : vector<2x32xf32>
    %73 = vector.extract_strided_slice %56 {offsets = [0, 64], sizes = [2, 32], strides = [1, 1]} : vector<2x128xf32> to vector<2x32xf32>
    %74 = math.tanh %73 : vector<2x32xf32>
    %75 = vector.extract_strided_slice %56 {offsets = [0, 96], sizes = [2, 32], strides = [1, 1]} : vector<2x128xf32> to vector<2x32xf32>
    %cst_33 = arith.constant 5.000000e-01 : f32
    %76 = vector.broadcast %cst_33 : f32 to vector<2x32xf32>
    %77 = arith.mulf %76, %75 : vector<2x32xf32>
    %78 = math.tanh %77 : vector<2x32xf32>
    %cst_34 = arith.constant 1.000000e+00 : f32
    %79 = vector.broadcast %cst_34 : f32 to vector<2x32xf32>
    %80 = arith.addf %78, %79 : vector<2x32xf32>
    %cst_35 = arith.constant 5.000000e-01 : f32
    %81 = vector.broadcast %cst_35 : f32 to vector<2x32xf32>
    %82 = arith.mulf %81, %80 : vector<2x32xf32>
    %83 = arith.mulf %72, %47 : vector<2x32xf32>
    %84 = arith.mulf %64, %74 : vector<2x32xf32>
    %85 = arith.addf %83, %84 : vector<2x32xf32>
    %86 = math.tanh %85 : vector<2x32xf32>
    %87 = arith.mulf %82, %86 : vector<2x32xf32>
    %c0_36 = arith.constant 0 : index
    %c1 = arith.constant 1 : index
    %c0_37 = arith.constant 0 : index
    %88 = vector.load %arg5[%c0_36, %c1, %c0_37] : memref<2x8x32xf32, #tpu.memory_space<vmem>>, vector<2x1x32xf32>
    %89 = vector.shape_cast %88 : vector<2x1x32xf32> to vector<2x32xf32>
    %90 = vector.shape_cast %87 : vector<2x32xf32> to vector<2x1x32xf32>
    tpu.vector_store %arg5[%c0_36, %c1, %c0_37], %90 {strides = array<i32>} : memref<2x8x32xf32, #tpu.memory_space<vmem>>, vector<2x1x32xf32>,
    %91 = vector.extract_strided_slice %12 {offsets = [0, 2, 0], sizes = [2, 1, 128], strides = [1, 1, 1]} : vector<2x8x128xf32> to vector<2x1x128xf32>
    %92 = vector.shape_cast %91 : vector<2x1x128xf32> to vector<2x128xf32>
    %cst_38 = arith.constant dense<0.000000e+00> : vector<2x128xf32>
    %93 = tpu.matmul %87, %4, %cst_38 {dimension_numbers = #tpu.dot_dimension_numbers<[1], [0], [0], [1], [0, 0, 1, 1], [], []>} : vector<2x32xf32>, vector<32x128xf32>, vector<2x128xf32> -> vector<2x128xf32>
    %94 = arith.addf %92, %93 : vector<2x128xf32>
    %95 = vector.extract_strided_slice %94 {offsets = [0, 0], sizes = [2, 32], strides = [1, 1]} : vector<2x128xf32> to vector<2x32xf32>
    %cst_39 = arith.constant 5.000000e-01 : f32
    %96 = vector.broadcast %cst_39 : f32 to vector<2x32xf32>
    %97 = arith.mulf %96, %95 : vector<2x32xf32>
    %98 = math.tanh %97 : vector<2x32xf32>
    %cst_40 = arith.constant 1.000000e+00 : f32
    %99 = vector.broadcast %cst_40 : f32 to vector<2x32xf32>
    %100 = arith.addf %98, %99 : vector<2x32xf32>
    %cst_41 = arith.constant 5.000000e-01 : f32
    %101 = vector.broadcast %cst_41 : f32 to vector<2x32xf32>
    %102 = arith.mulf %101, %100 : vector<2x32xf32>
    %103 = vector.extract_strided_slice %94 {offsets = [0, 32], sizes = [2, 32], strides = [1, 1]} : vector<2x128xf32> to vector<2x32xf32>
    %cst_42 = arith.constant 5.000000e-01 : f32
    %104 = vector.broadcast %cst_42 : f32 to vector<2x32xf32>
    %105 = arith.mulf %104, %103 : vector<2x32xf32>
    %106 = math.tanh %105 : vector<2x32xf32>
    %cst_43 = arith.constant 1.000000e+00 : f32
    %107 = vector.broadcast %cst_43 : f32 to vector<2x32xf32>
    %108 = arith.addf %106, %107 : vector<2x32xf32>
    %cst_44 = arith.constant 5.000000e-01 : f32
    %109 = vector.broadcast %cst_44 : f32 to vector<2x32xf32>
    %110 = arith.mulf %109, %108 : vector<2x32xf32>
    %111 = vector.extract_strided_slice %94 {offsets = [0, 64], sizes = [2, 32], strides = [1, 1]} : vector<2x128xf32> to vector<2x32xf32>
    %112 = math.tanh %111 : vector<2x32xf32>
    %113 = vector.extract_strided_slice %94 {offsets = [0, 96], sizes = [2, 32], strides = [1, 1]} : vector<2x128xf32> to vector<2x32xf32>
    %cst_45 = arith.constant 5.000000e-01 : f32
    %114 = vector.broadcast %cst_45 : f32 to vector<2x32xf32>
    %115 = arith.mulf %114, %113 : vector<2x32xf32>
    %116 = math.tanh %115 : vector<2x32xf32>
    %cst_46 = arith.constant 1.000000e+00 : f32
    %117 = vector.broadcast %cst_46 : f32 to vector<2x32xf32>
    %118 = arith.addf %116, %117 : vector<2x32xf32>
    %cst_47 = arith.constant 5.000000e-01 : f32
    %119 = vector.broadcast %cst_47 : f32 to vector<2x32xf32>
    %120 = arith.mulf %119, %118 : vector<2x32xf32>
    %121 = arith.mulf %110, %85 : vector<2x32xf32>
    %122 = arith.mulf %102, %112 : vector<2x32xf32>
    %123 = arith.addf %121, %122 : vector<2x32xf32>
    %124 = math.tanh %123 : vector<2x32xf32>
    %125 = arith.mulf %120, %124 : vector<2x32xf32>
    %c0_48 = arith.constant 0 : index
    %c2 = arith.constant 2 : index
    %c0_49 = arith.constant 0 : index
    %126 = vector.load %arg5[%c0_48, %c2, %c0_49] : memref<2x8x32xf32, #tpu.memory_space<vmem>>, vector<2x1x32xf32>
    %127 = vector.shape_cast %126 : vector<2x1x32xf32> to vector<2x32xf32>
    %128 = vector.shape_cast %125 : vector<2x32xf32> to vector<2x1x32xf32>
    tpu.vector_store %arg5[%c0_48, %c2, %c0_49], %128 {strides = array<i32>} : memref<2x8x32xf32, #tpu.memory_space<vmem>>, vector<2x1x32xf32>,
    %129 = vector.extract_strided_slice %12 {offsets = [0, 3, 0], sizes = [2, 1, 128], strides = [1, 1, 1]} : vector<2x8x128xf32> to vector<2x1x128xf32>
    %130 = vector.shape_cast %129 : vector<2x1x128xf32> to vector<2x128xf32>
    %cst_50 = arith.constant dense<0.000000e+00> : vector<2x128xf32>
    %131 = tpu.matmul %125, %4, %cst_50 {dimension_numbers = #tpu.dot_dimension_numbers<[1], [0], [0], [1], [0, 0, 1, 1], [], []>} : vector<2x32xf32>, vector<32x128xf32>, vector<2x128xf32> -> vector<2x128xf32>
    %132 = arith.addf %130, %131 : vector<2x128xf32>
    %133 = vector.extract_strided_slice %132 {offsets = [0, 0], sizes = [2, 32], strides = [1, 1]} : vector<2x128xf32> to vector<2x32xf32>
    %cst_51 = arith.constant 5.000000e-01 : f32
    %134 = vector.broadcast %cst_51 : f32 to vector<2x32xf32>
    %135 = arith.mulf %134, %133 : vector<2x32xf32>
    %136 = math.tanh %135 : vector<2x32xf32>
    %cst_52 = arith.constant 1.000000e+00 : f32
    %137 = vector.broadcast %cst_52 : f32 to vector<2x32xf32>
    %138 = arith.addf %136, %137 : vector<2x32xf32>
    %cst_53 = arith.constant 5.000000e-01 : f32
    %139 = vector.broadcast %cst_53 : f32 to vector<2x32xf32>
    %140 = arith.mulf %139, %138 : vector<2x32xf32>
    %141 = vector.extract_strided_slice %132 {offsets = [0, 32], sizes = [2, 32], strides = [1, 1]} : vector<2x128xf32> to vector<2x32xf32>
    %cst_54 = arith.constant 5.000000e-01 : f32
    %142 = vector.broadcast %cst_54 : f32 to vector<2x32xf32>
    %143 = arith.mulf %142, %141 : vector<2x32xf32>
    %144 = math.tanh %143 : vector<2x32xf32>
    %cst_55 = arith.constant 1.000000e+00 : f32
    %145 = vector.broadcast %cst_55 : f32 to vector<2x32xf32>
    %146 = arith.addf %144, %145 : vector<2x32xf32>
    %cst_56 = arith.constant 5.000000e-01 : f32
    %147 = vector.broadcast %cst_56 : f32 to vector<2x32xf32>
    %148 = arith.mulf %147, %146 : vector<2x32xf32>
    %149 = vector.extract_strided_slice %132 {offsets = [0, 64], sizes = [2, 32], strides = [1, 1]} : vector<2x128xf32> to vector<2x32xf32>
    %150 = math.tanh %149 : vector<2x32xf32>
    %151 = vector.extract_strided_slice %132 {offsets = [0, 96], sizes = [2, 32], strides = [1, 1]} : vector<2x128xf32> to vector<2x32xf32>
    %cst_57 = arith.constant 5.000000e-01 : f32
    %152 = vector.broadcast %cst_57 : f32 to vector<2x32xf32>
    %153 = arith.mulf %152, %151 : vector<2x32xf32>
    %154 = math.tanh %153 : vector<2x32xf32>
    %cst_58 = arith.constant 1.000000e+00 : f32
    %155 = vector.broadcast %cst_58 : f32 to vector<2x32xf32>
    %156 = arith.addf %154, %155 : vector<2x32xf32>
    %cst_59 = arith.constant 5.000000e-01 : f32
    %157 = vector.broadcast %cst_59 : f32 to vector<2x32xf32>
    %158 = arith.mulf %157, %156 : vector<2x32xf32>
    %159 = arith.mulf %148, %123 : vector<2x32xf32>
    %160 = arith.mulf %140, %150 : vector<2x32xf32>
    %161 = arith.addf %159, %160 : vector<2x32xf32>
    %162 = math.tanh %161 : vector<2x32xf32>
    %163 = arith.mulf %158, %162 : vector<2x32xf32>
    %c0_60 = arith.constant 0 : index
    %c3 = arith.constant 3 : index
    %c0_61 = arith.constant 0 : index
    %164 = vector.load %arg5[%c0_60, %c3, %c0_61] : memref<2x8x32xf32, #tpu.memory_space<vmem>>, vector<2x1x32xf32>
    %165 = vector.shape_cast %164 : vector<2x1x32xf32> to vector<2x32xf32>
    %166 = vector.shape_cast %163 : vector<2x32xf32> to vector<2x1x32xf32>
    tpu.vector_store %arg5[%c0_60, %c3, %c0_61], %166 {strides = array<i32>} : memref<2x8x32xf32, #tpu.memory_space<vmem>>, vector<2x1x32xf32>,
    %167 = vector.extract_strided_slice %12 {offsets = [0, 4, 0], sizes = [2, 1, 128], strides = [1, 1, 1]} : vector<2x8x128xf32> to vector<2x1x128xf32>
    %168 = vector.shape_cast %167 : vector<2x1x128xf32> to vector<2x128xf32>
    %cst_62 = arith.constant dense<0.000000e+00> : vector<2x128xf32>
    %169 = tpu.matmul %163, %4, %cst_62 {dimension_numbers = #tpu.dot_dimension_numbers<[1], [0], [0], [1], [0, 0, 1, 1], [], []>} : vector<2x32xf32>, vector<32x128xf32>, vector<2x128xf32> -> vector<2x128xf32>
    %170 = arith.addf %168, %169 : vector<2x128xf32>
    %171 = vector.extract_strided_slice %170 {offsets = [0, 0], sizes = [2, 32], strides = [1, 1]} : vector<2x128xf32> to vector<2x32xf32>
    %cst_63 = arith.constant 5.000000e-01 : f32
    %172 = vector.broadcast %cst_63 : f32 to vector<2x32xf32>
    %173 = arith.mulf %172, %171 : vector<2x32xf32>
    %174 = math.tanh %173 : vector<2x32xf32>
    %cst_64 = arith.constant 1.000000e+00 : f32
    %175 = vector.broadcast %cst_64 : f32 to vector<2x32xf32>
    %176 = arith.addf %174, %175 : vector<2x32xf32>
    %cst_65 = arith.constant 5.000000e-01 : f32
    %177 = vector.broadcast %cst_65 : f32 to vector<2x32xf32>
    %178 = arith.mulf %177, %176 : vector<2x32xf32>
    %179 = vector.extract_strided_slice %170 {offsets = [0, 32], sizes = [2, 32], strides = [1, 1]} : vector<2x128xf32> to vector<2x32xf32>
    %cst_66 = arith.constant 5.000000e-01 : f32
    %180 = vector.broadcast %cst_66 : f32 to vector<2x32xf32>
    %181 = arith.mulf %180, %179 : vector<2x32xf32>
    %182 = math.tanh %181 : vector<2x32xf32>
    %cst_67 = arith.constant 1.000000e+00 : f32
    %183 = vector.broadcast %cst_67 : f32 to vector<2x32xf32>
    %184 = arith.addf %182, %183 : vector<2x32xf32>
    %cst_68 = arith.constant 5.000000e-01 : f32
    %185 = vector.broadcast %cst_68 : f32 to vector<2x32xf32>
    %186 = arith.mulf %185, %184 : vector<2x32xf32>
    %187 = vector.extract_strided_slice %170 {offsets = [0, 64], sizes = [2, 32], strides = [1, 1]} : vector<2x128xf32> to vector<2x32xf32>
    %188 = math.tanh %187 : vector<2x32xf32>
    %189 = vector.extract_strided_slice %170 {offsets = [0, 96], sizes = [2, 32], strides = [1, 1]} : vector<2x128xf32> to vector<2x32xf32>
    %cst_69 = arith.constant 5.000000e-01 : f32
    %190 = vector.broadcast %cst_69 : f32 to vector<2x32xf32>
    %191 = arith.mulf %190, %189 : vector<2x32xf32>
    %192 = math.tanh %191 : vector<2x32xf32>
    %cst_70 = arith.constant 1.000000e+00 : f32
    %193 = vector.broadcast %cst_70 : f32 to vector<2x32xf32>
    %194 = arith.addf %192, %193 : vector<2x32xf32>
    %cst_71 = arith.constant 5.000000e-01 : f32
    %195 = vector.broadcast %cst_71 : f32 to vector<2x32xf32>
    %196 = arith.mulf %195, %194 : vector<2x32xf32>
    %197 = arith.mulf %186, %161 : vector<2x32xf32>
    %198 = arith.mulf %178, %188 : vector<2x32xf32>
    %199 = arith.addf %197, %198 : vector<2x32xf32>
    %200 = math.tanh %199 : vector<2x32xf32>
    %201 = arith.mulf %196, %200 : vector<2x32xf32>
    %c0_72 = arith.constant 0 : index
    %c4 = arith.constant 4 : index
    %c0_73 = arith.constant 0 : index
    %202 = vector.load %arg5[%c0_72, %c4, %c0_73] : memref<2x8x32xf32, #tpu.memory_space<vmem>>, vector<2x1x32xf32>
    %203 = vector.shape_cast %202 : vector<2x1x32xf32> to vector<2x32xf32>
    %204 = vector.shape_cast %201 : vector<2x32xf32> to vector<2x1x32xf32>
    tpu.vector_store %arg5[%c0_72, %c4, %c0_73], %204 {strides = array<i32>} : memref<2x8x32xf32, #tpu.memory_space<vmem>>, vector<2x1x32xf32>,
    %205 = vector.extract_strided_slice %12 {offsets = [0, 5, 0], sizes = [2, 1, 128], strides = [1, 1, 1]} : vector<2x8x128xf32> to vector<2x1x128xf32>
    %206 = vector.shape_cast %205 : vector<2x1x128xf32> to vector<2x128xf32>
    %cst_74 = arith.constant dense<0.000000e+00> : vector<2x128xf32>
    %207 = tpu.matmul %201, %4, %cst_74 {dimension_numbers = #tpu.dot_dimension_numbers<[1], [0], [0], [1], [0, 0, 1, 1], [], []>} : vector<2x32xf32>, vector<32x128xf32>, vector<2x128xf32> -> vector<2x128xf32>
    %208 = arith.addf %206, %207 : vector<2x128xf32>
    %209 = vector.extract_strided_slice %208 {offsets = [0, 0], sizes = [2, 32], strides = [1, 1]} : vector<2x128xf32> to vector<2x32xf32>
    %cst_75 = arith.constant 5.000000e-01 : f32
    %210 = vector.broadcast %cst_75 : f32 to vector<2x32xf32>
    %211 = arith.mulf %210, %209 : vector<2x32xf32>
    %212 = math.tanh %211 : vector<2x32xf32>
    %cst_76 = arith.constant 1.000000e+00 : f32
    %213 = vector.broadcast %cst_76 : f32 to vector<2x32xf32>
    %214 = arith.addf %212, %213 : vector<2x32xf32>
    %cst_77 = arith.constant 5.000000e-01 : f32
    %215 = vector.broadcast %cst_77 : f32 to vector<2x32xf32>
    %216 = arith.mulf %215, %214 : vector<2x32xf32>
    %217 = vector.extract_strided_slice %208 {offsets = [0, 32], sizes = [2, 32], strides = [1, 1]} : vector<2x128xf32> to vector<2x32xf32>
    %cst_78 = arith.constant 5.000000e-01 : f32
    %218 = vector.broadcast %cst_78 : f32 to vector<2x32xf32>
    %219 = arith.mulf %218, %217 : vector<2x32xf32>
    %220 = math.tanh %219 : vector<2x32xf32>
    %cst_79 = arith.constant 1.000000e+00 : f32
    %221 = vector.broadcast %cst_79 : f32 to vector<2x32xf32>
    %222 = arith.addf %220, %221 : vector<2x32xf32>
    %cst_80 = arith.constant 5.000000e-01 : f32
    %223 = vector.broadcast %cst_80 : f32 to vector<2x32xf32>
    %224 = arith.mulf %223, %222 : vector<2x32xf32>
    %225 = vector.extract_strided_slice %208 {offsets = [0, 64], sizes = [2, 32], strides = [1, 1]} : vector<2x128xf32> to vector<2x32xf32>
    %226 = math.tanh %225 : vector<2x32xf32>
    %227 = vector.extract_strided_slice %208 {offsets = [0, 96], sizes = [2, 32], strides = [1, 1]} : vector<2x128xf32> to vector<2x32xf32>
    %cst_81 = arith.constant 5.000000e-01 : f32
    %228 = vector.broadcast %cst_81 : f32 to vector<2x32xf32>
    %229 = arith.mulf %228, %227 : vector<2x32xf32>
    %230 = math.tanh %229 : vector<2x32xf32>
    %cst_82 = arith.constant 1.000000e+00 : f32
    %231 = vector.broadcast %cst_82 : f32 to vector<2x32xf32>
    %232 = arith.addf %230, %231 : vector<2x32xf32>
    %cst_83 = arith.constant 5.000000e-01 : f32
    %233 = vector.broadcast %cst_83 : f32 to vector<2x32xf32>
    %234 = arith.mulf %233, %232 : vector<2x32xf32>
    %235 = arith.mulf %224, %199 : vector<2x32xf32>
    %236 = arith.mulf %216, %226 : vector<2x32xf32>
    %237 = arith.addf %235, %236 : vector<2x32xf32>
    %238 = math.tanh %237 : vector<2x32xf32>
    %239 = arith.mulf %234, %238 : vector<2x32xf32>
    %c0_84 = arith.constant 0 : index
    %c5 = arith.constant 5 : index
    %c0_85 = arith.constant 0 : index
    %240 = vector.load %arg5[%c0_84, %c5, %c0_85] : memref<2x8x32xf32, #tpu.memory_space<vmem>>, vector<2x1x32xf32>
    %241 = vector.shape_cast %240 : vector<2x1x32xf32> to vector<2x32xf32>
    %242 = vector.shape_cast %239 : vector<2x32xf32> to vector<2x1x32xf32>
    tpu.vector_store %arg5[%c0_84, %c5, %c0_85], %242 {strides = array<i32>} : memref<2x8x32xf32, #tpu.memory_space<vmem>>, vector<2x1x32xf32>,
    %243 = vector.extract_strided_slice %12 {offsets = [0, 6, 0], sizes = [2, 1, 128], strides = [1, 1, 1]} : vector<2x8x128xf32> to vector<2x1x128xf32>
    %244 = vector.shape_cast %243 : vector<2x1x128xf32> to vector<2x128xf32>
    %cst_86 = arith.constant dense<0.000000e+00> : vector<2x128xf32>
    %245 = tpu.matmul %239, %4, %cst_86 {dimension_numbers = #tpu.dot_dimension_numbers<[1], [0], [0], [1], [0, 0, 1, 1], [], []>} : vector<2x32xf32>, vector<32x128xf32>, vector<2x128xf32> -> vector<2x128xf32>
    %246 = arith.addf %244, %245 : vector<2x128xf32>
    %247 = vector.extract_strided_slice %246 {offsets = [0, 0], sizes = [2, 32], strides = [1, 1]} : vector<2x128xf32> to vector<2x32xf32>
    %cst_87 = arith.constant 5.000000e-01 : f32
    %248 = vector.broadcast %cst_87 : f32 to vector<2x32xf32>
    %249 = arith.mulf %248, %247 : vector<2x32xf32>
    %250 = math.tanh %249 : vector<2x32xf32>
    %cst_88 = arith.constant 1.000000e+00 : f32
    %251 = vector.broadcast %cst_88 : f32 to vector<2x32xf32>
    %252 = arith.addf %250, %251 : vector<2x32xf32>
    %cst_89 = arith.constant 5.000000e-01 : f32
    %253 = vector.broadcast %cst_89 : f32 to vector<2x32xf32>
    %254 = arith.mulf %253, %252 : vector<2x32xf32>
    %255 = vector.extract_strided_slice %246 {offsets = [0, 32], sizes = [2, 32], strides = [1, 1]} : vector<2x128xf32> to vector<2x32xf32>
    %cst_90 = arith.constant 5.000000e-01 : f32
    %256 = vector.broadcast %cst_90 : f32 to vector<2x32xf32>
    %257 = arith.mulf %256, %255 : vector<2x32xf32>
    %258 = math.tanh %257 : vector<2x32xf32>
    %cst_91 = arith.constant 1.000000e+00 : f32
    %259 = vector.broadcast %cst_91 : f32 to vector<2x32xf32>
    %260 = arith.addf %258, %259 : vector<2x32xf32>
    %cst_92 = arith.constant 5.000000e-01 : f32
    %261 = vector.broadcast %cst_92 : f32 to vector<2x32xf32>
    %262 = arith.mulf %261, %260 : vector<2x32xf32>
    %263 = vector.extract_strided_slice %246 {offsets = [0, 64], sizes = [2, 32], strides = [1, 1]} : vector<2x128xf32> to vector<2x32xf32>
    %264 = math.tanh %263 : vector<2x32xf32>
    %265 = vector.extract_strided_slice %246 {offsets = [0, 96], sizes = [2, 32], strides = [1, 1]} : vector<2x128xf32> to vector<2x32xf32>
    %cst_93 = arith.constant 5.000000e-01 : f32
    %266 = vector.broadcast %cst_93 : f32 to vector<2x32xf32>
    %267 = arith.mulf %266, %265 : vector<2x32xf32>
    %268 = math.tanh %267 : vector<2x32xf32>
    %cst_94 = arith.constant 1.000000e+00 : f32
    %269 = vector.broadcast %cst_94 : f32 to vector<2x32xf32>
    %270 = arith.addf %268, %269 : vector<2x32xf32>
    %cst_95 = arith.constant 5.000000e-01 : f32
    %271 = vector.broadcast %cst_95 : f32 to vector<2x32xf32>
    %272 = arith.mulf %271, %270 : vector<2x32xf32>
    %273 = arith.mulf %262, %237 : vector<2x32xf32>
    %274 = arith.mulf %254, %264 : vector<2x32xf32>
    %275 = arith.addf %273, %274 : vector<2x32xf32>
    %276 = math.tanh %275 : vector<2x32xf32>
    %277 = arith.mulf %272, %276 : vector<2x32xf32>
    %c0_96 = arith.constant 0 : index
    %c6 = arith.constant 6 : index
    %c0_97 = arith.constant 0 : index
    %278 = vector.load %arg5[%c0_96, %c6, %c0_97] : memref<2x8x32xf32, #tpu.memory_space<vmem>>, vector<2x1x32xf32>
    %279 = vector.shape_cast %278 : vector<2x1x32xf32> to vector<2x32xf32>
    %280 = vector.shape_cast %277 : vector<2x32xf32> to vector<2x1x32xf32>
    tpu.vector_store %arg5[%c0_96, %c6, %c0_97], %280 {strides = array<i32>} : memref<2x8x32xf32, #tpu.memory_space<vmem>>, vector<2x1x32xf32>,
    %281 = vector.extract_strided_slice %12 {offsets = [0, 7, 0], sizes = [2, 1, 128], strides = [1, 1, 1]} : vector<2x8x128xf32> to vector<2x1x128xf32>
    %282 = vector.shape_cast %281 : vector<2x1x128xf32> to vector<2x128xf32>
    %cst_98 = arith.constant dense<0.000000e+00> : vector<2x128xf32>
    %283 = tpu.matmul %277, %4, %cst_98 {dimension_numbers = #tpu.dot_dimension_numbers<[1], [0], [0], [1], [0, 0, 1, 1], [], []>} : vector<2x32xf32>, vector<32x128xf32>, vector<2x128xf32> -> vector<2x128xf32>
    %284 = arith.addf %282, %283 : vector<2x128xf32>
    %285 = vector.extract_strided_slice %284 {offsets = [0, 0], sizes = [2, 32], strides = [1, 1]} : vector<2x128xf32> to vector<2x32xf32>
    %cst_99 = arith.constant 5.000000e-01 : f32
    %286 = vector.broadcast %cst_99 : f32 to vector<2x32xf32>
    %287 = arith.mulf %286, %285 : vector<2x32xf32>
    %288 = math.tanh %287 : vector<2x32xf32>
    %cst_100 = arith.constant 1.000000e+00 : f32
    %289 = vector.broadcast %cst_100 : f32 to vector<2x32xf32>
    %290 = arith.addf %288, %289 : vector<2x32xf32>
    %cst_101 = arith.constant 5.000000e-01 : f32
    %291 = vector.broadcast %cst_101 : f32 to vector<2x32xf32>
    %292 = arith.mulf %291, %290 : vector<2x32xf32>
    %293 = vector.extract_strided_slice %284 {offsets = [0, 32], sizes = [2, 32], strides = [1, 1]} : vector<2x128xf32> to vector<2x32xf32>
    %cst_102 = arith.constant 5.000000e-01 : f32
    %294 = vector.broadcast %cst_102 : f32 to vector<2x32xf32>
    %295 = arith.mulf %294, %293 : vector<2x32xf32>
    %296 = math.tanh %295 : vector<2x32xf32>
    %cst_103 = arith.constant 1.000000e+00 : f32
    %297 = vector.broadcast %cst_103 : f32 to vector<2x32xf32>
    %298 = arith.addf %296, %297 : vector<2x32xf32>
    %cst_104 = arith.constant 5.000000e-01 : f32
    %299 = vector.broadcast %cst_104 : f32 to vector<2x32xf32>
    %300 = arith.mulf %299, %298 : vector<2x32xf32>
    %301 = vector.extract_strided_slice %284 {offsets = [0, 64], sizes = [2, 32], strides = [1, 1]} : vector<2x128xf32> to vector<2x32xf32>
    %302 = math.tanh %301 : vector<2x32xf32>
    %303 = vector.extract_strided_slice %284 {offsets = [0, 96], sizes = [2, 32], strides = [1, 1]} : vector<2x128xf32> to vector<2x32xf32>
    %cst_105 = arith.constant 5.000000e-01 : f32
    %304 = vector.broadcast %cst_105 : f32 to vector<2x32xf32>
    %305 = arith.mulf %304, %303 : vector<2x32xf32>
    %306 = math.tanh %305 : vector<2x32xf32>
    %cst_106 = arith.constant 1.000000e+00 : f32
    %307 = vector.broadcast %cst_106 : f32 to vector<2x32xf32>
    %308 = arith.addf %306, %307 : vector<2x32xf32>
    %cst_107 = arith.constant 5.000000e-01 : f32
    %309 = vector.broadcast %cst_107 : f32 to vector<2x32xf32>
    %310 = arith.mulf %309, %308 : vector<2x32xf32>
    %311 = arith.mulf %300, %275 : vector<2x32xf32>
    %312 = arith.mulf %292, %302 : vector<2x32xf32>
    %313 = arith.addf %311, %312 : vector<2x32xf32>
    %314 = math.tanh %313 : vector<2x32xf32>
    %315 = arith.mulf %310, %314 : vector<2x32xf32>
    %c0_108 = arith.constant 0 : index
    %c7 = arith.constant 7 : index
    %c0_109 = arith.constant 0 : index
    %316 = vector.load %arg5[%c0_108, %c7, %c0_109] : memref<2x8x32xf32, #tpu.memory_space<vmem>>, vector<2x1x32xf32>
    %317 = vector.shape_cast %316 : vector<2x1x32xf32> to vector<2x32xf32>
    %318 = vector.shape_cast %315 : vector<2x32xf32> to vector<2x1x32xf32>
    tpu.vector_store %arg5[%c0_108, %c7, %c0_109], %318 {strides = array<i32>} : memref<2x8x32xf32, #tpu.memory_space<vmem>>, vector<2x1x32xf32>,
    %c0_110 = arith.constant 0 : index
    %c0_111 = arith.constant 0 : index
    %319 = vector.load %arg6[%c0_110, %c0_111] : memref<2x32xf32, #tpu.memory_space<vmem>>, vector<2x32xf32>
    tpu.vector_store %arg6[%c0_110, %c0_111], %315 {strides = array<i32>} : memref<2x32xf32, #tpu.memory_space<vmem>>, vector<2x32xf32>,
    %c0_112 = arith.constant 0 : index
    %c0_113 = arith.constant 0 : index
    %320 = vector.load %arg7[%c0_112, %c0_113] : memref<2x32xf32, #tpu.memory_space<vmem>>, vector<2x32xf32>
    tpu.vector_store %arg7[%c0_112, %c0_113], %313 {strides = array<i32>} : memref<2x32xf32, #tpu.memory_space<vmem>>, vector<2x32xf32>,
    return
  }
  func.func @transform_0(%arg0: i32) -> (i32, i32, i32) {
    %c0_i32 = arith.constant 0 : i32
    %c0_i32_0 = arith.constant 0 : i32
    %c0_i32_1 = arith.constant 0 : i32
    return %c0_i32, %arg0, %c0_i32_0 : i32, i32, i32
  }
  func.func @transform_1(%arg0: i32) -> (i32, i32) {
    %c0_i32 = arith.constant 0 : i32
    %c0_i32_0 = arith.constant 0 : i32
    %c0_i32_1 = arith.constant 0 : i32
    return %c0_i32, %c0_i32_0 : i32, i32
  }
  func.func @transform_2(%arg0: i32) -> (i32, i32) {
    %c0_i32 = arith.constant 0 : i32
    %c0_i32_0 = arith.constant 0 : i32
    %c0_i32_1 = arith.constant 0 : i32
    return %c0_i32, %c0_i32_0 : i32, i32
  }
  func.func @transform_3(%arg0: i32) -> (i32, i32) {
    %c0_i32 = arith.constant 0 : i32
    %c0_i32_0 = arith.constant 0 : i32
    %c0_i32_1 = arith.constant 0 : i32
    return %c0_i32, %c0_i32_0 : i32, i32
  }
  func.func @transform_4(%arg0: i32) -> (i32, i32, i32) {
    %c0_i32 = arith.constant 0 : i32
    %c0_i32_0 = arith.constant 0 : i32
    %c0_i32_1 = arith.constant 0 : i32
    return %c0_i32, %arg0, %c0_i32_0 : i32, i32, i32
  }
}

module attributes {stable_mosaic.version = 11 : i64} {
  func.func @_lstm_fused_kernel(%arg0: i32, %arg1: memref<2x8x32xf32, #tpu.memory_space<vmem>>, %arg2: memref<32x128xf32, #tpu.memory_space<vmem>>, %arg3: memref<32x128xf32, #tpu.memory_space<vmem>>, %arg4: memref<1x128xf32, #tpu.memory_space<vmem>>, %arg5: memref<2x8x32xf32, #tpu.memory_space<vmem>>, %arg6: memref<2x32xf32, #tpu.memory_space<vmem>>, %arg7: memref<2x32xf32, #tpu.memory_space<vmem>>) attributes {dimension_semantics = [#tpu.dimension_semantics<arbitrary>], iteration_bounds = array<i64: 1>, scalar_prefetch = 0 : i64, scratch_operands = 2 : i64, tpu.core_type = #tpu.core_type<tc>, window_params = [{transform_indices = @transform_0, window_bounds = array<i64: 2, 8, 32>}, {pipeline_mode = #tpu.pipeline_mode<synchronous>, transform_indices = @transform_1, window_bounds = array<i64: 32, 128>}, {pipeline_mode = #tpu.pipeline_mode<synchronous>, transform_indices = @transform_2, window_bounds = array<i64: 32, 128>}, {pipeline_mode = #tpu.pipeline_mode<synchronous>, transform_indices = @transform_3, window_bounds = array<i64: 1, 128>}, {transform_indices = @transform_4, window_bounds = array<i64: 2, 8, 32>}]} {
    %c0_i32 = arith.constant 0 : i32
    %0 = arith.cmpi eq, %arg0, %c0_i32 : i32
    %1 = arith.extui %0 : i1 to i32
    %c0_i32_0 = arith.constant 0 : i32
    %2 = arith.cmpi ne, %1, %c0_i32_0 : i32
    scf.if %2 {
      %cst_114 = arith.constant 0.000000e+00 : f32
      %321 = vector.broadcast %cst_114 : f32 to vector<2x32xf32>
      %c0_115 = arith.constant 0 : index
      %c0_116 = arith.constant 0 : index
      %322 = vector.load %arg6[%c0_115, %c0_116] : memref<2x32xf32, #tpu.memory_space<vmem>>, vector<2x32xf32>
      tpu.vector_store %arg6[%c0_115, %c0_116], %321 {strides = array<i32>} : memref<2x32xf32, #tpu.memory_space<vmem>>, vector<2x32xf32>,
      %cst_117 = arith.constant 0.000000e+00 : f32
      %323 = vector.broadcast %cst_117 : f32 to vector<2x32xf32>
      %c0_118 = arith.constant 0 : index
      %c0_119 = arith.constant 0 : index
      %324 = vector.load %arg7[%c0_118, %c0_119] : memref<2x32xf32, #tpu.memory_space<vmem>>, vector<2x32xf32>
      tpu.vector_store %arg7[%c0_118, %c0_119], %323 {strides = array<i32>} : memref<2x32xf32, #tpu.memory_space<vmem>>, vector<2x32xf32>,
    } else {
    }
    %c0 = arith.constant 0 : index
    %c0_1 = arith.constant 0 : index
    %3 = vector.load %arg2[%c0, %c0_1] : memref<32x128xf32, #tpu.memory_space<vmem>>, vector<32x128xf32>
    %c0_2 = arith.constant 0 : index
    %c0_3 = arith.constant 0 : index
    %4 = vector.load %arg3[%c0_2, %c0_3] : memref<32x128xf32, #tpu.memory_space<vmem>>, vector<32x128xf32>
    %c0_4 = arith.constant 0 : index
    %c0_5 = arith.constant 0 : index
    %c0_6 = arith.constant 0 : index
    %5 = vector.load %arg1[%c0_4, %c0_5, %c0_6] : memref<2x8x32xf32, #tpu.memory_space<vmem>>, vector<2x8x32xf32>
    %6 = vector.shape_cast %5 : vector<2x8x32xf32> to vector<16x32xf32>
    %cst = arith.constant dense<0.000000e+00> : vector<16x128xf32>
    %7 = tpu.matmul %6, %3, %cst {dimension_numbers = #tpu.dot_dimension_numbers<[1], [0], [0], [1], [0, 0, 1, 1], [], []>} : vector<16x32xf32>, vector<32x128xf32>, vector<16x128xf32> -> vector<16x128xf32>
    %8 = vector.shape_cast %7 : vector<16x128xf32> to vector<2x8x128xf32>
    %c0_7 = arith.constant 0 : index
    %c0_8 = arith.constant 0 : index
    %9 = vector.load %arg4[%c0_7, %c0_8] : memref<1x128xf32, #tpu.memory_space<vmem>>, vector<1x128xf32>
    %10 = vector.shape_cast %9 : vector<1x128xf32> to vector<1x1x128xf32>
    %11 = vector.broadcast %10 : vector<1x1x128xf32> to vector<2x8x128xf32>
    %12 = arith.addf %8, %11 : vector<2x8x128xf32>
    %c0_9 = arith.constant 0 : index
    %c0_10 = arith.constant 0 : index
    %13 = vector.load %arg6[%c0_9, %c0_10] : memref<2x32xf32, #tpu.memory_space<vmem>>, vector<2x32xf32>
    %c0_11 = arith.constant 0 : index
    %c0_12 = arith.constant 0 : index
    %14 = vector.load %arg7[%c0_11, %c0_12] : memref<2x32xf32, #tpu.memory_space<vmem>>, vector<2x32xf32>
    %15 = vector.extract_strided_slice %12 {offsets = [0, 0, 0], sizes = [2, 1, 128], strides = [1, 1, 1]} : vector<2x8x128xf32> to vector<2x1x128xf32>
    %16 = vector.shape_cast %15 : vector<2x1x128xf32> to vector<2x128xf32>
    %cst_13 = arith.constant dense<0.000000e+00> : vector<2x128xf32>
    %17 = tpu.matmul %13, %4, %cst_13 {dimension_numbers = #tpu.dot_dimension_numbers<[1], [0], [0], [1], [0, 0, 1, 1], [], []>} : vector<2x32xf32>, vector<32x128xf32>, vector<2x128xf32> -> vector<2x128xf32>
    %18 = arith.addf %16, %17 : vector<2x128xf32>
    %19 = vector.extract_strided_slice %18 {offsets = [0, 0], sizes = [2, 32], strides = [1, 1]} : vector<2x128xf32> to vector<2x32xf32>
    %cst_14 = arith.constant 5.000000e-01 : f32
    %20 = vector.broadcast %cst_14 : f32 to vector<2x32xf32>
    %21 = arith.mulf %20, %19 : vector<2x32xf32>
    %22 = math.tanh %21 : vector<2x32xf32>
    %cst_15 = arith.constant 1.000000e+00 : f32
    %23 = vector.broadcast %cst_15 : f32 to vector<2x32xf32>
    %24 = arith.addf %22, %23 : vector<2x32xf32>
    %cst_16 = arith.constant 5.000000e-01 : f32
    %25 = vector.broadcast %cst_16 : f32 to vector<2x32xf32>
    %26 = arith.mulf %25, %24 : vector<2x32xf32>
    %27 = vector.extract_strided_slice %18 {offsets = [0, 32], sizes = [2, 32], strides = [1, 1]} : vector<2x128xf32> to vector<2x32xf32>
    %cst_17 = arith.constant 5.000000e-01 : f32
    %28 = vector.broadcast %cst_17 : f32 to vector<2x32xf32>
    %29 = arith.mulf %28, %27 : vector<2x32xf32>
    %30 = math.tanh %29 : vector<2x32xf32>
    %cst_18 = arith.constant 1.000000e+00 : f32
    %31 = vector.broadcast %cst_18 : f32 to vector<2x32xf32>
    %32 = arith.addf %30, %31 : vector<2x32xf32>
    %cst_19 = arith.constant 5.000000e-01 : f32
    %33 = vector.broadcast %cst_19 : f32 to vector<2x32xf32>
    %34 = arith.mulf %33, %32 : vector<2x32xf32>
    %35 = vector.extract_strided_slice %18 {offsets = [0, 64], sizes = [2, 32], strides = [1, 1]} : vector<2x128xf32> to vector<2x32xf32>
    %36 = math.tanh %35 : vector<2x32xf32>
    %37 = vector.extract_strided_slice %18 {offsets = [0, 96], sizes = [2, 32], strides = [1, 1]} : vector<2x128xf32> to vector<2x32xf32>
    %cst_20 = arith.constant 5.000000e-01 : f32
    %38 = vector.broadcast %cst_20 : f32 to vector<2x32xf32>
    %39 = arith.mulf %38, %37 : vector<2x32xf32>
    %40 = math.tanh %39 : vector<2x32xf32>
    %cst_21 = arith.constant 1.000000e+00 : f32
    %41 = vector.broadcast %cst_21 : f32 to vector<2x32xf32>
    %42 = arith.addf %40, %41 : vector<2x32xf32>
    %cst_22 = arith.constant 5.000000e-01 : f32
    %43 = vector.broadcast %cst_22 : f32 to vector<2x32xf32>
    %44 = arith.mulf %43, %42 : vector<2x32xf32>
    %45 = arith.mulf %34, %14 : vector<2x32xf32>
    %46 = arith.mulf %26, %36 : vector<2x32xf32>
    %47 = arith.addf %45, %46 : vector<2x32xf32>
    %48 = math.tanh %47 : vector<2x32xf32>
    %49 = arith.mulf %44, %48 : vector<2x32xf32>
    %c0_23 = arith.constant 0 : index
    %c0_24 = arith.constant 0 : index
    %c0_25 = arith.constant 0 : index
    %50 = vector.load %arg5[%c0_23, %c0_24, %c0_25] : memref<2x8x32xf32, #tpu.memory_space<vmem>>, vector<2x1x32xf32>
    %51 = vector.shape_cast %50 : vector<2x1x32xf32> to vector<2x32xf32>
    %52 = vector.shape_cast %49 : vector<2x32xf32> to vector<2x1x32xf32>
    tpu.vector_store %arg5[%c0_23, %c0_24, %c0_25], %52 {strides = array<i32>} : memref<2x8x32xf32, #tpu.memory_space<vmem>>, vector<2x1x32xf32>,
    %53 = vector.extract_strided_slice %12 {offsets = [0, 1, 0], sizes = [2, 1, 128], strides = [1, 1, 1]} : vector<2x8x128xf32> to vector<2x1x128xf32>
    %54 = vector.shape_cast %53 : vector<2x1x128xf32> to vector<2x128xf32>
    %cst_26 = arith.constant dense<0.000000e+00> : vector<2x128xf32>
    %55 = tpu.matmul %49, %4, %cst_26 {dimension_numbers = #tpu.dot_dimension_numbers<[1], [0], [0], [1], [0, 0, 1, 1], [], []>} : vector<2x32xf32>, vector<32x128xf32>, vector<2x128xf32> -> vector<2x128xf32>
    %56 = arith.addf %54, %55 : vector<2x128xf32>
    %57 = vector.extract_strided_slice %56 {offsets = [0, 0], sizes = [2, 32], strides = [1, 1]} : vector<2x128xf32> to vector<2x32xf32>
    %cst_27 = arith.constant 5.000000e-01 : f32
    %58 = vector.broadcast %cst_27 : f32 to vector<2x32xf32>
    %59 = arith.mulf %58, %57 : vector<2x32xf32>
    %60 = math.tanh %59 : vector<2x32xf32>
    %cst_28 = arith.constant 1.000000e+00 : f32
    %61 = vector.broadcast %cst_28 : f32 to vector<2x32xf32>
    %62 = arith.addf %60, %61 : vector<2x32xf32>
    %cst_29 = arith.constant 5.000000e-01 : f32
    %63 = vector.broadcast %cst_29 : f32 to vector<2x32xf32>
    %64 = arith.mulf %63, %62 : vector<2x32xf32>
    %65 = vector.extract_strided_slice %56 {offsets = [0, 32], sizes = [2, 32], strides = [1, 1]} : vector<2x128xf32> to vector<2x32xf32>
    %cst_30 = arith.constant 5.000000e-01 : f32
    %66 = vector.broadcast %cst_30 : f32 to vector<2x32xf32>
    %67 = arith.mulf %66, %65 : vector<2x32xf32>
    %68 = math.tanh %67 : vector<2x32xf32>
    %cst_31 = arith.constant 1.000000e+00 : f32
    %69 = vector.broadcast %cst_31 : f32 to vector<2x32xf32>
    %70 = arith.addf %68, %69 : vector<2x32xf32>
    %cst_32 = arith.constant 5.000000e-01 : f32
    %71 = vector.broadcast %cst_32 : f32 to vector<2x32xf32>
    %72 = arith.mulf %71, %70 : vector<2x32xf32>
    %73 = vector.extract_strided_slice %56 {offsets = [0, 64], sizes = [2, 32], strides = [1, 1]} : vector<2x128xf32> to vector<2x32xf32>
    %74 = math.tanh %73 : vector<2x32xf32>
    %75 = vector.extract_strided_slice %56 {offsets = [0, 96], sizes = [2, 32], strides = [1, 1]} : vector<2x128xf32> to vector<2x32xf32>
    %cst_33 = arith.constant 5.000000e-01 : f32
    %76 = vector.broadcast %cst_33 : f32 to vector<2x32xf32>
    %77 = arith.mulf %76, %75 : vector<2x32xf32>
    %78 = math.tanh %77 : vector<2x32xf32>
    %cst_34 = arith.constant 1.000000e+00 : f32
    %79 = vector.broadcast %cst_34 : f32 to vector<2x32xf32>
    %80 = arith.addf %78, %79 : vector<2x32xf32>
    %cst_35 = arith.constant 5.000000e-01 : f32
    %81 = vector.broadcast %cst_35 : f32 to vector<2x32xf32>
    %82 = arith.mulf %81, %80 : vector<2x32xf32>
    %83 = arith.mulf %72, %47 : vector<2x32xf32>
    %84 = arith.mulf %64, %74 : vector<2x32xf32>
    %85 = arith.addf %83, %84 : vector<2x32xf32>
    %86 = math.tanh %85 : vector<2x32xf32>
    %87 = arith.mulf %82, %86 : vector<2x32xf32>
    %c0_36 = arith.constant 0 : index
    %c1 = arith.constant 1 : index
    %c0_37 = arith.constant 0 : index
    %88 = vector.load %arg5[%c0_36, %c1, %c0_37] : memref<2x8x32xf32, #tpu.memory_space<vmem>>, vector<2x1x32xf32>
    %89 = vector.shape_cast %88 : vector<2x1x32xf32> to vector<2x32xf32>
    %90 = vector.shape_cast %87 : vector<2x32xf32> to vector<2x1x32xf32>
    tpu.vector_store %arg5[%c0_36, %c1, %c0_37], %90 {strides = array<i32>} : memref<2x8x32xf32, #tpu.memory_space<vmem>>, vector<2x1x32xf32>,
    %91 = vector.extract_strided_slice %12 {offsets = [0, 2, 0], sizes = [2, 1, 128], strides = [1, 1, 1]} : vector<2x8x128xf32> to vector<2x1x128xf32>
    %92 = vector.shape_cast %91 : vector<2x1x128xf32> to vector<2x128xf32>
    %cst_38 = arith.constant dense<0.000000e+00> : vector<2x128xf32>
    %93 = tpu.matmul %87, %4, %cst_38 {dimension_numbers = #tpu.dot_dimension_numbers<[1], [0], [0], [1], [0, 0, 1, 1], [], []>} : vector<2x32xf32>, vector<32x128xf32>, vector<2x128xf32> -> vector<2x128xf32>
    %94 = arith.addf %92, %93 : vector<2x128xf32>
    %95 = vector.extract_strided_slice %94 {offsets = [0, 0], sizes = [2, 32], strides = [1, 1]} : vector<2x128xf32> to vector<2x32xf32>
    %cst_39 = arith.constant 5.000000e-01 : f32
    %96 = vector.broadcast %cst_39 : f32 to vector<2x32xf32>
    %97 = arith.mulf %96, %95 : vector<2x32xf32>
    %98 = math.tanh %97 : vector<2x32xf32>
    %cst_40 = arith.constant 1.000000e+00 : f32
    %99 = vector.broadcast %cst_40 : f32 to vector<2x32xf32>
    %100 = arith.addf %98, %99 : vector<2x32xf32>
    %cst_41 = arith.constant 5.000000e-01 : f32
    %101 = vector.broadcast %cst_41 : f32 to vector<2x32xf32>
    %102 = arith.mulf %101, %100 : vector<2x32xf32>
    %103 = vector.extract_strided_slice %94 {offsets = [0, 32], sizes = [2, 32], strides = [1, 1]} : vector<2x128xf32> to vector<2x32xf32>
    %cst_42 = arith.constant 5.000000e-01 : f32
    %104 = vector.broadcast %cst_42 : f32 to vector<2x32xf32>
    %105 = arith.mulf %104, %103 : vector<2x32xf32>
    %106 = math.tanh %105 : vector<2x32xf32>
    %cst_43 = arith.constant 1.000000e+00 : f32
    %107 = vector.broadcast %cst_43 : f32 to vector<2x32xf32>
    %108 = arith.addf %106, %107 : vector<2x32xf32>
    %cst_44 = arith.constant 5.000000e-01 : f32
    %109 = vector.broadcast %cst_44 : f32 to vector<2x32xf32>
    %110 = arith.mulf %109, %108 : vector<2x32xf32>
    %111 = vector.extract_strided_slice %94 {offsets = [0, 64], sizes = [2, 32], strides = [1, 1]} : vector<2x128xf32> to vector<2x32xf32>
    %112 = math.tanh %111 : vector<2x32xf32>
    %113 = vector.extract_strided_slice %94 {offsets = [0, 96], sizes = [2, 32], strides = [1, 1]} : vector<2x128xf32> to vector<2x32xf32>
    %cst_45 = arith.constant 5.000000e-01 : f32
    %114 = vector.broadcast %cst_45 : f32 to vector<2x32xf32>
    %115 = arith.mulf %114, %113 : vector<2x32xf32>
    %116 = math.tanh %115 : vector<2x32xf32>
    %cst_46 = arith.constant 1.000000e+00 : f32
    %117 = vector.broadcast %cst_46 : f32 to vector<2x32xf32>
    %118 = arith.addf %116, %117 : vector<2x32xf32>
    %cst_47 = arith.constant 5.000000e-01 : f32
    %119 = vector.broadcast %cst_47 : f32 to vector<2x32xf32>
    %120 = arith.mulf %119, %118 : vector<2x32xf32>
    %121 = arith.mulf %110, %85 : vector<2x32xf32>
    %122 = arith.mulf %102, %112 : vector<2x32xf32>
    %123 = arith.addf %121, %122 : vector<2x32xf32>
    %124 = math.tanh %123 : vector<2x32xf32>
    %125 = arith.mulf %120, %124 : vector<2x32xf32>
    %c0_48 = arith.constant 0 : index
    %c2 = arith.constant 2 : index
    %c0_49 = arith.constant 0 : index
    %126 = vector.load %arg5[%c0_48, %c2, %c0_49] : memref<2x8x32xf32, #tpu.memory_space<vmem>>, vector<2x1x32xf32>
    %127 = vector.shape_cast %126 : vector<2x1x32xf32> to vector<2x32xf32>
    %128 = vector.shape_cast %125 : vector<2x32xf32> to vector<2x1x32xf32>
    tpu.vector_store %arg5[%c0_48, %c2, %c0_49], %128 {strides = array<i32>} : memref<2x8x32xf32, #tpu.memory_space<vmem>>, vector<2x1x32xf32>,
    %129 = vector.extract_strided_slice %12 {offsets = [0, 3, 0], sizes = [2, 1, 128], strides = [1, 1, 1]} : vector<2x8x128xf32> to vector<2x1x128xf32>
    %130 = vector.shape_cast %129 : vector<2x1x128xf32> to vector<2x128xf32>
    %cst_50 = arith.constant dense<0.000000e+00> : vector<2x128xf32>
    %131 = tpu.matmul %125, %4, %cst_50 {dimension_numbers = #tpu.dot_dimension_numbers<[1], [0], [0], [1], [0, 0, 1, 1], [], []>} : vector<2x32xf32>, vector<32x128xf32>, vector<2x128xf32> -> vector<2x128xf32>
    %132 = arith.addf %130, %131 : vector<2x128xf32>
    %133 = vector.extract_strided_slice %132 {offsets = [0, 0], sizes = [2, 32], strides = [1, 1]} : vector<2x128xf32> to vector<2x32xf32>
    %cst_51 = arith.constant 5.000000e-01 : f32
    %134 = vector.broadcast %cst_51 : f32 to vector<2x32xf32>
    %135 = arith.mulf %134, %133 : vector<2x32xf32>
    %136 = math.tanh %135 : vector<2x32xf32>
    %cst_52 = arith.constant 1.000000e+00 : f32
    %137 = vector.broadcast %cst_52 : f32 to vector<2x32xf32>
    %138 = arith.addf %136, %137 : vector<2x32xf32>
    %cst_53 = arith.constant 5.000000e-01 : f32
    %139 = vector.broadcast %cst_53 : f32 to vector<2x32xf32>
    %140 = arith.mulf %139, %138 : vector<2x32xf32>
    %141 = vector.extract_strided_slice %132 {offsets = [0, 32], sizes = [2, 32], strides = [1, 1]} : vector<2x128xf32> to vector<2x32xf32>
    %cst_54 = arith.constant 5.000000e-01 : f32
    %142 = vector.broadcast %cst_54 : f32 to vector<2x32xf32>
    %143 = arith.mulf %142, %141 : vector<2x32xf32>
    %144 = math.tanh %143 : vector<2x32xf32>
    %cst_55 = arith.constant 1.000000e+00 : f32
    %145 = vector.broadcast %cst_55 : f32 to vector<2x32xf32>
    %146 = arith.addf %144, %145 : vector<2x32xf32>
    %cst_56 = arith.constant 5.000000e-01 : f32
    %147 = vector.broadcast %cst_56 : f32 to vector<2x32xf32>
    %148 = arith.mulf %147, %146 : vector<2x32xf32>
    %149 = vector.extract_strided_slice %132 {offsets = [0, 64], sizes = [2, 32], strides = [1, 1]} : vector<2x128xf32> to vector<2x32xf32>
    %150 = math.tanh %149 : vector<2x32xf32>
    %151 = vector.extract_strided_slice %132 {offsets = [0, 96], sizes = [2, 32], strides = [1, 1]} : vector<2x128xf32> to vector<2x32xf32>
    %cst_57 = arith.constant 5.000000e-01 : f32
    %152 = vector.broadcast %cst_57 : f32 to vector<2x32xf32>
    %153 = arith.mulf %152, %151 : vector<2x32xf32>
    %154 = math.tanh %153 : vector<2x32xf32>
    %cst_58 = arith.constant 1.000000e+00 : f32
    %155 = vector.broadcast %cst_58 : f32 to vector<2x32xf32>
    %156 = arith.addf %154, %155 : vector<2x32xf32>
    %cst_59 = arith.constant 5.000000e-01 : f32
    %157 = vector.broadcast %cst_59 : f32 to vector<2x32xf32>
    %158 = arith.mulf %157, %156 : vector<2x32xf32>
    %159 = arith.mulf %148, %123 : vector<2x32xf32>
    %160 = arith.mulf %140, %150 : vector<2x32xf32>
    %161 = arith.addf %159, %160 : vector<2x32xf32>
    %162 = math.tanh %161 : vector<2x32xf32>
    %163 = arith.mulf %158, %162 : vector<2x32xf32>
    %c0_60 = arith.constant 0 : index
    %c3 = arith.constant 3 : index
    %c0_61 = arith.constant 0 : index
    %164 = vector.load %arg5[%c0_60, %c3, %c0_61] : memref<2x8x32xf32, #tpu.memory_space<vmem>>, vector<2x1x32xf32>
    %165 = vector.shape_cast %164 : vector<2x1x32xf32> to vector<2x32xf32>
    %166 = vector.shape_cast %163 : vector<2x32xf32> to vector<2x1x32xf32>
    tpu.vector_store %arg5[%c0_60, %c3, %c0_61], %166 {strides = array<i32>} : memref<2x8x32xf32, #tpu.memory_space<vmem>>, vector<2x1x32xf32>,
    %167 = vector.extract_strided_slice %12 {offsets = [0, 4, 0], sizes = [2, 1, 128], strides = [1, 1, 1]} : vector<2x8x128xf32> to vector<2x1x128xf32>
    %168 = vector.shape_cast %167 : vector<2x1x128xf32> to vector<2x128xf32>
    %cst_62 = arith.constant dense<0.000000e+00> : vector<2x128xf32>
    %169 = tpu.matmul %163, %4, %cst_62 {dimension_numbers = #tpu.dot_dimension_numbers<[1], [0], [0], [1], [0, 0, 1, 1], [], []>} : vector<2x32xf32>, vector<32x128xf32>, vector<2x128xf32> -> vector<2x128xf32>
    %170 = arith.addf %168, %169 : vector<2x128xf32>
    %171 = vector.extract_strided_slice %170 {offsets = [0, 0], sizes = [2, 32], strides = [1, 1]} : vector<2x128xf32> to vector<2x32xf32>
    %cst_63 = arith.constant 5.000000e-01 : f32
    %172 = vector.broadcast %cst_63 : f32 to vector<2x32xf32>
    %173 = arith.mulf %172, %171 : vector<2x32xf32>
    %174 = math.tanh %173 : vector<2x32xf32>
    %cst_64 = arith.constant 1.000000e+00 : f32
    %175 = vector.broadcast %cst_64 : f32 to vector<2x32xf32>
    %176 = arith.addf %174, %175 : vector<2x32xf32>
    %cst_65 = arith.constant 5.000000e-01 : f32
    %177 = vector.broadcast %cst_65 : f32 to vector<2x32xf32>
    %178 = arith.mulf %177, %176 : vector<2x32xf32>
    %179 = vector.extract_strided_slice %170 {offsets = [0, 32], sizes = [2, 32], strides = [1, 1]} : vector<2x128xf32> to vector<2x32xf32>
    %cst_66 = arith.constant 5.000000e-01 : f32
    %180 = vector.broadcast %cst_66 : f32 to vector<2x32xf32>
    %181 = arith.mulf %180, %179 : vector<2x32xf32>
    %182 = math.tanh %181 : vector<2x32xf32>
    %cst_67 = arith.constant 1.000000e+00 : f32
    %183 = vector.broadcast %cst_67 : f32 to vector<2x32xf32>
    %184 = arith.addf %182, %183 : vector<2x32xf32>
    %cst_68 = arith.constant 5.000000e-01 : f32
    %185 = vector.broadcast %cst_68 : f32 to vector<2x32xf32>
    %186 = arith.mulf %185, %184 : vector<2x32xf32>
    %187 = vector.extract_strided_slice %170 {offsets = [0, 64], sizes = [2, 32], strides = [1, 1]} : vector<2x128xf32> to vector<2x32xf32>
    %188 = math.tanh %187 : vector<2x32xf32>
    %189 = vector.extract_strided_slice %170 {offsets = [0, 96], sizes = [2, 32], strides = [1, 1]} : vector<2x128xf32> to vector<2x32xf32>
    %cst_69 = arith.constant 5.000000e-01 : f32
    %190 = vector.broadcast %cst_69 : f32 to vector<2x32xf32>
    %191 = arith.mulf %190, %189 : vector<2x32xf32>
    %192 = math.tanh %191 : vector<2x32xf32>
    %cst_70 = arith.constant 1.000000e+00 : f32
    %193 = vector.broadcast %cst_70 : f32 to vector<2x32xf32>
    %194 = arith.addf %192, %193 : vector<2x32xf32>
    %cst_71 = arith.constant 5.000000e-01 : f32
    %195 = vector.broadcast %cst_71 : f32 to vector<2x32xf32>
    %196 = arith.mulf %195, %194 : vector<2x32xf32>
    %197 = arith.mulf %186, %161 : vector<2x32xf32>
    %198 = arith.mulf %178, %188 : vector<2x32xf32>
    %199 = arith.addf %197, %198 : vector<2x32xf32>
    %200 = math.tanh %199 : vector<2x32xf32>
    %201 = arith.mulf %196, %200 : vector<2x32xf32>
    %c0_72 = arith.constant 0 : index
    %c4 = arith.constant 4 : index
    %c0_73 = arith.constant 0 : index
    %202 = vector.load %arg5[%c0_72, %c4, %c0_73] : memref<2x8x32xf32, #tpu.memory_space<vmem>>, vector<2x1x32xf32>
    %203 = vector.shape_cast %202 : vector<2x1x32xf32> to vector<2x32xf32>
    %204 = vector.shape_cast %201 : vector<2x32xf32> to vector<2x1x32xf32>
    tpu.vector_store %arg5[%c0_72, %c4, %c0_73], %204 {strides = array<i32>} : memref<2x8x32xf32, #tpu.memory_space<vmem>>, vector<2x1x32xf32>,
    %205 = vector.extract_strided_slice %12 {offsets = [0, 5, 0], sizes = [2, 1, 128], strides = [1, 1, 1]} : vector<2x8x128xf32> to vector<2x1x128xf32>
    %206 = vector.shape_cast %205 : vector<2x1x128xf32> to vector<2x128xf32>
    %cst_74 = arith.constant dense<0.000000e+00> : vector<2x128xf32>
    %207 = tpu.matmul %201, %4, %cst_74 {dimension_numbers = #tpu.dot_dimension_numbers<[1], [0], [0], [1], [0, 0, 1, 1], [], []>} : vector<2x32xf32>, vector<32x128xf32>, vector<2x128xf32> -> vector<2x128xf32>
    %208 = arith.addf %206, %207 : vector<2x128xf32>
    %209 = vector.extract_strided_slice %208 {offsets = [0, 0], sizes = [2, 32], strides = [1, 1]} : vector<2x128xf32> to vector<2x32xf32>
    %cst_75 = arith.constant 5.000000e-01 : f32
    %210 = vector.broadcast %cst_75 : f32 to vector<2x32xf32>
    %211 = arith.mulf %210, %209 : vector<2x32xf32>
    %212 = math.tanh %211 : vector<2x32xf32>
    %cst_76 = arith.constant 1.000000e+00 : f32
    %213 = vector.broadcast %cst_76 : f32 to vector<2x32xf32>
    %214 = arith.addf %212, %213 : vector<2x32xf32>
    %cst_77 = arith.constant 5.000000e-01 : f32
    %215 = vector.broadcast %cst_77 : f32 to vector<2x32xf32>
    %216 = arith.mulf %215, %214 : vector<2x32xf32>
    %217 = vector.extract_strided_slice %208 {offsets = [0, 32], sizes = [2, 32], strides = [1, 1]} : vector<2x128xf32> to vector<2x32xf32>
    %cst_78 = arith.constant 5.000000e-01 : f32
    %218 = vector.broadcast %cst_78 : f32 to vector<2x32xf32>
    %219 = arith.mulf %218, %217 : vector<2x32xf32>
    %220 = math.tanh %219 : vector<2x32xf32>
    %cst_79 = arith.constant 1.000000e+00 : f32
    %221 = vector.broadcast %cst_79 : f32 to vector<2x32xf32>
    %222 = arith.addf %220, %221 : vector<2x32xf32>
    %cst_80 = arith.constant 5.000000e-01 : f32
    %223 = vector.broadcast %cst_80 : f32 to vector<2x32xf32>
    %224 = arith.mulf %223, %222 : vector<2x32xf32>
    %225 = vector.extract_strided_slice %208 {offsets = [0, 64], sizes = [2, 32], strides = [1, 1]} : vector<2x128xf32> to vector<2x32xf32>
    %226 = math.tanh %225 : vector<2x32xf32>
    %227 = vector.extract_strided_slice %208 {offsets = [0, 96], sizes = [2, 32], strides = [1, 1]} : vector<2x128xf32> to vector<2x32xf32>
    %cst_81 = arith.constant 5.000000e-01 : f32
    %228 = vector.broadcast %cst_81 : f32 to vector<2x32xf32>
    %229 = arith.mulf %228, %227 : vector<2x32xf32>
    %230 = math.tanh %229 : vector<2x32xf32>
    %cst_82 = arith.constant 1.000000e+00 : f32
    %231 = vector.broadcast %cst_82 : f32 to vector<2x32xf32>
    %232 = arith.addf %230, %231 : vector<2x32xf32>
    %cst_83 = arith.constant 5.000000e-01 : f32
    %233 = vector.broadcast %cst_83 : f32 to vector<2x32xf32>
    %234 = arith.mulf %233, %232 : vector<2x32xf32>
    %235 = arith.mulf %224, %199 : vector<2x32xf32>
    %236 = arith.mulf %216, %226 : vector<2x32xf32>
    %237 = arith.addf %235, %236 : vector<2x32xf32>
    %238 = math.tanh %237 : vector<2x32xf32>
    %239 = arith.mulf %234, %238 : vector<2x32xf32>
    %c0_84 = arith.constant 0 : index
    %c5 = arith.constant 5 : index
    %c0_85 = arith.constant 0 : index
    %240 = vector.load %arg5[%c0_84, %c5, %c0_85] : memref<2x8x32xf32, #tpu.memory_space<vmem>>, vector<2x1x32xf32>
    %241 = vector.shape_cast %240 : vector<2x1x32xf32> to vector<2x32xf32>
    %242 = vector.shape_cast %239 : vector<2x32xf32> to vector<2x1x32xf32>
    tpu.vector_store %arg5[%c0_84, %c5, %c0_85], %242 {strides = array<i32>} : memref<2x8x32xf32, #tpu.memory_space<vmem>>, vector<2x1x32xf32>,
    %243 = vector.extract_strided_slice %12 {offsets = [0, 6, 0], sizes = [2, 1, 128], strides = [1, 1, 1]} : vector<2x8x128xf32> to vector<2x1x128xf32>
    %244 = vector.shape_cast %243 : vector<2x1x128xf32> to vector<2x128xf32>
    %cst_86 = arith.constant dense<0.000000e+00> : vector<2x128xf32>
    %245 = tpu.matmul %239, %4, %cst_86 {dimension_numbers = #tpu.dot_dimension_numbers<[1], [0], [0], [1], [0, 0, 1, 1], [], []>} : vector<2x32xf32>, vector<32x128xf32>, vector<2x128xf32> -> vector<2x128xf32>
    %246 = arith.addf %244, %245 : vector<2x128xf32>
    %247 = vector.extract_strided_slice %246 {offsets = [0, 0], sizes = [2, 32], strides = [1, 1]} : vector<2x128xf32> to vector<2x32xf32>
    %cst_87 = arith.constant 5.000000e-01 : f32
    %248 = vector.broadcast %cst_87 : f32 to vector<2x32xf32>
    %249 = arith.mulf %248, %247 : vector<2x32xf32>
    %250 = math.tanh %249 : vector<2x32xf32>
    %cst_88 = arith.constant 1.000000e+00 : f32
    %251 = vector.broadcast %cst_88 : f32 to vector<2x32xf32>
    %252 = arith.addf %250, %251 : vector<2x32xf32>
    %cst_89 = arith.constant 5.000000e-01 : f32
    %253 = vector.broadcast %cst_89 : f32 to vector<2x32xf32>
    %254 = arith.mulf %253, %252 : vector<2x32xf32>
    %255 = vector.extract_strided_slice %246 {offsets = [0, 32], sizes = [2, 32], strides = [1, 1]} : vector<2x128xf32> to vector<2x32xf32>
    %cst_90 = arith.constant 5.000000e-01 : f32
    %256 = vector.broadcast %cst_90 : f32 to vector<2x32xf32>
    %257 = arith.mulf %256, %255 : vector<2x32xf32>
    %258 = math.tanh %257 : vector<2x32xf32>
    %cst_91 = arith.constant 1.000000e+00 : f32
    %259 = vector.broadcast %cst_91 : f32 to vector<2x32xf32>
    %260 = arith.addf %258, %259 : vector<2x32xf32>
    %cst_92 = arith.constant 5.000000e-01 : f32
    %261 = vector.broadcast %cst_92 : f32 to vector<2x32xf32>
    %262 = arith.mulf %261, %260 : vector<2x32xf32>
    %263 = vector.extract_strided_slice %246 {offsets = [0, 64], sizes = [2, 32], strides = [1, 1]} : vector<2x128xf32> to vector<2x32xf32>
    %264 = math.tanh %263 : vector<2x32xf32>
    %265 = vector.extract_strided_slice %246 {offsets = [0, 96], sizes = [2, 32], strides = [1, 1]} : vector<2x128xf32> to vector<2x32xf32>
    %cst_93 = arith.constant 5.000000e-01 : f32
    %266 = vector.broadcast %cst_93 : f32 to vector<2x32xf32>
    %267 = arith.mulf %266, %265 : vector<2x32xf32>
    %268 = math.tanh %267 : vector<2x32xf32>
    %cst_94 = arith.constant 1.000000e+00 : f32
    %269 = vector.broadcast %cst_94 : f32 to vector<2x32xf32>
    %270 = arith.addf %268, %269 : vector<2x32xf32>
    %cst_95 = arith.constant 5.000000e-01 : f32
    %271 = vector.broadcast %cst_95 : f32 to vector<2x32xf32>
    %272 = arith.mulf %271, %270 : vector<2x32xf32>
    %273 = arith.mulf %262, %237 : vector<2x32xf32>
    %274 = arith.mulf %254, %264 : vector<2x32xf32>
    %275 = arith.addf %273, %274 : vector<2x32xf32>
    %276 = math.tanh %275 : vector<2x32xf32>
    %277 = arith.mulf %272, %276 : vector<2x32xf32>
    %c0_96 = arith.constant 0 : index
    %c6 = arith.constant 6 : index
    %c0_97 = arith.constant 0 : index
    %278 = vector.load %arg5[%c0_96, %c6, %c0_97] : memref<2x8x32xf32, #tpu.memory_space<vmem>>, vector<2x1x32xf32>
    %279 = vector.shape_cast %278 : vector<2x1x32xf32> to vector<2x32xf32>
    %280 = vector.shape_cast %277 : vector<2x32xf32> to vector<2x1x32xf32>
    tpu.vector_store %arg5[%c0_96, %c6, %c0_97], %280 {strides = array<i32>} : memref<2x8x32xf32, #tpu.memory_space<vmem>>, vector<2x1x32xf32>,
    %281 = vector.extract_strided_slice %12 {offsets = [0, 7, 0], sizes = [2, 1, 128], strides = [1, 1, 1]} : vector<2x8x128xf32> to vector<2x1x128xf32>
    %282 = vector.shape_cast %281 : vector<2x1x128xf32> to vector<2x128xf32>
    %cst_98 = arith.constant dense<0.000000e+00> : vector<2x128xf32>
    %283 = tpu.matmul %277, %4, %cst_98 {dimension_numbers = #tpu.dot_dimension_numbers<[1], [0], [0], [1], [0, 0, 1, 1], [], []>} : vector<2x32xf32>, vector<32x128xf32>, vector<2x128xf32> -> vector<2x128xf32>
    %284 = arith.addf %282, %283 : vector<2x128xf32>
    %285 = vector.extract_strided_slice %284 {offsets = [0, 0], sizes = [2, 32], strides = [1, 1]} : vector<2x128xf32> to vector<2x32xf32>
    %cst_99 = arith.constant 5.000000e-01 : f32
    %286 = vector.broadcast %cst_99 : f32 to vector<2x32xf32>
    %287 = arith.mulf %286, %285 : vector<2x32xf32>
    %288 = math.tanh %287 : vector<2x32xf32>
    %cst_100 = arith.constant 1.000000e+00 : f32
    %289 = vector.broadcast %cst_100 : f32 to vector<2x32xf32>
    %290 = arith.addf %288, %289 : vector<2x32xf32>
    %cst_101 = arith.constant 5.000000e-01 : f32
    %291 = vector.broadcast %cst_101 : f32 to vector<2x32xf32>
    %292 = arith.mulf %291, %290 : vector<2x32xf32>
    %293 = vector.extract_strided_slice %284 {offsets = [0, 32], sizes = [2, 32], strides = [1, 1]} : vector<2x128xf32> to vector<2x32xf32>
    %cst_102 = arith.constant 5.000000e-01 : f32
    %294 = vector.broadcast %cst_102 : f32 to vector<2x32xf32>
    %295 = arith.mulf %294, %293 : vector<2x32xf32>
    %296 = math.tanh %295 : vector<2x32xf32>
    %cst_103 = arith.constant 1.000000e+00 : f32
    %297 = vector.broadcast %cst_103 : f32 to vector<2x32xf32>
    %298 = arith.addf %296, %297 : vector<2x32xf32>
    %cst_104 = arith.constant 5.000000e-01 : f32
    %299 = vector.broadcast %cst_104 : f32 to vector<2x32xf32>
    %300 = arith.mulf %299, %298 : vector<2x32xf32>
    %301 = vector.extract_strided_slice %284 {offsets = [0, 64], sizes = [2, 32], strides = [1, 1]} : vector<2x128xf32> to vector<2x32xf32>
    %302 = math.tanh %301 : vector<2x32xf32>
    %303 = vector.extract_strided_slice %284 {offsets = [0, 96], sizes = [2, 32], strides = [1, 1]} : vector<2x128xf32> to vector<2x32xf32>
    %cst_105 = arith.constant 5.000000e-01 : f32
    %304 = vector.broadcast %cst_105 : f32 to vector<2x32xf32>
    %305 = arith.mulf %304, %303 : vector<2x32xf32>
    %306 = math.tanh %305 : vector<2x32xf32>
    %cst_106 = arith.constant 1.000000e+00 : f32
    %307 = vector.broadcast %cst_106 : f32 to vector<2x32xf32>
    %308 = arith.addf %306, %307 : vector<2x32xf32>
    %cst_107 = arith.constant 5.000000e-01 : f32
    %309 = vector.broadcast %cst_107 : f32 to vector<2x32xf32>
    %310 = arith.mulf %309, %308 : vector<2x32xf32>
    %311 = arith.mulf %300, %275 : vector<2x32xf32>
    %312 = arith.mulf %292, %302 : vector<2x32xf32>
    %313 = arith.addf %311, %312 : vector<2x32xf32>
    %314 = math.tanh %313 : vector<2x32xf32>
    %315 = arith.mulf %310, %314 : vector<2x32xf32>
    %c0_108 = arith.constant 0 : index
    %c7 = arith.constant 7 : index
    %c0_109 = arith.constant 0 : index
    %316 = vector.load %arg5[%c0_108, %c7, %c0_109] : memref<2x8x32xf32, #tpu.memory_space<vmem>>, vector<2x1x32xf32>
    %317 = vector.shape_cast %316 : vector<2x1x32xf32> to vector<2x32xf32>
    %318 = vector.shape_cast %315 : vector<2x32xf32> to vector<2x1x32xf32>
    tpu.vector_store %arg5[%c0_108, %c7, %c0_109], %318 {strides = array<i32>} : memref<2x8x32xf32, #tpu.memory_space<vmem>>, vector<2x1x32xf32>,
    %c0_110 = arith.constant 0 : index
    %c0_111 = arith.constant 0 : index
    %319 = vector.load %arg6[%c0_110, %c0_111] : memref<2x32xf32, #tpu.memory_space<vmem>>, vector<2x32xf32>
    tpu.vector_store %arg6[%c0_110, %c0_111], %315 {strides = array<i32>} : memref<2x32xf32, #tpu.memory_space<vmem>>, vector<2x32xf32>,
    %c0_112 = arith.constant 0 : index
    %c0_113 = arith.constant 0 : index
    %320 = vector.load %arg7[%c0_112, %c0_113] : memref<2x32xf32, #tpu.memory_space<vmem>>, vector<2x32xf32>
    tpu.vector_store %arg7[%c0_112, %c0_113], %313 {strides = array<i32>} : memref<2x32xf32, #tpu.memory_space<vmem>>, vector<2x32xf32>,
    return
  }
  func.func @transform_0(%arg0: i32) -> (i32, i32, i32) {
    %c0_i32 = arith.constant 0 : i32
    %c0_i32_0 = arith.constant 0 : i32
    %c0_i32_1 = arith.constant 0 : i32
    return %c0_i32, %arg0, %c0_i32_0 : i32, i32, i32
  }
  func.func @transform_1(%arg0: i32) -> (i32, i32) {
    %c0_i32 = arith.constant 0 : i32
    %c0_i32_0 = arith.constant 0 : i32
    %c0_i32_1 = arith.constant 0 : i32
    return %c0_i32, %c0_i32_0 : i32, i32
  }
  func.func @transform_2(%arg0: i32) -> (i32, i32) {
    %c0_i32 = arith.constant 0 : i32
    %c0_i32_0 = arith.constant 0 : i32
    %c0_i32_1 = arith.constant 0 : i32
    return %c0_i32, %c0_i32_0 : i32, i32
  }
  func.func @transform_3(%arg0: i32) -> (i32, i32) {
    %c0_i32 = arith.constant 0 : i32
    %c0_i32_0 = arith.constant 0 : i32
    %c0_i32_1 = arith.constant 0 : i32
    return %c0_i32, %c0_i32_0 : i32, i32
  }
  func.func @transform_4(%arg0: i32) -> (i32, i32, i32) {
    %c0_i32 = arith.constant 0 : i32
    %c0_i32_0 = arith.constant 0 : i32
    %c0_i32_1 = arith.constant 0 : i32
    return %c0_i32, %arg0, %c0_i32_0 : i32, i32, i32
  }
}

</mosaic_0001>

<bundles_post_ra>
// kernel: speaker_encoder_forward.4
= control target key start
LH: loop header
LB: loop body
LE: loop exit
PB: predicated region body
PF: predicated region fallthrough
CT: control target
= control target key end

     0   :  { %10 = vsyncpa [#allocation3], 0  ;;  %s1479_s18 = smov [#allocation2]   ;;  %s2000_s0 = inlined_call_operand.vmem [shape: f32[16,32], index: 0, kind: input, shape index: {}]   ;;  %s2001_s1 = inlined_call_operand.hbm [shape: f32[16,8,32], index: 1, kind: input, shape index: {}]   ;;  %s2002_s2 = inlined_call_operand.vmem [shape: f32[32,32], index: 2, kind: input, shape index: {}]   ;;  %s2003_s3 = inlined_call_operand.vmem [shape: f32[32,32], index: 3, kind: input, shape index: {}]   ;;  %s2004_s4 = inlined_call_operand.vmem [shape: f32[32,32], index: 4, kind: input, shape index: {}]   ;;  %s2005_s5 = inlined_call_operand.vmem [shape: f32[16,32], index: 5, kind: output, shape index: {}]  }
   0x1   :  { %s18_s19 = sshll.u32 %s1479_s18, 4  ;;  %s1455_s22 = scalar_lea.hbm %s2001_s1, 2048  ;;  %s19_s19 = int_to_ptr.vmem [resolvable:$true] %s18_s19 }
   0x2   :  { %p1456_p0 = scmp.ne.s32.totalorder %s2001_s1, %s1455_s22  ;;  %p1459_p1 = scmp.lt.u32.totalorder %s1455_s22, %s2001_s1 }
   0x4   :  { %p1461_p2 = pnand %p1459_p1, %p1456_p0 }
   0x6   :  { %1464 = shalt.err (!%p1461_p2)
}
   0x7   :  { %s1465_s27 = scalar_lea.vmem %s19_s19, 2048  ;;  %p1470_p4 = scmp.lt.s32.totalorder %s19_s19, %s19_s19 }
   0x8   :  { %p1466_p3 = scmp.ne.s32.totalorder %s19_s19, %s1465_s27  ;;  %p1471_p5 = scmp.lt.s32.totalorder %s1465_s27, %s1465_s27 }
   0xa   :  { %p1472_p6 = por %p1471_p5, %p1470_p4 }
   0xc   :  { %p1473_p7 = pnand %p1472_p6, %p1466_p3 }
   0xe   :  { %1476 = shalt.err (!%p1473_p7)
}
   0xf   :  { %s1480_s28 = smov 128   ;;  %s1481_s29 = smov 8  }
  0x10   :  { %24 = dma.hbm_to_vmem [thread:$0]  %s2001_s1, 2048, %s19_s19, [#allocation3], %s1480_s28, %s1480_s28, %s1481_s29  }
  0x11   :  { %1477 = dma.done.wait [#allocation3], 2048  }
  0x12   :  { %1478 = vsyncadd [#allocation3], 4294965248  ;;  %vm56_vm0 = vcmask 261120   ;;  %v34_v0 = vld [vmem:[%s2002_s2] sm:$0xff]  ;;  %v35_v1 = vld [vmem:[%s2002_s2 + $0x8] sm:$0xff]  ;;  %v144_v10 = vlaneseq  ;;  %vm464_vm1 = vcmask 1041409  }
  0x13   :  { %v36_v2 = vld [vmem:[%s2002_s2 + $0x10] sm:$0xff]  ;;  %v1354_v3 = vpack.c.bf16 %v35_v1, %v34_v0  ;;  %v37_v4 = vld [vmem:[%s2002_s2 + $0x18] sm:$0xff]  ;;  %v38_v5 = vld [vmem:[%s2000_s0] sm:$0xff]  ;;  %v1482_v8 = vmov 1966171168   ;;  %vm468_vm2 = vcmask 1043459  }
  0x14   :  { %v1358_v6 = vpack.c.bf16 %v37_v4, %v36_v2  ;;  %1329 = vmatprep.mubr.msk.f32.mxu0 %vm56_vm0, %v38_v5  ;;  %1340 = vmatprep.mubr.msk.f32.mxu1 %vm56_vm0, %v38_v5  ;;  %v1546_v7 = vld [vmem:[%s2000_s0 + $0x8] sm:$0xff]  ;;  %v142_v9 = vunpack.c.l.s4 %v1482_v8  ;;  %v1551_v12 = vshrl.u32 %v144_v10, 7  ;;  %v1567_v31 = vld [vmem:[#allocation2 + $0x40] sm:$0xff]  ;;  %v1574_v36 = vld [vmem:[#allocation2 + $0x10] sm:$0xff]  ;;  %vm466_vm3 = vcmask 1042434  }
  0x15   :  { %1355 = vmatprep.subr.bf16.mxu0 %v1354_v3  ;;  %v1569_v32 = vld [vmem:[#allocation2] sm:$0xff]  ;;  %v1578_v39 = vld [vmem:[#allocation2 + $0x48] sm:$0xff]  ;;  %v1591_v51 = vld [vmem:[#allocation2 + $0x50] sm:$0xff]  ;;  %vm470_vm4 = vcmask 1044484   ;;  %vm472_vm5 = vcmask 1045509   ;;  %vm474_vm6 = vcmask 1046534  }
  0x16   :  { %1357 = vmatpush3.bf16.msra.mxu0 %v1354_v3  ;;  %v143_v11 = vunpack.c.0.s8 %v142_v9  ;;  %v1560_v22 = vsub.s32 0, %v1551_v12  ;;  %v1593_v52 = vld [vmem:[#allocation2 + $0x20] sm:$0xff]  ;;  %v1602_v59 = vld [vmem:[#allocation2 + $0x18] sm:$0xff]  ;;  %v1613_v5 = vld [vmem:[#allocation2 + $0x8] sm:$0xff]  ;;  %vm476_vm7 = vcmask 1047559   ;;  %vm487_vm8 = vcmask 64512  }
  0x17   :  { %1359 = vmatprep.subr.bf16.mxu0 %v1358_v6  ;;  %v1604_v60 = vld [vmem:[#allocation2 + $0x60] sm:$0xff]  ;;  %v1615_v9 = vld [vmem:[#allocation2 + $0x28] sm:$0xff] }
  0x18   :  { %v1554_v13 = vsub.s32 %v143_v11, %v1551_v12 }
  0x1a   :  { %1361 = vmatpush3.bf16.msra.mxu0 %v1358_v6 }
  0x1d   :  { %1330 = vmatmul.mubr.msk.f32.vlgmr.msra.gmra.mrb[0].mxu0 %vm56_vm0, %v1546_v7 }
  0xf0   :  { %v1331_v14 = vpop.f32.mrb[0].mxu0 }
  0xf1   :  { %v189_v15 = vcombine.high %v1331_v14, %v1331_v14  ;;  %v196_v16 = vrot.slane %v1331_v14, %v1554_v13  ;;  %v129_v17 = vpop.f32.mrb[1].mxu0 }
  0xf2   :  { %v140_v18 = vcombine.high %v129_v17, %v129_v17  ;;  %v147_v19 = vrot.slane %v129_v17, %v1554_v13 }
  0xf3   :  { %v204_v20 = vcombine.high %v196_v16, %v196_v16  ;;  %v212_v21 = vrot.slane %v196_v16, %v1554_v13  ;;  %v203_v26 = vrot.slane %v189_v15, %v1554_v13 }
  0xf4   :  { %v154_v23 = vrot.slane %v140_v18, %v1554_v13  ;;  %v155_v24 = vcombine.high %v147_v19, %v147_v19  ;;  %v163_v25 = vrot.slane %v147_v19, %v1554_v13 }
  0xf5   :  { %v226_v27 = vrot.slane %v204_v20, %v1554_v13  ;;  %v234_v28 = vcombine.high %v212_v21, %v212_v21  ;;  %v273_v34 = vrot.slane %v212_v21, %v1560_v22  ;;  %v1581_v40 = vrot.slane %v203_v26, %v1554_v13  ;;  %v1624_v21 = vld [vmem:[#allocation2 + $0x30] sm:$0xff] }
  0xf6   :  { %v177_v29 = vrot.slane %v155_v24, %v1554_v13  ;;  %v185_v30 = vcombine.high %v163_v25, %v163_v25  ;;  %v170_v33 = vrot.slane %v154_v23, %v1554_v13  ;;  %v241_v35 = vrot.slane %v163_v25, %v1560_v22 }
  0xf7   :  { %v277_v37 = vrot.slane %v226_v27, %v1560_v22  ;;  %v326_v41 = vmul.f32 %v273_v34, %v1567_v31  ;;  %v156_v43 = vcombine.high %v154_v23, %v154_v23  ;;  %v281_v45 = vrot.slane %v234_v28, %v1560_v22  ;;  %v1626_v23 = vld [vmem:[#allocation2 + $0x58] sm:$0xff] }
  0xf8   :  { %v249_v38 = vrot.slane %v185_v30, %v1560_v22  ;;  %v318_v42 = vmul.f32 %v241_v35, %v1569_v32  ;;  %v187_v46 = vcombine.high %v177_v29, %v177_v29  ;;  %v257_v50 = vrot.slane %v170_v33, %v1560_v22  ;;  %v1638_v34 = vld [vmem:[#allocation2 + $0x38] sm:$0xff] }
  0xf9   :  { %v358_v47 = vsel %vm56_vm0, %v326_v41, 0.0  ;;  %v327_v49 = vmul.f32 %v277_v37, %v1578_v39  ;;  %v328_v54 = vmul.f32 %v281_v45, %v1591_v51  ;;  %v289_v56 = vrot.slane %v1581_v40, %v1560_v22 }
  0xfa   :  { %v320_v44 = vmul.f32 %v249_v38, %v1574_v36  ;;  %v334_v48 = vsel %vm56_vm0, %v318_v42, 0.0  ;;  %359 = vadd.xlane.f32.xlu1 %v358_v47  ;;  %v253_v55 = vrot.slane %v187_v46, %v1560_v22  ;;  %v322_v58 = vmul.f32 %v257_v50, %v1593_v52 }
  0xfb   :  { %335 = vadd.xlane.f32.xlu0 %v334_v48  ;;  %v361_v57 = vsel %vm56_vm0, %v327_v49, 0.0  ;;  %v184_v61 = vrot.slane %v156_v43, %v1554_v13  ;;  %v205_v62 = vcombine.high %v203_v26, %v203_v26  ;;  %v364_v63 = vsel %vm56_vm0, %v328_v54, 0.0  ;;  %v1646_v43 = vld [vmem:[#allocation2 + $0x78] sm:$0xff] }
  0xfc   :  { %v340_v53 = vsel %vm56_vm0, %v320_v44, 0.0  ;;  %v321_v0 = vmul.f32 %v253_v55, %v1602_v59  ;;  %v330_v1 = vmul.f32 %v289_v56, %v1604_v60  ;;  %v245_v2 = vrot.slane %v177_v29, %v1560_v22  ;;  %2008 = vst [vmem:[#allocation5_spill] sm:$0xff] %v1646_v43  ;;  %v1648_v44 = vld [vmem:[#allocation2 + $0x70] sm:$0xff] }
  0xfd   :  { %v346_v3 = vsel %vm56_vm0, %v322_v58, 0.0  ;;  %v261_v4 = vrot.slane %v184_v61, %v1560_v22  ;;  %v186_v6 = vcombine.high %v170_v33, %v170_v33  ;;  %v236_v8 = vcombine.high %v226_v27, %v226_v27  ;;  %v1636_v33 = vld [vmem:[#allocation2 + $0x68] sm:$0xff]  ;;  %2009 = vst [vmem:[#allocation6_spill] sm:$0xff] %v1648_v44 }
  0xfe   :  { %341 = vadd.xlane.f32.xlu1 %v340_v53  ;;  %v343_v11 = vsel %vm56_vm0, %v321_v0, 0.0  ;;  %v370_v14 = vsel %vm56_vm0, %v330_v1, 0.0  ;;  %v319_v15 = vmul.f32 %v245_v2, %v1613_v5  ;;  %v233_v16 = vrot.slane %v205_v62, %v1554_v13 }
  0xff   :  { %362 = vadd.xlane.f32.xlu0 %v361_v57  ;;  %v323_v17 = vmul.f32 %v261_v4, %v1615_v9  ;;  %v265_v18 = vrot.slane %v186_v6, %v1560_v22  ;;  %v285_v19 = vrot.slane %v236_v8, %v1560_v22  ;;  %v188_v20 = vcombine.high %v184_v61, %v184_v61 }
 0x100   :  { %v337_v24 = vsel %vm56_vm0, %v319_v15, 0.0  ;;  %v293_v25 = vrot.slane %v233_v16, %v1560_v22  ;;  %v237_v26 = vcombine.high %v233_v16, %v233_v16  ;;  %v235_v13 = vcombine.high %v1581_v40, %v1581_v40 }
 0x101   :  { %v349_v27 = vsel %vm56_vm0, %v323_v17, 0.0  ;;  %v324_v28 = vmul.f32 %v265_v18, %v1624_v21  ;;  %v329_v29 = vmul.f32 %v285_v19, %v1626_v23  ;;  %v269_v30 = vrot.slane %v188_v20, %v1560_v22 }
 0x102   :  { %347 = vadd.xlane.f32.xlu1 %v346_v3  ;;  %v331_v35 = vmul.f32 %v293_v25, %v1636_v33  ;;  %v301_v37 = vrot.slane %v237_v26, %v1560_v22  ;;  %v297_v42 = vrot.slane %v235_v13, %v1560_v22  ;;  %v399_v61 = vand.u32 127, %v144_v10 }
 0x103   :  { %365 = vadd.xlane.f32.xlu0 %v364_v63  ;;  %v352_v38 = vsel %vm56_vm0, %v324_v28, 0.0  ;;  %v367_v40 = vsel %vm56_vm0, %v329_v29, 0.0  ;;  %v325_v41 = vmul.f32 %v269_v30, %v1638_v34 }
 0x104   :  { %v373_v46 = vsel %vm56_vm0, %v331_v35, 0.0  ;;  %v333_v47 = vmul.f32 %v301_v37, %v1646_v43  ;;  %v332_v48 = vmul.f32 %v297_v42, %v1648_v44  ;;  %v1674_v0 = vsub.s32 %v399_v61, %v1551_v12 }
 0x105   :  { %v355_v45 = vsel %vm56_vm0, %v325_v41, 0.0 }
 0x106   :  { %344 = vadd.xlane.f32.xlu1 %v343_v11  ;;  %v379_v49 = vsel %vm56_vm0, %v333_v47, 0.0  ;;  %v376_v50 = vsel %vm56_vm0, %v332_v48, 0.0 }
 0x107   :  { %371 = vadd.xlane.f32.xlu0 %v370_v14 }
 0x10a   :  { %350 = vadd.xlane.f32.xlu1 %v349_v27 }
 0x10b   :  { %338 = vadd.xlane.f32.xlu0 %v337_v24 }
 0x10e   :  { %353 = vadd.xlane.f32.xlu1 %v352_v38 }
 0x10f   :  { %368 = vadd.xlane.f32.xlu0 %v367_v40 }
 0x112   :  { %356 = vadd.xlane.f32.xlu1 %v355_v45 }
 0x113   :  { %374 = vadd.xlane.f32.xlu0 %v373_v46 }
 0x116   :  { %380 = vadd.xlane.f32.xlu1 %v379_v49 }
 0x117   :  { %377 = vadd.xlane.f32.xlu0 %v376_v50 }
 0x187   :  { %v1656_v53 = vpop.xlane.xlu1 %359 }
 0x188   :  { %v1658_v54 = vpop.xlane.xlu0 %335  ;;  %v435_v24 = vrot.slane %v1656_v53, %v1674_v0 }
 0x189   :  { %v403_v3 = vrot.slane %v1658_v54, %v1674_v0 }
 0x18b   :  { %v1660_v55 = vpop.xlane.xlu1 %341 }
 0x18c   :  { %v1662_v56 = vpop.xlane.xlu0 %362  ;;  %v411_v6 = vrot.slane %v1660_v55, %v1674_v0 }
 0x18d   :  { %v439_v11 = vrot.slane %v1662_v56, %v1674_v0 }
 0x18f   :  { %v1664_v57 = vpop.xlane.xlu1 %347  ;;  %v478_v28 = vsel %vm464_vm1, %v439_v11, %v435_v24  ;;  %v1729_v11 = vsub.s32 5, %v1551_v12 }
 0x190   :  { %v1666_v58 = vpop.xlane.xlu0 %365  ;;  %v419_v14 = vrot.slane %v1664_v57, %v1674_v0 }
 0x191   :  { %v443_v18 = vrot.slane %v1666_v58, %v1674_v0 }
 0x193   :  { %v1669_v62 = vpop.xlane.xlu1 %344  ;;  %v479_v37 = vsel %vm466_vm3, %v443_v18, %v478_v28 }
 0x194   :  { %v1671_v63 = vpop.xlane.xlu0 %371  ;;  %v415_v10 = vrot.slane %v1669_v62, %v1674_v0 }
 0x195   :  { %v451_v42 = vrot.slane %v1671_v63, %v1674_v0 }
 0x197   :  { %v351_v1 = vpop.xlane.xlu1 %350 }
 0x198   :  { %v1676_v2 = vpop.xlane.xlu0 %338  ;;  %v423_v19 = vrot.slane %v351_v1, %v1674_v0 }
 0x199   :  { %v407_v4 = vrot.slane %v1676_v2, %v1674_v0 }
 0x19b   :  { %v465_v8 = vsel %vm464_vm1, %v407_v4, %v403_v3  ;;  %v354_v16 = vpop.xlane.xlu1 %353 }
 0x19c   :  { %v467_v15 = vsel %vm466_vm3, %v411_v6, %v465_v8  ;;  %v1692_v17 = vpop.xlane.xlu0 %368  ;;  %v427_v25 = vrot.slane %v354_v16, %v1674_v0  ;;  %v1483_v8 = vmov 0  }
 0x19d   :  { %v469_v20 = vsel %vm468_vm2, %v415_v10, %v467_v15  ;;  %v447_v26 = vrot.slane %v1692_v17, %v1674_v0  ;;  %1386 = vset.pattern.permute.xlu0 %v1483_v8  ;;  %1385 = vset.pattern.permute.xlu1 %v1483_v8 }
 0x19e   :  { %v471_v13 = vsel %vm470_vm4, %v419_v14, %v469_v20  ;;  %v1732_v14 = vsub.s32 6, %v1551_v12  ;;  %v1741_v20 = vsub.s32 7, %v1551_v12 }
 0x19f   :  { %v473_v27 = vsel %vm472_vm5, %v423_v19, %v471_v13  ;;  %v357_v29 = vpop.xlane.xlu1 %356  ;;  %v480_v40 = vsel %vm468_vm2, %v447_v26, %v479_v37  ;;  %v1747_v13 = vsub.s32 1, %v1551_v12 }
 0x1a0   :  { %v1706_v30 = vpop.xlane.xlu0 %374  ;;  %v475_v35 = vsel %vm474_vm6, %v427_v25, %v473_v27  ;;  %v431_v38 = vrot.slane %v357_v29, %v1674_v0  ;;  %v481_v50 = vsel %vm470_vm4, %v451_v42, %v480_v40 }
 0x1a1   :  { %v455_v41 = vrot.slane %v1706_v30, %v1674_v0 }
 0x1a2   :  { %v477_v45 = vsel %vm476_vm7, %v431_v38, %v475_v35 }
 0x1a3   :  { %v381_v46 = vpop.xlane.xlu1 %380  ;;  %v488_v48 = vsel %vm487_vm8, %v477_v45, -inf  ;;  %v482_v3 = vsel %vm472_vm5, %v455_v41, %v481_v50 }
 0x1a4   :  { %v1717_v47 = vpop.xlane.xlu0 %377  ;;  %489 = vmax.xlane.f32.xlu0 %v488_v48  ;;  %v463_v61 = vrot.slane %v381_v46, %v1674_v0 }
 0x1a5   :  { %v459_v49 = vrot.slane %v1717_v47, %v1674_v0 }
 0x1a7   :  { %v483_v4 = vsel %vm474_vm6, %v459_v49, %v482_v3 }
 0x1a8   :  { %v484_v6 = vsel %vm476_vm7, %v463_v61, %v483_v4 }
 0x1a9   :  { %v491_v10 = vsel %vm487_vm8, %v484_v6, -inf }
 0x1aa   :  { %492 = vmax.xlane.f32.xlu1 %v491_v10  ;;  %v1775_v10 = vsub.s32 4, %v1551_v12 }
 0x231   :  { %v1734_v15 = vpop.xlane.xlu0 %489 }
 0x232   :  { %v499_v18 = vrot.slane %v1734_v15, %v1560_v22  ;;  %v519_v19 = vrot.slane %v1734_v15, %v1729_v11  ;;  %v523_v25 = vrot.slane %v1734_v15, %v1732_v14  ;;  %v527_v37 = vrot.slane %v1734_v15, %v1741_v20 }
 0x234   :  { %v576_v24 = vsub.f32 %v1658_v54, %v499_v18  ;;  %v581_v26 = vsub.f32 %v351_v1, %v519_v19  ;;  %v582_v38 = vsub.f32 %v354_v16, %v523_v25  ;;  %v1758_v1 = vsub.s32 2, %v1551_v12 }
 0x235   :  { %v583_v42 = vsub.f32 %v357_v29, %v527_v37  ;;  %v1767_v16 = vsub.s32 3, %v1551_v12 }
 0x236   :  { %v592_v27 = vmul.f32 1.442695, %v576_v24  ;;  %v602_v40 = vmul.f32 1.442695, %v581_v26  ;;  %v604_v49 = vmul.f32 1.442695, %v582_v38  ;;  %v507_v38 = vrot.slane %v1734_v15, %v1758_v1 }
 0x237   :  { %v1749_v28 = vpop.xlane.xlu1 %492  ;;  %v606_v4 = vmul.f32 1.442695, %v583_v42 }
 0x238   :  { %v531_v35 = vrot.slane %v1749_v28, %v1560_v22  ;;  %1387 = vpow2.f32 %v592_v27  ;;  %v535_v54 = vrot.slane %v1749_v28, %v1747_v13  ;;  %v539_v45 = vrot.slane %v1749_v28, %v1758_v1 }
 0x239   :  { %1389 = vpow2.f32 %v602_v40  ;;  %v559_v50 = vrot.slane %v1749_v28, %v1741_v20  ;;  %v543_v3 = vrot.slane %v1749_v28, %v1767_v16  ;;  %v547_v8 = vrot.slane %v1749_v28, %v1775_v10 }
 0x23a   :  { %v584_v41 = vsub.f32 %v1656_v53, %v531_v35  ;;  %v585_v48 = vsub.f32 %v1662_v56, %v535_v54  ;;  %v586_v53 = vsub.f32 %v1666_v58, %v539_v45  ;;  %v511_v45 = vrot.slane %v1734_v15, %v1767_v16 }
 0x23b   :  { %v591_v6 = vsub.f32 %v381_v46, %v559_v50  ;;  %v587_v18 = vsub.f32 %v1692_v17, %v543_v3  ;;  %v551_v46 = vrot.slane %v1749_v28, %v1729_v11  ;;  %v588_v25 = vsub.f32 %v1671_v63, %v547_v8 }
 0x23c   :  { %v608_v61 = vmul.f32 1.442695, %v584_v41  ;;  %v610_v29 = vmul.f32 1.442695, %v585_v48  ;;  %v612_v19 = vmul.f32 1.442695, %v586_v53  ;;  %v503_v17 = vrot.slane %v1734_v15, %v1747_v13 }
 0x23d   :  { %v622_v58 = vmul.f32 1.442695, %v591_v6  ;;  %v614_v12 = vmul.f32 1.442695, %v587_v18  ;;  %v589_v35 = vsub.f32 %v1706_v30, %v551_v46  ;;  %v616_v37 = vmul.f32 1.442695, %v588_v25 }
 0x23e   :  { %1391 = vpow2.f32 %v608_v61  ;;  %v577_v40 = vsub.f32 %v1676_v2, %v503_v17  ;;  %v578_v48 = vsub.f32 %v1660_v55, %v507_v38  ;;  %v515_v50 = vrot.slane %v1734_v15, %v1775_v10 }
 0x23f   :  { %1393 = vpow2.f32 %v604_v49  ;;  %v618_v41 = vmul.f32 1.442695, %v589_v35  ;;  %v579_v61 = vsub.f32 %v1669_v62, %v511_v45 }
 0x240   :  { %1395 = vpow2.f32 %v610_v29  ;;  %v594_v49 = vmul.f32 1.442695, %v577_v40  ;;  %v596_v3 = vmul.f32 1.442695, %v578_v48  ;;  %v580_v55 = vsub.f32 %v1664_v57, %v515_v50 }
 0x241   :  { %1397 = vpow2.f32 %v606_v4  ;;  %v598_v29 = vmul.f32 1.442695, %v579_v61  ;;  %v555_v4 = vrot.slane %v1749_v28, %v1732_v14 }
 0x242   :  { %v1772_v56 = vpop.eup %1387  ;;  %1399 = vpow2.f32 %v612_v19  ;;  %v600_v15 = vmul.f32 1.442695, %v580_v55 }
 0x243   :  { %641 = vperm.xlu0 %1386, %v1772_v56   ;;  %v1781_v24 = vpop.eup %1389  ;;  %1401 = vpow2.f32 %v622_v58  ;;  %v590_v62 = vsub.f32 %v1717_v47, %v555_v4 }
 0x244   :  { %1403 = vpow2.f32 %v614_v12 }
 0x245   :  { %1405 = vpow2.f32 %v616_v37  ;;  %v620_v18 = vmul.f32 1.442695, %v590_v62 }
 0x246   :  { %1407 = vpow2.f32 %v618_v41 }
 0x247   :  { %656 = vperm.xlu0 %1386, %v1781_v24   ;;  %1409 = vpow2.f32 %v594_v49 }
 0x248   :  { %v1787_v26 = vpop.eup %1391  ;;  %1411 = vpow2.f32 %v596_v3 }
 0x249   :  { %v1789_v27 = vpop.eup %1393  ;;  %665 = vperm.xlu1 %1385, %v1787_v26   ;;  %1413 = vpow2.f32 %v598_v29 }
 0x24a   :  { %v1796_v63 = vpop.eup %1395  ;;  %1415 = vpow2.f32 %v600_v15 }
 0x24b   :  { %659 = vperm.xlu0 %1386, %v1789_v27   ;;  %v1798_v54 = vpop.eup %1397  ;;  %1417 = vpow2.f32 %v620_v18 }
 0x24c   :  { %v1805_v30 = vpop.eup %1399 }
 0x24d   :  { %668 = vperm.xlu1 %1385, %v1796_v63   ;;  %v1807_v42 = vpop.eup %1401 }
 0x24e   :  { %v1814_v2 = vpop.eup %1403 }
 0x24f   :  { %662 = vperm.xlu0 %1386, %v1798_v54   ;;  %v1820_v53 = vpop.eup %1405 }
 0x250   :  { %v1826_v6 = vpop.eup %1407 }
 0x251   :  { %671 = vperm.xlu1 %1385, %v1805_v30   ;;  %v1830_v8 = vpop.eup %1409 }
 0x252   :  { %v1833_v57 = vpop.eup %1411 }
 0x253   :  { %686 = vperm.xlu0 %1386, %v1807_v42   ;;  %v1836_v28 = vpop.eup %1413 }
 0x254   :  { %v1839_v19 = vpop.eup %1415 }
 0x255   :  { %674 = vperm.xlu1 %1385, %v1814_v2   ;;  %v1842_v47 = vpop.eup %1417 }
 0x259   :  { %677 = vperm.xlu1 %1385, %v1820_v53  }
 0x25d   :  { %680 = vperm.xlu1 %1385, %v1826_v6  }
 0x261   :  { %644 = vperm.xlu1 %1385, %v1830_v8  }
 0x265   :  { %647 = vperm.xlu1 %1385, %v1833_v57  }
 0x269   :  { %650 = vperm.xlu1 %1385, %v1836_v28  }
 0x26d   :  { %653 = vperm.xlu1 %1385, %v1839_v19  }
 0x271   :  { %683 = vperm.xlu1 %1385, %v1842_v47  }
 0x2c2   :  { %v642_v17 = vpop.permute.xlu0 %641 }
 0x2c3   :  { %v691_v3 = vrot.slane %v642_v17, %v1674_v0 }
 0x2c6   :  { %v657_v38 = vpop.permute.xlu0 %656 }
 0x2c7   :  { %v711_v17 = vrot.slane %v657_v38, %v1674_v0 }
 0x2c8   :  { %v666_v58 = vpop.permute.xlu1 %665 }
 0x2c9   :  { %v723_v15 = vrot.slane %v666_v58, %v1674_v0 }
 0x2ca   :  { %v660_v41 = vpop.permute.xlu0 %659 }
 0x2cb   :  { %v715_v58 = vrot.slane %v660_v41, %v1674_v0 }
 0x2cc   :  { %v669_v46 = vpop.permute.xlu1 %668 }
 0x2cd   :  { %v727_v55 = vrot.slane %v669_v46, %v1674_v0 }
 0x2ce   :  { %v663_v50 = vpop.permute.xlu0 %662 }
 0x2cf   :  { %v759_v46 = vsel %vm464_vm1, %v727_v55, %v723_v15 }
 0x2d0   :  { %v672_v25 = vpop.permute.xlu1 %671 }
 0x2d1   :  { %v731_v4 = vrot.slane %v672_v25, %v1674_v0 }
 0x2d4   :  { %v675_v12 = vpop.permute.xlu1 %674 }
 0x2d5   :  { %v735_v62 = vrot.slane %v675_v12, %v1674_v0  ;;  %v760_v12 = vsel %vm466_vm3, %v731_v4, %v759_v46 }
 0x2d8   :  { %v678_v35 = vpop.permute.xlu1 %677 }
 0x2dc   :  { %v681_v37 = vpop.permute.xlu1 %680 }
 0x2e0   :  { %v645_v40 = vpop.permute.xlu1 %644 }
 0x2e1   :  { %v695_v48 = vrot.slane %v645_v40, %v1674_v0  ;;  %v739_v40 = vrot.slane %v678_v35, %v1674_v0  ;;  %v719_v35 = vrot.slane %v663_v50, %v1674_v0 }
 0x2e3   :  { %v752_v18 = vsel %vm464_vm1, %v695_v48, %v691_v3  ;;  %v687_v48 = vpop.permute.xlu0 %686 }
 0x2e4   :  { %v648_v45 = vpop.permute.xlu1 %647  ;;  %v751_v41 = vrot.slane %v687_v48, %v1674_v0 }
 0x2e5   :  { %v699_v61 = vrot.slane %v648_v45, %v1674_v0 }
 0x2e7   :  { %v753_v43 = vsel %vm466_vm3, %v699_v61, %v752_v18  ;;  %v761_v61 = vsel %vm468_vm2, %v735_v62, %v760_v12 }
 0x2e8   :  { %v651_v49 = vpop.permute.xlu1 %650  ;;  %v762_v55 = vsel %vm470_vm4, %v739_v40, %v761_v61 }
 0x2e9   :  { %v703_v29 = vrot.slane %v651_v49, %v1674_v0  ;;  %v743_v49 = vrot.slane %v681_v37, %v1674_v0 }
 0x2eb   :  { %v754_v25 = vsel %vm468_vm2, %v703_v29, %v753_v43  ;;  %v763_v29 = vsel %vm472_vm5, %v743_v49, %v762_v55 }
 0x2ec   :  { %v654_v44 = vpop.permute.xlu1 %653 }
 0x2ed   :  { %v707_v45 = vrot.slane %v654_v44, %v1674_v0 }
 0x2ef   :  { %v755_v3 = vsel %vm470_vm4, %v707_v45, %v754_v25 }
 0x2f0   :  { %v684_v44 = vpop.permute.xlu1 %683  ;;  %v756_v38 = vsel %vm472_vm5, %v711_v17, %v755_v3 }
 0x2f1   :  { %v747_v37 = vrot.slane %v684_v44, %v1674_v0  ;;  %v757_v43 = vsel %vm474_vm6, %v715_v58, %v756_v38 }
 0x2f2   :  { %v758_v4 = vsel %vm476_vm7, %v719_v35, %v757_v43 }
 0x2f3   :  { %v768_v15 = vsel %vm487_vm8, %v758_v4, 0.0  ;;  %v764_v50 = vsel %vm474_vm6, %v747_v37, %v763_v29 }
 0x2f4   :  { %769 = vadd.xlane.f32.xlu1 %v768_v15  ;;  %v765_v62 = vsel %vm476_vm7, %v751_v41, %v764_v50 }
 0x2f5   :  { %v771_v18 = vsel %vm487_vm8, %v765_v62, 0.0 }
 0x2f6   :  { %772 = vadd.xlane.f32.xlu0 %v771_v18 }
 0x381   :  { %v770_v40 = vpop.xlane.xlu1 %769 }
 0x382   :  { %v779_v49 = vrot.slane %v770_v40, %v1560_v22  ;;  %v791_v58 = vrot.slane %v770_v40, %v1767_v16  ;;  %v795_v48 = vrot.slane %v770_v40, %v1775_v10  ;;  %v783_v35 = vrot.slane %v770_v40, %v1747_v13 }
 0x383   :  { %v773_v45 = vpop.xlane.xlu0 %772  ;;  %v799_v44 = vrot.slane %v770_v40, %v1729_v11  ;;  %v787_v37 = vrot.slane %v770_v40, %v1758_v1  ;;  %v807_v4 = vrot.slane %v770_v40, %v1741_v20 }
 0x384   :  { %v815_v17 = vrot.slane %v773_v45, %v1747_v13  ;;  %v811_v0 = vrot.slane %v773_v45, %v1560_v22  ;;  %v819_v46 = vrot.slane %v773_v45, %v1758_v1  ;;  %v823_v25 = vrot.slane %v773_v45, %v1767_v16 }
 0x385   :  { %v827_v12 = vrot.slane %v773_v45, %v1775_v10  ;;  %v803_v13 = vrot.slane %v770_v40, %v1732_v14  ;;  %v839_v62 = vrot.slane %v773_v45, %v1741_v20 }
 0x386   :  { %1419 = vrcp.f32 %v815_v17 }
 0x387   :  { %1421 = vrcp.f32 %v811_v0 }
 0x388   :  { %1423 = vrcp.f32 %v819_v46 }
 0x389   :  { %1425 = vrcp.f32 %v779_v49 }
 0x38a   :  { %1427 = vrcp.f32 %v823_v25 }
 0x38b   :  { %1429 = vrcp.f32 %v791_v58 }
 0x38c   :  { %1431 = vrcp.f32 %v827_v12  ;;  %v1097_v12 = vld [vmem:[%s2003_s3 + $0x8] sm:$0xff] }
 0x38d   :  { %1433 = vrcp.f32 %v795_v48 }
 0x38e   :  { %1435 = vrcp.f32 %v783_v35  ;;  %v1099_v35 = vld [vmem:[%s2003_s3 + $0x18] sm:$0xff] }
 0x38f   :  { %1437 = vrcp.f32 %v799_v44 }
 0x390   :  { %v1420_v3 = vpop.eup %1419  ;;  %1439 = vrcp.f32 %v787_v37 }
 0x391   :  { %v1422_v61 = vpop.eup %1421  ;;  %v875_v22 = vmul.f32 %v1420_v3, %v1796_v63  ;;  %1441 = vrcp.f32 %v803_v13  ;;  %v1098_v3 = vld [vmem:[%s2003_s3 + $0x10] sm:$0xff] }
 0x392   :  { %v1424_v38 = vpop.eup %1423  ;;  %v873_v55 = vmul.f32 %v1422_v61, %v1787_v26  ;;  %v831_v26 = vrot.slane %v773_v45, %v1729_v11  ;;  %v1374_v61 = vpack.c.bf16 %v1099_v35, %v1098_v3 }
 0x393   :  { %v1426_v16 = vpop.eup %1425  ;;  %935 = vperm.xlu1 %1385, %v875_v22   ;;  %v877_v10 = vmul.f32 %v1424_v38, %v1805_v30 }
 0x394   :  { %930 = vperm.xlu0 %1386, %v873_v55   ;;  %v1428_v43 = vpop.eup %1427  ;;  %v857_v63 = vmul.f32 %v1426_v16, %v1772_v56  ;;  %1443 = vrcp.f32 %v831_v26  ;;  %v835_v56 = vrot.slane %v773_v45, %v1732_v14 }
 0x395   :  { %v1430_v41 = vpop.eup %1429  ;;  %v879_v29 = vmul.f32 %v1428_v43, %v1814_v2  ;;  %1445 = vrcp.f32 %v807_v4 }
 0x396   :  { %v1432_v1 = vpop.eup %1431  ;;  %v863_v30 = vmul.f32 %v1430_v41, %v1836_v28  ;;  %1447 = vrcp.f32 %v835_v56 }
 0x397   :  { %940 = vperm.xlu1 %1385, %v877_v10   ;;  %v1434_v15 = vpop.eup %1433  ;;  %v881_v50 = vmul.f32 %v1432_v1, %v1820_v53  ;;  %1449 = vrcp.f32 %v839_v62 }
 0x398   :  { %890 = vperm.xlu0 %1386, %v857_v63   ;;  %v1436_v11 = vpop.eup %1435  ;;  %v865_v2 = vmul.f32 %v1434_v15, %v1839_v19 }
 0x399   :  { %v1438_v18 = vpop.eup %1437  ;;  %v859_v28 = vmul.f32 %v1436_v11, %v1830_v8 }
 0x39a   :  { %v1440_v40 = vpop.eup %1439  ;;  %v867_v17 = vmul.f32 %v1438_v18, %v1781_v24 }
 0x39b   :  { %945 = vperm.xlu1 %1385, %v879_v29   ;;  %v1442_v0 = vpop.eup %1441  ;;  %v861_v14 = vmul.f32 %v1440_v40, %v1833_v57 }
 0x39c   :  { %905 = vperm.xlu0 %1386, %v863_v30   ;;  %v869_v20 = vmul.f32 %v1442_v0, %v1789_v27  ;;  %v1100_v27 = vld [vmem:[%s2004_s4] sm:$0xff] }
 0x39e   :  { %v1444_v53 = vpop.eup %1443 }
 0x39f   :  { %950 = vperm.xlu1 %1385, %v881_v50   ;;  %v1446_v45 = vpop.eup %1445  ;;  %v883_v19 = vmul.f32 %v1444_v53, %v1826_v6  ;;  %v1101_v6 = vld [vmem:[%s2004_s4 + $0x8] sm:$0xff] }
 0x3a0   :  { %910 = vperm.xlu0 %1386, %v865_v2   ;;  %v1448_v46 = vpop.eup %1447  ;;  %v871_v8 = vmul.f32 %v1446_v45, %v1798_v54  ;;  %v1362_v57 = vpack.c.bf16 %v1101_v6, %v1100_v27  ;;  %v1102_v54 = vld [vmem:[%s2004_s4 + $0x10] sm:$0xff] }
 0x3a1   :  { %v1450_v49 = vpop.eup %1449  ;;  %v885_v24 = vmul.f32 %v1448_v46, %v1842_v47  ;;  %v1096_v47 = vld [vmem:[%s2003_s3] sm:$0xff] }
 0x3a2   :  { %v887_v25 = vmul.f32 %v1450_v49, %v1807_v42  ;;  %1363 = vmatprep.subr.bf16.mxu1 %v1362_v57  ;;  %v1103_v42 = vld [vmem:[%s2004_s4 + $0x18] sm:$0xff]  ;;  %v1370_v48 = vpack.c.bf16 %v1097_v12, %v1096_v47 }
 0x3a3   :  { %895 = vperm.xlu1 %1385, %v859_v28   ;;  %1365 = vmatpush3.bf16.msra.mxu1 %v1362_v57  ;;  %v1366_v58 = vpack.c.bf16 %v1103_v42, %v1102_v54 }
 0x3a4   :  { %915 = vperm.xlu0 %1386, %v867_v17  }
 0x3a5   :  { %1367 = vmatprep.subr.bf16.mxu1 %v1366_v58 }
 0x3a7   :  { %900 = vperm.xlu1 %1385, %v861_v14   ;;  %1369 = vmatpush3.bf16.msra.mxu1 %v1366_v58 }
 0x3a8   :  { %920 = vperm.xlu0 %1386, %v869_v20   ;;  %1371 = vmatprep.subr.bf16.mxu1 %v1370_v48 }
 0x3aa   :  { %1341 = vmatmul.mubr.msk.f32.vlgmr.msra.gmra.mrb[0].mxu1 %vm56_vm0, %v1546_v7 }
 0x3ab   :  { %955 = vperm.xlu1 %1385, %v883_v19   ;;  %1373 = vmatpush3.bf16.msra.mxu1 %v1370_v48 }
 0x3ac   :  { %925 = vperm.xlu0 %1386, %v871_v8   ;;  %1375 = vmatprep.subr.bf16.mxu1 %v1374_v61 }
 0x3af   :  { %960 = vperm.xlu1 %1385, %v885_v24   ;;  %1377 = vmatpush3.bf16.msra.mxu1 %v1374_v61 }
 0x3b0   :  { %965 = vperm.xlu0 %1386, %v887_v25  }
 0x412   :  { %v936_v22 = vpop.permute.xlu1 %935 }
 0x413   :  { %v931_v44 = vpop.permute.xlu0 %930  ;;  %v977_v38 = vmul.f32 %v936_v22, %v1578_v39 }
 0x414   :  { %v976_v55 = vmul.f32 %v931_v44, %v1567_v31 }
 0x415   :  { %v1047_v16 = vsel %vm56_vm0, %v977_v38, 0.0 }
 0x416   :  { %v1040_v37 = vsel %vm56_vm0, %v976_v55, 0.0  ;;  %v1048_v10 = vrot.slane %v1047_v16, 4  ;;  %v941_v13 = vpop.permute.xlu1 %940 }
 0x417   :  { %v1041_v43 = vrot.slane %v1040_v37, 4  ;;  %v891_v63 = vpop.permute.xlu0 %890  ;;  %v978_v41 = vmul.f32 %v941_v13, %v1591_v51 }
 0x418   :  { %v1049_v7 = vadd.f32 %v1048_v10, %v1047_v16  ;;  %v968_v26 = vmul.f32 %v891_v63, %v1569_v32 }
 0x419   :  { %v1042_v29 = vadd.f32 %v1041_v43, %v1040_v37  ;;  %v1054_v4 = vsel %vm56_vm0, %v978_v41, 0.0 }
 0x41a   :  { %v984_v39 = vsel %vm56_vm0, %v968_v26, 0.0  ;;  %v1055_v1 = vrot.slane %v1054_v4, 4  ;;  %v946_v31 = vpop.permute.xlu1 %945  ;;  %v1050_v50 = vrot.slane %v1049_v7, 2 }
 0x41b   :  { %v985_v30 = vrot.slane %v984_v39, 4  ;;  %v906_v15 = vpop.permute.xlu0 %905  ;;  %v979_v56 = vmul.f32 %v946_v31, %v1626_v23  ;;  %v1043_v2 = vrot.slane %v1042_v29, 2 }
 0x41c   :  { %v1056_v62 = vadd.f32 %v1055_v1, %v1054_v4  ;;  %v971_v11 = vmul.f32 %v906_v15, %v1602_v59  ;;  %v1051_v45 = vadd.f32 %v1050_v50, %v1049_v7 }
 0x41d   :  { %v986_v51 = vadd.f32 %v985_v30, %v984_v39  ;;  %v1061_v18 = vsel %vm56_vm0, %v979_v56, 0.0  ;;  %v1044_v46 = vadd.f32 %v1043_v2, %v1042_v29 }
 0x41e   :  { %v1057_v32 = vrot.slane %v1056_v62, 2  ;;  %v1005_v28 = vsel %vm56_vm0, %v971_v11, 0.0  ;;  %v1062_v40 = vrot.slane %v1061_v18, 4  ;;  %v951_v17 = vpop.permute.xlu1 %950  ;;  %v1052_v42 = vrot.slane %v1051_v45, 1 }
 0x41f   :  { %v987_v0 = vrot.slane %v986_v51, 2  ;;  %v1006_v14 = vrot.slane %v1005_v28, 4  ;;  %v911_v53 = vpop.permute.xlu0 %910  ;;  %v980_v20 = vmul.f32 %v951_v17, %v1604_v60  ;;  %v1045_v58 = vrot.slane %v1044_v46, 1 }
 0x420   :  { %v1063_v23 = vadd.f32 %v1062_v40, %v1061_v18  ;;  %v972_v19 = vmul.f32 %v911_v53, %v1593_v52  ;;  %v1058_v49 = vadd.f32 %v1057_v32, %v1056_v62  ;;  %v1955_v37 = vadd.f32 %v1052_v42, %v1051_v45 }
 0x421   :  { %v1007_v59 = vadd.f32 %v1006_v14, %v1005_v28  ;;  %v1068_v8 = vsel %vm56_vm0, %v980_v20, 0.0  ;;  %v988_v6 = vadd.f32 %v987_v0, %v986_v51  ;;  %v1958_v43 = vadd.f32 %v1045_v58, %v1044_v46 }
 0x422   :  { %v1064_v24 = vrot.slane %v1063_v23, 2  ;;  %v1012_v25 = vsel %vm56_vm0, %v972_v19, 0.0  ;;  %v896_v27 = vpop.permute.xlu1 %895  ;;  %v1069_v47 = vrot.slane %v1068_v8, 4  ;;  %v1059_v48 = vrot.slane %v1058_v49, 1 }
 0x423   :  { %v1013_v57 = vrot.slane %v1012_v25, 4  ;;  %v916_v54 = vpop.permute.xlu0 %915  ;;  %v1008_v12 = vrot.slane %v1007_v59, 2  ;;  %v969_v52 = vmul.f32 %v896_v27, %v1613_v5  ;;  %v989_v22 = vrot.slane %v988_v6, 1 }
 0x424   :  { %v973_v60 = vmul.f32 %v916_v54, %v1615_v9  ;;  %v1065_v3 = vadd.f32 %v1064_v24, %v1063_v23  ;;  %v1070_v10 = vadd.f32 %v1069_v47, %v1068_v8  ;;  %v1961_v7 = vadd.f32 %v1059_v48, %v1058_v49 }
 0x425   :  { %v1014_v44 = vadd.f32 %v1013_v57, %v1012_v25  ;;  %v991_v55 = vsel %vm56_vm0, %v969_v52, 0.0  ;;  %v1009_v5 = vadd.f32 %v1008_v12, %v1007_v59  ;;  %v990_v1 = vadd.f32 %v989_v22, %v988_v6  ;;  %v2010_v59 = vld [vmem:[#allocation5_spill] sm:$0xff]  ;;  %v2011_v25 = vld [vmem:[#allocation6_spill] sm:$0xff] }
 0x426   :  { %v1019_v35 = vsel %vm56_vm0, %v973_v60, 0.0  ;;  %v901_v61 = vpop.permute.xlu1 %900  ;;  %v992_v13 = vrot.slane %v991_v55, 4  ;;  %v1066_v26 = vrot.slane %v1065_v3, 1 }
 0x427   :  { %v1020_v38 = vrot.slane %v1019_v35, 4  ;;  %v921_v16 = vpop.permute.xlu0 %920  ;;  %v970_v41 = vmul.f32 %v901_v61, %v1574_v36  ;;  %v1015_v31 = vrot.slane %v1014_v44, 2  ;;  %v1010_v2 = vrot.slane %v1009_v5, 1 }
 0x428   :  { %v974_v9 = vmul.f32 %v921_v16, %v1624_v21  ;;  %v993_v29 = vadd.f32 %v992_v13, %v991_v55  ;;  %v1071_v21 = vrot.slane %v1070_v10, 2  ;;  %v1067_v32 = vadd.f32 %v1066_v26, %v1065_v3 }
 0x429   :  { %v1021_v63 = vadd.f32 %v1020_v38, %v1019_v35  ;;  %v998_v15 = vsel %vm56_vm0, %v970_v41, 0.0  ;;  %v1016_v14 = vadd.f32 %v1015_v31, %v1014_v44 }
 0x42a   :  { %v1026_v4 = vsel %vm56_vm0, %v974_v9, 0.0  ;;  %v956_v39 = vpop.permute.xlu1 %955  ;;  %v994_v50 = vrot.slane %v993_v29, 2  ;;  %v999_v62 = vrot.slane %v998_v15, 4  ;;  %v1072_v49 = vadd.f32 %v1071_v21, %v1070_v10 }
 0x42b   :  { %v1027_v30 = vrot.slane %v1026_v4, 4  ;;  %v926_v56 = vpop.permute.xlu0 %925  ;;  %v1022_v36 = vrot.slane %v1021_v63, 2  ;;  %v981_v18 = vmul.f32 %v956_v39, %v1636_v33  ;;  %v1017_v52 = vrot.slane %v1016_v14, 1 }
 0x42c   :  { %v975_v11 = vmul.f32 %v926_v56, %v1638_v34  ;;  %v995_v28 = vadd.f32 %v994_v50, %v993_v29  ;;  %v1000_v40 = vadd.f32 %v999_v62, %v998_v15  ;;  %v1073_v61 = vrot.slane %v1072_v49, 1 }
 0x42d   :  { %v1028_v51 = vadd.f32 %v1027_v30, %v1026_v4  ;;  %v1075_v45 = vsel %vm56_vm0, %v981_v18, 0.0  ;;  %v1023_v24 = vadd.f32 %v1022_v36, %v1021_v63  ;;  %v1011_v9 = vadd.f32 %v1010_v2, %v1009_v5 }
 0x42e   :  { %v1033_v17 = vsel %vm56_vm0, %v975_v11, 0.0  ;;  %v961_v0 = vpop.permute.xlu1 %960  ;;  %v996_v19 = vrot.slane %v995_v28, 1  ;;  %v1001_v46 = vrot.slane %v1000_v40, 2  ;;  %v1076_v34 = vrot.slane %v1075_v45, 4 }
 0x42f   :  { %v1029_v53 = vrot.slane %v1028_v51, 2  ;;  %v1034_v20 = vrot.slane %v1033_v17, 4  ;;  %v966_v23 = vpop.permute.xlu0 %965  ;;  %v982_v27 = vmul.f32 %v961_v0, %v2011_v25  ;;  %v1024_v22 = vrot.slane %v1023_v24, 1 }
 0x430   :  { %v983_v8 = vmul.f32 %v966_v23, %v2010_v59  ;;  %v1002_v57 = vadd.f32 %v1001_v46, %v1000_v40  ;;  %v1077_v54 = vadd.f32 %v1076_v34, %v1075_v45  ;;  %v997_v47 = vadd.f32 %v996_v19, %v995_v28 }
 0x431   :  { %v1035_v33 = vadd.f32 %v1034_v20, %v1033_v17  ;;  %v1030_v6 = vadd.f32 %v1029_v53, %v1028_v51  ;;  %v1082_v12 = vsel %vm56_vm0, %v982_v27, 0.0  ;;  %v1018_v29 = vadd.f32 %v1017_v52, %v1016_v14 }
 0x432   :  { %v1089_v42 = vsel %vm56_vm0, %v983_v8, 0.0  ;;  %v1003_v48 = vrot.slane %v1002_v57, 1  ;;  %v1078_v3 = vrot.slane %v1077_v54, 2  ;;  %v1083_v35 = vrot.slane %v1082_v12, 4 }
 0x433   :  { %v1036_v60 = vrot.slane %v1035_v33, 2  ;;  %v1090_v58 = vrot.slane %v1089_v42, 4  ;;  %v1031_v55 = vrot.slane %v1030_v6, 1  ;;  %v1195_v63 = vsel %vm464_vm1, %v997_v47, %v990_v1 }
 0x434   :  { %v1004_v16 = vadd.f32 %v1003_v48, %v1002_v57  ;;  %v1079_v10 = vadd.f32 %v1078_v3, %v1077_v54  ;;  %v1084_v13 = vadd.f32 %v1083_v35, %v1082_v12  ;;  %v1025_v30 = vadd.f32 %v1024_v22, %v1023_v24 }
 0x435   :  { %v1037_v44 = vadd.f32 %v1036_v60, %v1035_v33  ;;  %v1091_v38 = vadd.f32 %v1090_v58, %v1089_v42  ;;  %v1074_v50 = vadd.f32 %v1073_v61, %v1072_v49  ;;  %v1032_v62 = vadd.f32 %v1031_v55, %v1030_v6 }
 0x436   :  { %v1196_v4 = vsel %vm466_vm3, %v1004_v16, %v1195_v63  ;;  %v1080_v39 = vrot.slane %v1079_v10, 1  ;;  %v1085_v31 = vrot.slane %v1084_v13, 2  ;;  %v1202_v5 = vsel %vm464_vm1, %v1955_v37, %v1958_v43 }
 0x437   :  { %v1038_v41 = vrot.slane %v1037_v44, 1  ;;  %v1092_v26 = vrot.slane %v1091_v38, 2  ;;  %v1197_v21 = vsel %vm468_vm2, %v1011_v9, %v1196_v4  ;;  %v1203_v18 = vsel %vm466_vm3, %v1961_v7, %v1202_v5 }
 0x438   :  { %v1086_v11 = vadd.f32 %v1085_v31, %v1084_v13  ;;  %v1198_v36 = vsel %vm470_vm4, %v1018_v29, %v1197_v21  ;;  %v1081_v1 = vadd.f32 %v1080_v39, %v1079_v10  ;;  %v1204_v17 = vsel %vm468_vm2, %v1067_v32, %v1203_v18 }
 0x439   :  { %v1039_v15 = vadd.f32 %v1038_v41, %v1037_v44  ;;  %v1093_v56 = vadd.f32 %v1092_v26, %v1091_v38  ;;  %v1199_v51 = vsel %vm472_vm5, %v1025_v30, %v1198_v36  ;;  %v1205_v53 = vsel %vm470_vm4, %v1074_v50, %v1204_v17 }
 0x43a   :  { %v1087_v28 = vrot.slane %v1086_v11, 1  ;;  %v1200_v40 = vsel %vm474_vm6, %v1032_v62, %v1199_v51  ;;  %v1206_v37 = vsel %vm472_vm5, %v1081_v1, %v1205_v53 }
 0x43b   :  { %v1094_v2 = vrot.slane %v1093_v56, 1  ;;  %v1201_v14 = vsel %vm476_vm7, %v1039_v15, %v1200_v40 }
 0x43c   :  { %v1088_v20 = vadd.f32 %v1087_v28, %v1086_v11  ;;  %1351 = vmatprep.mubr.msk.f32.mxu1 %vm56_vm0, %v1201_v14 }
 0x43d   :  { %v1095_v0 = vadd.f32 %v1094_v2, %v1093_v56 }
 0x43e   :  { %v1207_v43 = vsel %vm474_vm6, %v1088_v20, %v1206_v37 }
 0x43f   :  { %v1208_v45 = vsel %vm476_vm7, %v1095_v0, %v1207_v43 }
 0x440   :  { %1352 = vmatmul.mubr.msk.f32.vlgmr.msra.gmra.mrb[0].mxu1 %vm56_vm0, %v1208_v45 }
 0x513   :  { %v1353_v7 = vpop.f32.mrb[0].mxu1 }
 0x514   :  { %1451 = vtanh.f32 %v1353_v7  ;;  %v1279_v23 = vpop.f32.mrb[1].mxu1 }
 0x515   :  { %1453 = vtanh.f32 %v1279_v23 }
 0x51e   :  { %v1452_v32 = vpop.eup %1451 }
 0x51f   :  { %v1454_v19 = vpop.eup %1453  ;;  %1291 = vst.msk [vmem:[%s2005_s5 + $0x8] sm:$0xff] %vm56_vm0, %v1452_v32 }
 0x520   :  { %1290 = vst.msk [vmem:[%s2005_s5] sm:$0xff] %vm56_vm0, %v1454_v19 }
 0x521   :  { %1296 = vsyncpa [#allocation3], 1 }

// kernel: speaker_encoder_forward.5
= control target key start
LH: loop header
LB: loop body
LE: loop exit
PB: predicated region body
PF: predicated region fallthrough
CT: control target
= control target key end

     0   :  { %v1657_v3 = vmov 0.0|0.0   ;;  %vm1658_vm0 = vmmov 0   ;;  %v1659_v8 = vmov 0.0   ;;  %vm35_vm1 = vcmask 261120   ;;  %s1957_s0 = inlined_call_operand.vmem [shape: f32[2,8,32], index: 0, kind: input, shape index: {}]   ;;  %s1958_s1 = inlined_call_operand.vmem [shape: f32[32,128], index: 1, kind: input, shape index: {}]   ;;  %s1959_s2 = inlined_call_operand.vmem [shape: f32[32,128], index: 2, kind: input, shape index: {}]   ;;  %s1960_s3 = inlined_call_operand.vmem [shape: f32[1,128], index: 3, kind: input, shape index: {}]   ;;  %s1961_s4 = inlined_call_operand.hbm [shape: f32[2,8,32], index: 4, kind: output, shape index: {}]  }
   0x1   :  { %v25_v0 = vld [vmem:[%s1958_s1] sm:$0xff]  ;;  %v26_v1 = vld [vmem:[%s1958_s1 + $0x8] sm:$0xff]  ;;  %1480 = vmatprep.subr.bf16.mxu1 %v1657_v3  ;;  %v27_v6 = vld [vmem:[%s1958_s1 + $0x10] sm:$0xff]  ;;  %1392 = vmatprep.mubr.msk.f32.mxu1 %vm1658_vm0, %v1659_v8  ;;  %vm22_vm2 = vcmask 254976  }
   0x2   :  { %v29_v2 = vld [vmem:[%s1959_s2] sm:$0xff]  ;;  %v1472_v4 = vpack.c.bf16 %v26_v1, %v25_v0  ;;  %v30_v5 = vld [vmem:[%s1959_s2 + $0x8] sm:$0xff]  ;;  %v28_v7 = vld [vmem:[%s1958_s1 + $0x18] sm:$0xff]  ;;  %23 = vst.msk [vmem:[#allocation2] sm:$0x3] %vm22_vm2, %v1659_v8 }
   0x3   :  { %v1712_v9 = vpack.c.bf16 %v30_v5, %v29_v2  ;;  %v1476_v10 = vpack.c.bf16 %v28_v7, %v27_v6  ;;  %v31_v11 = vld [vmem:[%s1959_s2 + $0x10] sm:$0xff]  ;;  %v32_v12 = vld [vmem:[%s1959_s2 + $0x18] sm:$0xff]  ;;  %v33_v13 = vld [vmem:[%s1957_s0] sm:$0xff]  ;;  %24 = vst.msk [vmem:[#allocation3] sm:$0x3] %vm22_vm2, %v1659_v8 }
   0x4   :  { %1473 = vmatprep.subr.bf16.mxu0 %v1472_v4  ;;  %1381 = vmatprep.mubr.msk.f32.mxu0 %vm35_vm1, %v33_v13 }
   0x5   :  { %9 = vsyncpa [#allocation5], 0  ;;  %1482 = vmatpush3.bf16.msra.mxu1 %v1712_v9  ;;  %1475 = vmatpush3.bf16.msra.mxu0 %v1472_v4  ;;  %v1727_v14 = vpack.c.bf16 %v32_v12, %v31_v11  ;;  %v34_v15 = vld [vmem:[%s1957_s0 + $0x8] sm:$0xff]  ;;  %s1660_s7 = smov 32   ;;  %v1318_v19 = vld [vmem:[%s1960_s3] ss:$0 sm:$0xff] }
   0x6   :  { %1483 = vmatprep.subr.bf16.mxu1 %v1657_v3  ;;  %1477 = vmatprep.subr.bf16.mxu0 %v1476_v10  ;;  %s1661_s9 = smov 64   ;;  %vm271_vm3 = vcmask 1041409   ;;  %vm267_vm4 = vcmask 253952   ;;  %vm411_vm5 = vcmask 254977   ;;  %s1662_s3 = smov 96   ;;  %vm555_vm6 = vcmask 256002  }
   0x7   :  { %vm700_vm7 = vcmask 257027   ;;  %vm845_vm8 = vcmask 258052   ;;  %vm990_vm9 = vcmask 259077   ;;  %vm1135_vm10 = vcmask 260102   ;;  %s1663_s10 = smov [#allocation4]  }
   0x8   :  { %s1305_s11 = sshll.u32 %s1663_s10, 4  ;;  %vm1280_vm11 = vcmask 261127   ;;  %s1306_s11 = int_to_ptr.vmem [resolvable:$true] %s1305_s11 }
   0x9   :  { %1485 = vmatpush3.bf16.msra.mxu1 %v1727_v14  ;;  %1479 = vmatpush3.bf16.msra.mxu0 %v1476_v10  ;;  %v126_v16 = vld [vmem:[#allocation2] sm:$0x3]  ;;  %s1633_s12 = scalar_lea.vmem %s1306_s11, 256  ;;  %p1638_p1 = scmp.lt.s32.totalorder %s1306_s11, %s1306_s11 }
   0xa   :  { %v127_v17 = vld [vmem:[#allocation3] sm:$0x3]  ;;  %1486 = vmatprep.subr.bf16.mxu0 %v1657_v3  ;;  %1492 = vmatprep.subr.bf16.mxu1 %v1657_v3  ;;  %p1634_p0 = scmp.ne.s32.totalorder %s1306_s11, %s1633_s12  ;;  %p1639_p2 = scmp.lt.s32.totalorder %s1633_s12, %s1633_s12 }
   0xb   :  { %v218_v18 = vrot.slane %v127_v17, 1 }
   0xc   :  { %1393 = vmatmul.mubr.msk.f32.vlgmr.msra.gmra.mrb[0].mxu1 %vm35_vm1, %v126_v16  ;;  %1382 = vmatmul.mubr.msk.f32.vlgmr.msra.gmra.mrb[0].mxu0 %vm35_vm1, %v34_v15  ;;  %p1640_p3 = por %p1639_p2, %p1638_p1 }
   0xd   :  { %221 = vrot.lane.b32.xlu1 %v218_v18, %s1660_s7  ;;  %1488 = vmatpush3.bf16.msra.mxu0 %v1712_v9 }
   0xe   :  { %1489 = vmatprep.subr.bf16.mxu0 %v1657_v3  ;;  %1403 = vmatprep.mubr.msk.f32.mxu0 %vm1658_vm0, %v1659_v8  ;;  %p1641_p4 = pnand %p1640_p3, %p1634_p0 }
   0xf   :  { %1494 = vmatpush3.bf16.msra.mxu1 %v1712_v9  ;;  %1414 = vmatprep.mubr.msk.f32.mxu1 %vm1658_vm0, %v1659_v8 }
  0x10   :  { %1495 = vmatprep.subr.bf16.mxu1 %v1657_v3 }
  0x11   :  { %219 = vrot.lane.b32.xlu1 %v127_v17, %s1660_s7  ;;  %1491 = vmatpush3.bf16.msra.mxu0 %v1727_v14 }
  0x12   :  { %1498 = vmatprep.subr.bf16.mxu0 %v1657_v3 }
  0x13   :  { %1497 = vmatpush3.bf16.msra.mxu1 %v1727_v14 }
  0x14   :  { %1504 = vmatprep.subr.bf16.mxu1 %v1657_v3 }
  0x7f   :  { %v222_v43 = vpop.permute.xlu1 %221 }
  0x83   :  { %v220_v45 = vpop.permute.xlu1 %219 }
  0xdf   :  { %v197_v20 = vpop.f32.mrb[0].mxu1  ;;  %v1383_v21 = vpop.f32.mrb[0].mxu0 }
  0xe0   :  { %v202_v22 = vrot.slane %v197_v20, 1  ;;  %v1755_v23 = vadd.f32 %v1383_v21, %v1318_v19  ;;  %v1394_v24 = vpop.f32.mrb[1].mxu1  ;;  %v108_v25 = vpop.f32.mrb[1].mxu0 }
  0xe1   :  { %v1757_v26 = vadd.f32 %v1318_v19, %v108_v25 }
  0xe2   :  { %v206_v27 = vadd.f32 %v202_v22, %v1755_v23 }
  0xe3   :  { %v205_v28 = vadd.f32 %v197_v20, %v1757_v26 }
  0xe4   :  { %1537 = vtanh.f32 %v206_v27  ;;  %v208_v31 = vmul.f32 0.5, %v206_v27 }
  0xe5   :  { %1539 = vtanh.f32 %v205_v28  ;;  %v207_v32 = vmul.f32 0.5, %v205_v28 }
  0xe6   :  { %1541 = vtanh.f32 %v208_v31 }
  0xe7   :  { %1543 = vtanh.f32 %v207_v32 }
  0xee   :  { %v1538_v29 = vpop.eup %1537 }
  0xef   :  { %231 = vrot.lane.b32.xlu0 %v1538_v29, %s1661_s9  ;;  %v1540_v30 = vpop.eup %1539 }
  0xf0   :  { %v1542_v33 = vpop.eup %1541 }
  0xf1   :  { %v212_v34 = vadd.f32 1.0, %v1542_v33  ;;  %v1544_v35 = vpop.eup %1543 }
  0xf2   :  { %v211_v37 = vadd.f32 1.0, %v1544_v35 }
  0xf3   :  { %229 = vrot.lane.b32.xlu0 %v1540_v30, %s1661_s9  ;;  %v214_v36 = vmul.f32 0.5, %v212_v34 }
  0xf4   :  { %v213_v40 = vmul.f32 0.5, %v211_v37 }
  0xf5   :  { %v226_v44 = vmul.f32 %v222_v43, %v214_v36 }
  0xf6   :  { %v225_v48 = vmul.f32 %v220_v45, %v213_v40 }
 0x161   :  { %v232_v38 = vpop.permute.xlu0 %231 }
 0x162   :  { %v236_v39 = vmul.f32 %v232_v38, %v214_v36 }
 0x164   :  { %241 = vrot.lane.b32.xlu0 %v236_v39, %s1660_s7 }
 0x165   :  { %v230_v41 = vpop.permute.xlu0 %229 }
 0x166   :  { %v235_v42 = vmul.f32 %v230_v41, %v213_v40 }
 0x168   :  { %239 = vrot.lane.b32.xlu1 %v235_v42, %s1660_s7 }
 0x1d6   :  { %v242_v46 = vpop.permute.xlu0 %241 }
 0x1d7   :  { %v246_v47 = vadd.f32 %v242_v46, %v226_v44 }
 0x1d9   :  { %1545 = vtanh.f32 %v246_v47  ;;  %v366_v19 = vrot.slane %v246_v47, 7 }
 0x1da   :  { %v240_v49 = vpop.permute.xlu1 %239 }
 0x1db   :  { %v245_v50 = vadd.f32 %v240_v49, %v225_v48 }
 0x1dd   :  { %1547 = vtanh.f32 %v245_v50  ;;  %v365_v21 = vrot.slane %v245_v50, 7 }
 0x1e3   :  { %v1546_v51 = vpop.eup %1545 }
 0x1e4   :  { %253 = vrot.lane.b32.xlu0 %v1546_v51, %s1661_s9 }
 0x1e7   :  { %v1548_v52 = vpop.eup %1547 }
 0x1e8   :  { %251 = vrot.lane.b32.xlu1 %v1548_v52, %s1661_s9 }
 0x256   :  { %v254_v53 = vpop.permute.xlu0 %253 }
 0x257   :  { %v1767_v54 = vmul.f32 %v254_v53, %v214_v36 }
 0x259   :  { %v270_v56 = vrot.slane %v1767_v54, 7 }
 0x25a   :  { %v252_v55 = vpop.permute.xlu1 %251 }
 0x25b   :  { %v1770_v57 = vmul.f32 %v252_v55, %v213_v40 }
 0x25d   :  { %v272_v58 = vsel %vm271_vm3, %v270_v56, %v1770_v57 }
 0x25e   :  { %273 = vrot.lane.b32.xlu0 %v272_v58, %s1660_s7 }
 0x2d0   :  { %v274_v59 = vpop.permute.xlu0 %273 }
 0x2d1   :  { %1404 = vmatmul.mubr.msk.f32.vlgmr.msra.gmra.mrb[2].mxu0 %vm35_vm1, %v274_v59 }
 0x2d2   :  { %1500 = vmatpush3.bf16.msra.mxu0 %v1712_v9  ;;  %1425 = vmatprep.mubr.msk.f32.mxu0 %vm1658_vm0, %v1659_v8 }
 0x2d3   :  { %1501 = vmatprep.subr.bf16.mxu0 %v1657_v3 }
 0x2d6   :  { %1503 = vmatpush3.bf16.msra.mxu0 %v1727_v14 }
 0x2d7   :  { %1510 = vmatprep.subr.bf16.mxu0 %v1657_v3 }
 0x3a4   :  { %v343_v60 = vpop.f32.mrb[2].mxu0 }
 0x3a5   :  { %v348_v61 = vrot.slane %v343_v60, 7  ;;  %v352_v62 = vadd.f32 %v343_v60, %v1755_v23  ;;  %v1405_v63 = vpop.f32.mrb[3].mxu0 }
 0x3a7   :  { %v351_v0 = vadd.f32 %v348_v61, %v1757_v26  ;;  %1549 = vtanh.f32 %v352_v62  ;;  %v354_v4 = vmul.f32 0.5, %v352_v62 }
 0x3a9   :  { %1551 = vtanh.f32 %v351_v0  ;;  %v353_v5 = vmul.f32 0.5, %v351_v0 }
 0x3aa   :  { %1553 = vtanh.f32 %v354_v4 }
 0x3ab   :  { %1555 = vtanh.f32 %v353_v5 }
 0x3b1   :  { %v1550_v1 = vpop.eup %1549 }
 0x3b2   :  { %375 = vrot.lane.b32.xlu0 %v1550_v1, %s1661_s9 }
 0x3b3   :  { %v1552_v2 = vpop.eup %1551 }
 0x3b4   :  { %373 = vrot.lane.b32.xlu1 %v1552_v2, %s1661_s9  ;;  %v1554_v6 = vpop.eup %1553 }
 0x3b5   :  { %v1556_v7 = vpop.eup %1555  ;;  %v358_v10 = vadd.f32 1.0, %v1554_v6 }
 0x3b6   :  { %v357_v11 = vadd.f32 1.0, %v1556_v7 }
 0x3b7   :  { %v360_v12 = vmul.f32 0.5, %v358_v10 }
 0x3b8   :  { %v359_v16 = vmul.f32 0.5, %v357_v11 }
 0x3b9   :  { %v370_v20 = vmul.f32 %v366_v19, %v360_v12 }
 0x3ba   :  { %v369_v25 = vmul.f32 %v365_v21, %v359_v16 }
 0x424   :  { %v376_v13 = vpop.permute.xlu0 %375 }
 0x425   :  { %v380_v15 = vmul.f32 %v376_v13, %v360_v12 }
 0x426   :  { %v374_v17 = vpop.permute.xlu1 %373 }
 0x427   :  { %385 = vrot.lane.b32.xlu0 %v380_v15, %s1660_s7  ;;  %v379_v18 = vmul.f32 %v374_v17, %v359_v16 }
 0x429   :  { %383 = vrot.lane.b32.xlu1 %v379_v18, %s1660_s7 }
 0x499   :  { %v386_v22 = vpop.permute.xlu0 %385 }
 0x49a   :  { %v390_v24 = vadd.f32 %v386_v22, %v370_v20 }
 0x49b   :  { %v384_v27 = vpop.permute.xlu1 %383 }
 0x49c   :  { %1557 = vtanh.f32 %v390_v24  ;;  %v389_v28 = vadd.f32 %v384_v27, %v369_v25  ;;  %v510_v61 = vrot.slane %v390_v24, 7 }
 0x49e   :  { %1559 = vtanh.f32 %v389_v28  ;;  %v509_v60 = vrot.slane %v389_v28, 7 }
 0x4a6   :  { %v1558_v29 = vpop.eup %1557 }
 0x4a7   :  { %397 = vrot.lane.b32.xlu0 %v1558_v29, %s1661_s9 }
 0x4a8   :  { %v1560_v30 = vpop.eup %1559 }
 0x4a9   :  { %395 = vrot.lane.b32.xlu1 %v1560_v30, %s1661_s9 }
 0x519   :  { %v398_v31 = vpop.permute.xlu0 %397 }
 0x51a   :  { %v1792_v34 = vmul.f32 %v398_v31, %v360_v12 }
 0x51b   :  { %v396_v32 = vpop.permute.xlu1 %395 }
 0x51c   :  { %v1790_v33 = vmul.f32 %v396_v32, %v359_v16 }
 0x51e   :  { %v414_v35 = vrot.slane %v1790_v33, 1 }
 0x520   :  { %v415_v36 = vsel %vm271_vm3, %v1792_v34, %v414_v35 }
 0x521   :  { %416 = vrot.lane.b32.xlu1 %v415_v36, %s1660_s7 }
 0x593   :  { %v417_v37 = vpop.permute.xlu1 %416 }
 0x594   :  { %1415 = vmatmul.mubr.msk.f32.vlgmr.msra.gmra.mrb[2].mxu1 %vm35_vm1, %v417_v37 }
 0x595   :  { %1506 = vmatpush3.bf16.msra.mxu1 %v1712_v9  ;;  %1436 = vmatprep.mubr.msk.f32.mxu1 %vm1658_vm0, %v1659_v8 }
 0x596   :  { %1507 = vmatprep.subr.bf16.mxu1 %v1657_v3 }
 0x599   :  { %1509 = vmatpush3.bf16.msra.mxu1 %v1727_v14 }
 0x59a   :  { %1516 = vmatprep.subr.bf16.mxu1 %v1657_v3 }
 0x667   :  { %v486_v38 = vpop.f32.mrb[2].mxu1 }
 0x668   :  { %v491_v39 = vrot.slane %v486_v38, 6  ;;  %v492_v40 = vrot.slane %v486_v38, 7  ;;  %v1416_v41 = vpop.f32.mrb[3].mxu1 }
 0x66a   :  { %v495_v42 = vadd.f32 %v491_v39, %v1757_v26  ;;  %v496_v43 = vadd.f32 %v492_v40, %v1755_v23 }
 0x66c   :  { %1561 = vtanh.f32 %v495_v42  ;;  %v497_v46 = vmul.f32 0.5, %v495_v42  ;;  %v498_v47 = vmul.f32 0.5, %v496_v43 }
 0x66d   :  { %1563 = vtanh.f32 %v496_v43 }
 0x66e   :  { %1565 = vtanh.f32 %v497_v46 }
 0x66f   :  { %1567 = vtanh.f32 %v498_v47 }
 0x676   :  { %v1562_v44 = vpop.eup %1561 }
 0x677   :  { %v1564_v45 = vpop.eup %1563  ;;  %517 = vrot.lane.b32.xlu0 %v1562_v44, %s1661_s9 }
 0x678   :  { %519 = vrot.lane.b32.xlu1 %v1564_v45, %s1661_s9  ;;  %v1566_v48 = vpop.eup %1565 }
 0x679   :  { %v1568_v49 = vpop.eup %1567  ;;  %v501_v50 = vadd.f32 1.0, %v1566_v48 }
 0x67a   :  { %v502_v51 = vadd.f32 1.0, %v1568_v49 }
 0x67b   :  { %v503_v52 = vmul.f32 0.5, %v501_v50 }
 0x67c   :  { %v504_v53 = vmul.f32 0.5, %v502_v51 }
 0x67d   :  { %v513_v62 = vmul.f32 %v509_v60, %v503_v52 }
 0x67e   :  { %v514_v63 = vmul.f32 %v510_v61, %v504_v53 }
 0x6e9   :  { %v518_v55 = vpop.permute.xlu0 %517 }
 0x6ea   :  { %v520_v56 = vpop.permute.xlu1 %519  ;;  %v523_v58 = vmul.f32 %v518_v55, %v503_v52 }
 0x6eb   :  { %v524_v59 = vmul.f32 %v520_v56, %v504_v53 }
 0x6ec   :  { %527 = vrot.lane.b32.xlu0 %v523_v58, %s1660_s7 }
 0x6ed   :  { %529 = vrot.lane.b32.xlu1 %v524_v59, %s1660_s7 }
 0x75e   :  { %v528_v0 = vpop.permute.xlu0 %527 }
 0x75f   :  { %v530_v1 = vpop.permute.xlu1 %529  ;;  %v533_v2 = vadd.f32 %v528_v0, %v513_v62 }
 0x760   :  { %v534_v4 = vadd.f32 %v530_v1, %v514_v63 }
 0x761   :  { %1569 = vtanh.f32 %v533_v2  ;;  %v654_v42 = vrot.slane %v533_v2, 7 }
 0x762   :  { %1571 = vtanh.f32 %v534_v4  ;;  %v655_v43 = vrot.slane %v534_v4, 7 }
 0x76b   :  { %v1570_v5 = vpop.eup %1569 }
 0x76c   :  { %v1572_v6 = vpop.eup %1571  ;;  %539 = vrot.lane.b32.xlu0 %v1570_v5, %s1661_s9 }
 0x76d   :  { %541 = vrot.lane.b32.xlu1 %v1572_v6, %s1661_s9 }
 0x7de   :  { %v540_v7 = vpop.permute.xlu0 %539 }
 0x7df   :  { %v542_v10 = vpop.permute.xlu1 %541  ;;  %v1813_v11 = vmul.f32 %v540_v7, %v503_v52 }
 0x7e0   :  { %v1815_v12 = vmul.f32 %v542_v10, %v504_v53 }
 0x7e1   :  { %v558_v13 = vrot.slane %v1813_v11, 2 }
 0x7e2   :  { %v559_v15 = vrot.slane %v1815_v12, 1 }
 0x7e4   :  { %v560_v16 = vsel %vm271_vm3, %v559_v15, %v558_v13 }
 0x7e5   :  { %561 = vrot.lane.b32.xlu0 %v560_v16, %s1660_s7 }
 0x857   :  { %v562_v17 = vpop.permute.xlu0 %561 }
 0x858   :  { %1426 = vmatmul.mubr.msk.f32.vlgmr.msra.gmra.mrb[4].mxu0 %vm35_vm1, %v562_v17 }
 0x859   :  { %1512 = vmatpush3.bf16.msra.mxu0 %v1712_v9  ;;  %1447 = vmatprep.mubr.msk.f32.mxu0 %vm1658_vm0, %v1659_v8 }
 0x85a   :  { %1513 = vmatprep.subr.bf16.mxu0 %v1657_v3 }
 0x85d   :  { %1515 = vmatpush3.bf16.msra.mxu0 %v1727_v14 }
 0x85e   :  { %1522 = vmatprep.subr.bf16.mxu0 %v1657_v3 }
 0x92b   :  { %v631_v18 = vpop.f32.mrb[4].mxu0 }
 0x92c   :  { %v636_v19 = vrot.slane %v631_v18, 5  ;;  %v637_v20 = vrot.slane %v631_v18, 6  ;;  %v1427_v21 = vpop.f32.mrb[5].mxu0 }
 0x92e   :  { %v640_v22 = vadd.f32 %v636_v19, %v1757_v26  ;;  %v641_v24 = vadd.f32 %v637_v20, %v1755_v23 }
 0x930   :  { %1573 = vtanh.f32 %v640_v22  ;;  %v642_v28 = vmul.f32 0.5, %v640_v22  ;;  %v643_v29 = vmul.f32 0.5, %v641_v24 }
 0x931   :  { %1575 = vtanh.f32 %v641_v24 }
 0x932   :  { %1577 = vtanh.f32 %v642_v28 }
 0x933   :  { %1579 = vtanh.f32 %v643_v29 }
 0x93a   :  { %v1574_v25 = vpop.eup %1573 }
 0x93b   :  { %v1576_v27 = vpop.eup %1575  ;;  %662 = vrot.lane.b32.xlu1 %v1574_v25, %s1661_s9 }
 0x93c   :  { %664 = vrot.lane.b32.xlu0 %v1576_v27, %s1661_s9  ;;  %v1578_v30 = vpop.eup %1577 }
 0x93d   :  { %v1580_v31 = vpop.eup %1579  ;;  %v646_v32 = vadd.f32 1.0, %v1578_v30 }
 0x93e   :  { %v647_v35 = vadd.f32 1.0, %v1580_v31 }
 0x93f   :  { %v648_v36 = vmul.f32 0.5, %v646_v32 }
 0x940   :  { %v649_v37 = vmul.f32 0.5, %v647_v35 }
 0x941   :  { %v658_v44 = vmul.f32 %v654_v42, %v648_v36 }
 0x942   :  { %v659_v45 = vmul.f32 %v655_v43, %v649_v37 }
 0x9ad   :  { %v663_v38 = vpop.permute.xlu1 %662 }
 0x9ae   :  { %v665_v39 = vpop.permute.xlu0 %664  ;;  %v668_v40 = vmul.f32 %v663_v38, %v648_v36 }
 0x9af   :  { %v669_v41 = vmul.f32 %v665_v39, %v649_v37 }
 0x9b0   :  { %672 = vrot.lane.b32.xlu1 %v668_v40, %s1660_s7 }
 0x9b1   :  { %674 = vrot.lane.b32.xlu0 %v669_v41, %s1660_s7 }
 0xa22   :  { %v673_v46 = vpop.permute.xlu1 %672 }
 0xa23   :  { %v675_v47 = vpop.permute.xlu0 %674  ;;  %v678_v48 = vadd.f32 %v673_v46, %v658_v44 }
 0xa24   :  { %v679_v49 = vadd.f32 %v675_v47, %v659_v45 }
 0xa25   :  { %1581 = vtanh.f32 %v678_v48  ;;  %v799_v25 = vrot.slane %v678_v48, 7 }
 0xa26   :  { %1583 = vtanh.f32 %v679_v49  ;;  %v800_v27 = vrot.slane %v679_v49, 7 }
 0xa2f   :  { %v1582_v50 = vpop.eup %1581 }
 0xa30   :  { %v1584_v51 = vpop.eup %1583  ;;  %684 = vrot.lane.b32.xlu1 %v1582_v50, %s1661_s9 }
 0xa31   :  { %686 = vrot.lane.b32.xlu0 %v1584_v51, %s1661_s9 }
 0xaa2   :  { %v685_v52 = vpop.permute.xlu1 %684 }
 0xaa3   :  { %v687_v53 = vpop.permute.xlu0 %686  ;;  %v1836_v55 = vmul.f32 %v685_v52, %v648_v36 }
 0xaa4   :  { %v1838_v56 = vmul.f32 %v687_v53, %v649_v37 }
 0xaa5   :  { %v703_v58 = vrot.slane %v1836_v55, 3 }
 0xaa6   :  { %v704_v59 = vrot.slane %v1838_v56, 2 }
 0xaa8   :  { %v705_v60 = vsel %vm271_vm3, %v704_v59, %v703_v58 }
 0xaa9   :  { %706 = vrot.lane.b32.xlu1 %v705_v60, %s1660_s7 }
 0xb1b   :  { %v707_v61 = vpop.permute.xlu1 %706 }
 0xb1c   :  { %1437 = vmatmul.mubr.msk.f32.vlgmr.msra.gmra.mrb[4].mxu1 %vm35_vm1, %v707_v61 }
 0xb1d   :  { %1518 = vmatpush3.bf16.msra.mxu1 %v1712_v9  ;;  %1458 = vmatprep.mubr.msk.f32.mxu1 %vm1658_vm0, %v1659_v8 }
 0xb1e   :  { %1519 = vmatprep.subr.bf16.mxu1 %v1657_v3 }
 0xb21   :  { %1521 = vmatpush3.bf16.msra.mxu1 %v1727_v14 }
 0xbef   :  { %v776_v62 = vpop.f32.mrb[4].mxu1 }
 0xbf0   :  { %v781_v63 = vrot.slane %v776_v62, 4  ;;  %v782_v0 = vrot.slane %v776_v62, 5  ;;  %v1438_v1 = vpop.f32.mrb[5].mxu1 }
 0xbf2   :  { %v785_v2 = vadd.f32 %v781_v63, %v1757_v26  ;;  %v786_v4 = vadd.f32 %v782_v0, %v1755_v23 }
 0xbf4   :  { %1585 = vtanh.f32 %v785_v2  ;;  %v787_v7 = vmul.f32 0.5, %v785_v2  ;;  %v788_v10 = vmul.f32 0.5, %v786_v4 }
 0xbf5   :  { %1587 = vtanh.f32 %v786_v4 }
 0xbf6   :  { %1589 = vtanh.f32 %v787_v7 }
 0xbf7   :  { %1591 = vtanh.f32 %v788_v10 }
 0xbfe   :  { %v1586_v5 = vpop.eup %1585 }
 0xbff   :  { %v1588_v6 = vpop.eup %1587  ;;  %807 = vrot.lane.b32.xlu0 %v1586_v5, %s1661_s9 }
 0xc00   :  { %809 = vrot.lane.b32.xlu1 %v1588_v6, %s1661_s9  ;;  %v1590_v13 = vpop.eup %1589 }
 0xc01   :  { %v1592_v15 = vpop.eup %1591  ;;  %v791_v16 = vadd.f32 1.0, %v1590_v13 }
 0xc02   :  { %v792_v17 = vadd.f32 1.0, %v1592_v15 }
 0xc03   :  { %v793_v18 = vmul.f32 0.5, %v791_v16 }
 0xc04   :  { %v794_v19 = vmul.f32 0.5, %v792_v17 }
 0xc05   :  { %v803_v28 = vmul.f32 %v799_v25, %v793_v18 }
 0xc06   :  { %v804_v29 = vmul.f32 %v800_v27, %v794_v19 }
 0xc71   :  { %v808_v20 = vpop.permute.xlu0 %807 }
 0xc72   :  { %v810_v21 = vpop.permute.xlu1 %809  ;;  %v813_v22 = vmul.f32 %v808_v20, %v793_v18 }
 0xc73   :  { %v814_v24 = vmul.f32 %v810_v21, %v794_v19 }
 0xc74   :  { %817 = vrot.lane.b32.xlu0 %v813_v22, %s1660_s7 }
 0xc75   :  { %819 = vrot.lane.b32.xlu1 %v814_v24, %s1660_s7 }
 0xce6   :  { %v818_v30 = vpop.permute.xlu0 %817 }
 0xce7   :  { %v820_v31 = vpop.permute.xlu1 %819  ;;  %v823_v32 = vadd.f32 %v818_v30, %v803_v28 }
 0xce8   :  { %v824_v35 = vadd.f32 %v820_v31, %v804_v29 }
 0xce9   :  { %1593 = vtanh.f32 %v823_v32  ;;  %v944_v2 = vrot.slane %v823_v32, 7 }
 0xcea   :  { %1595 = vtanh.f32 %v824_v35  ;;  %v945_v4 = vrot.slane %v824_v35, 7 }
 0xcf3   :  { %v1594_v36 = vpop.eup %1593 }
 0xcf4   :  { %v1596_v37 = vpop.eup %1595  ;;  %829 = vrot.lane.b32.xlu0 %v1594_v36, %s1661_s9 }
 0xcf5   :  { %831 = vrot.lane.b32.xlu1 %v1596_v37, %s1661_s9 }
 0xd66   :  { %v830_v38 = vpop.permute.xlu0 %829 }
 0xd67   :  { %v832_v39 = vpop.permute.xlu1 %831  ;;  %v1858_v40 = vmul.f32 %v830_v38, %v793_v18 }
 0xd68   :  { %v1860_v41 = vmul.f32 %v832_v39, %v794_v19 }
 0xd69   :  { %v848_v42 = vrot.slane %v1858_v40, 4 }
 0xd6a   :  { %v849_v43 = vrot.slane %v1860_v41, 3 }
 0xd6c   :  { %v850_v44 = vsel %vm271_vm3, %v849_v43, %v848_v42 }
 0xd6d   :  { %851 = vrot.lane.b32.xlu0 %v850_v44, %s1660_s7 }
 0xddf   :  { %v852_v45 = vpop.permute.xlu0 %851 }
 0xde0   :  { %1448 = vmatmul.mubr.msk.f32.vlgmr.msra.gmra.mrb[6].mxu0 %vm35_vm1, %v852_v45 }
 0xde1   :  { %1524 = vmatpush3.bf16.msra.mxu0 %v1712_v9  ;;  %1469 = vmatprep.mubr.msk.f32.mxu0 %vm1658_vm0, %v1659_v8 }
 0xde2   :  { %1525 = vmatprep.subr.bf16.mxu0 %v1657_v3 }
 0xde5   :  { %1527 = vmatpush3.bf16.msra.mxu0 %v1727_v14 }
 0xeb3   :  { %v921_v46 = vpop.f32.mrb[6].mxu0 }
 0xeb4   :  { %v926_v47 = vrot.slane %v921_v46, 3  ;;  %v927_v48 = vrot.slane %v921_v46, 4  ;;  %v1449_v49 = vpop.f32.mrb[7].mxu0 }
 0xeb6   :  { %v930_v50 = vadd.f32 %v926_v47, %v1757_v26  ;;  %v931_v51 = vadd.f32 %v927_v48, %v1755_v23 }
 0xeb8   :  { %1597 = vtanh.f32 %v930_v50  ;;  %v932_v8 = vmul.f32 0.5, %v930_v50  ;;  %v933_v3 = vmul.f32 0.5, %v931_v51 }
 0xeb9   :  { %1599 = vtanh.f32 %v931_v51 }
 0xeba   :  { %1601 = vtanh.f32 %v932_v8 }
 0xebb   :  { %1603 = vtanh.f32 %v933_v3 }
 0xec2   :  { %v1598_v52 = vpop.eup %1597 }
 0xec3   :  { %v1600_v53 = vpop.eup %1599  ;;  %952 = vrot.lane.b32.xlu1 %v1598_v52, %s1661_s9 }
 0xec4   :  { %954 = vrot.lane.b32.xlu0 %v1600_v53, %s1661_s9  ;;  %v1602_v9 = vpop.eup %1601 }
 0xec5   :  { %v1604_v14 = vpop.eup %1603  ;;  %v936_v58 = vadd.f32 1.0, %v1602_v9 }
 0xec6   :  { %v937_v59 = vadd.f32 1.0, %v1604_v14 }
 0xec7   :  { %v938_v60 = vmul.f32 0.5, %v936_v58 }
 0xec8   :  { %v939_v61 = vmul.f32 0.5, %v937_v59 }
 0xec9   :  { %v948_v5 = vmul.f32 %v944_v2, %v938_v60 }
 0xeca   :  { %v949_v6 = vmul.f32 %v945_v4, %v939_v61 }
 0xf35   :  { %v953_v62 = vpop.permute.xlu1 %952 }
 0xf36   :  { %v955_v63 = vpop.permute.xlu0 %954  ;;  %v958_v0 = vmul.f32 %v953_v62, %v938_v60 }
 0xf37   :  { %v959_v1 = vmul.f32 %v955_v63, %v939_v61 }
 0xf38   :  { %962 = vrot.lane.b32.xlu1 %v958_v0, %s1660_s7 }
 0xf39   :  { %964 = vrot.lane.b32.xlu0 %v959_v1, %s1660_s7 }
 0xfaa   :  { %v963_v7 = vpop.permute.xlu1 %962 }
 0xfab   :  { %v965_v10 = vpop.permute.xlu0 %964  ;;  %v968_v13 = vadd.f32 %v963_v7, %v948_v5 }
 0xfac   :  { %v969_v15 = vadd.f32 %v965_v10, %v949_v6 }
 0xfad   :  { %1605 = vtanh.f32 %v968_v13  ;;  %v1089_v52 = vrot.slane %v968_v13, 7 }
 0xfae   :  { %1607 = vtanh.f32 %v969_v15  ;;  %v1090_v53 = vrot.slane %v969_v15, 7 }
 0xfb7   :  { %v1606_v16 = vpop.eup %1605 }
 0xfb8   :  { %v1608_v17 = vpop.eup %1607  ;;  %974 = vrot.lane.b32.xlu1 %v1606_v16, %s1661_s9 }
 0xfb9   :  { %976 = vrot.lane.b32.xlu0 %v1608_v17, %s1661_s9 }
0x102a   :  { %v975_v18 = vpop.permute.xlu1 %974 }
0x102b   :  { %v977_v19 = vpop.permute.xlu0 %976  ;;  %v1880_v20 = vmul.f32 %v975_v18, %v938_v60 }
0x102c   :  { %v1882_v21 = vmul.f32 %v977_v19, %v939_v61 }
0x102d   :  { %v993_v22 = vrot.slane %v1880_v20, 5 }
0x102e   :  { %v994_v24 = vrot.slane %v1882_v21, 4 }
0x1030   :  { %v995_v25 = vsel %vm271_vm3, %v994_v24, %v993_v22 }
0x1031   :  { %996 = vrot.lane.b32.xlu1 %v995_v25, %s1660_s7 }
0x10a3   :  { %v997_v27 = vpop.permute.xlu1 %996 }
0x10a4   :  { %1459 = vmatmul.mubr.msk.f32.vlgmr.msra.gmra.mrb[6].mxu1 %vm35_vm1, %v997_v27 }
0x1177   :  { %v1066_v28 = vpop.f32.mrb[6].mxu1 }
0x1178   :  { %v1071_v29 = vrot.slane %v1066_v28, 2  ;;  %v1072_v30 = vrot.slane %v1066_v28, 3  ;;  %v1460_v31 = vpop.f32.mrb[7].mxu1 }
0x117a   :  { %v1075_v32 = vadd.f32 %v1071_v29, %v1757_v26  ;;  %v1076_v35 = vadd.f32 %v1072_v30, %v1755_v23 }
0x117c   :  { %1609 = vtanh.f32 %v1075_v32  ;;  %v1077_v38 = vmul.f32 0.5, %v1075_v32  ;;  %v1078_v39 = vmul.f32 0.5, %v1076_v35 }
0x117d   :  { %1611 = vtanh.f32 %v1076_v35 }
0x117e   :  { %1613 = vtanh.f32 %v1077_v38 }
0x117f   :  { %1615 = vtanh.f32 %v1078_v39 }
0x1186   :  { %v1610_v36 = vpop.eup %1609 }
0x1187   :  { %v1612_v37 = vpop.eup %1611  ;;  %1097 = vrot.lane.b32.xlu0 %v1610_v36, %s1661_s9 }
0x1188   :  { %1099 = vrot.lane.b32.xlu1 %v1612_v37, %s1661_s9  ;;  %v1614_v42 = vpop.eup %1613 }
0x1189   :  { %v1616_v43 = vpop.eup %1615  ;;  %v1081_v44 = vadd.f32 1.0, %v1614_v42 }
0x118a   :  { %v1082_v45 = vadd.f32 1.0, %v1616_v43 }
0x118b   :  { %v1083_v46 = vmul.f32 0.5, %v1081_v44 }
0x118c   :  { %v1084_v47 = vmul.f32 0.5, %v1082_v45 }
0x118d   :  { %v1093_v8 = vmul.f32 %v1089_v52, %v1083_v46 }
0x118e   :  { %v1094_v3 = vmul.f32 %v1090_v53, %v1084_v47 }
0x11f9   :  { %v1098_v48 = vpop.permute.xlu0 %1097 }
0x11fa   :  { %v1100_v49 = vpop.permute.xlu1 %1099  ;;  %v1103_v50 = vmul.f32 %v1098_v48, %v1083_v46 }
0x11fb   :  { %v1104_v51 = vmul.f32 %v1100_v49, %v1084_v47 }
0x11fc   :  { %1107 = vrot.lane.b32.xlu0 %v1103_v50, %s1660_s7 }
0x11fd   :  { %1109 = vrot.lane.b32.xlu1 %v1104_v51, %s1660_s7 }
0x126e   :  { %v1108_v9 = vpop.permute.xlu0 %1107 }
0x126f   :  { %v1110_v14 = vpop.permute.xlu1 %1109  ;;  %v1113_v58 = vadd.f32 %v1108_v9, %v1093_v8 }
0x1270   :  { %v1114_v59 = vadd.f32 %v1110_v14, %v1094_v3 }
0x1271   :  { %1617 = vtanh.f32 %v1113_v58  ;;  %v1234_v36 = vrot.slane %v1113_v58, 7 }
0x1272   :  { %1619 = vtanh.f32 %v1114_v59  ;;  %v1235_v37 = vrot.slane %v1114_v59, 7 }
0x127b   :  { %v1618_v60 = vpop.eup %1617 }
0x127c   :  { %v1620_v61 = vpop.eup %1619  ;;  %1119 = vrot.lane.b32.xlu0 %v1618_v60, %s1661_s9 }
0x127d   :  { %1121 = vrot.lane.b32.xlu1 %v1620_v61, %s1661_s9 }
0x12ee   :  { %v1120_v62 = vpop.permute.xlu0 %1119 }
0x12ef   :  { %v1122_v63 = vpop.permute.xlu1 %1121  ;;  %v1125_v0 = vmul.f32 %v1120_v62, %v1083_v46 }
0x12f0   :  { %v1126_v1 = vmul.f32 %v1122_v63, %v1084_v47 }
0x12f1   :  { %v1138_v2 = vrot.slane %v1125_v0, 6 }
0x12f2   :  { %v1139_v4 = vrot.slane %v1126_v1, 5 }
0x12f4   :  { %v1140_v5 = vsel %vm271_vm3, %v1139_v4, %v1138_v2 }
0x12f5   :  { %1141 = vrot.lane.b32.xlu0 %v1140_v5, %s1660_s7 }
0x1367   :  { %v1142_v6 = vpop.permute.xlu0 %1141 }
0x1368   :  { %1470 = vmatmul.mubr.msk.f32.vlgmr.msra.gmra.mrb[8].mxu0 %vm35_vm1, %v1142_v6 }
0x143b   :  { %v1211_v7 = vpop.f32.mrb[8].mxu0 }
0x143c   :  { %v1216_v10 = vrot.slane %v1211_v7, 1  ;;  %v1217_v13 = vrot.slane %v1211_v7, 2  ;;  %v1471_v15 = vpop.f32.mrb[9].mxu0 }
0x143e   :  { %v1220_v16 = vadd.f32 %v1216_v10, %v1757_v26  ;;  %v1221_v17 = vadd.f32 %v1217_v13, %v1755_v23 }
0x1440   :  { %1621 = vtanh.f32 %v1220_v16  ;;  %v1222_v22 = vmul.f32 0.5, %v1220_v16  ;;  %v1223_v24 = vmul.f32 0.5, %v1221_v17 }
0x1441   :  { %1623 = vtanh.f32 %v1221_v17 }
0x1442   :  { %1625 = vtanh.f32 %v1222_v22 }
0x1443   :  { %1627 = vtanh.f32 %v1223_v24 }
0x144a   :  { %v1622_v18 = vpop.eup %1621 }
0x144b   :  { %v1624_v19 = vpop.eup %1623  ;;  %1242 = vrot.lane.b32.xlu0 %v1622_v18, %s1661_s9 }
0x144c   :  { %1244 = vrot.lane.b32.xlu1 %v1624_v19, %s1661_s9  ;;  %v1626_v25 = vpop.eup %1625 }
0x144d   :  { %v1628_v27 = vpop.eup %1627  ;;  %v1226_v28 = vadd.f32 1.0, %v1626_v25 }
0x144e   :  { %v1227_v29 = vadd.f32 1.0, %v1628_v27 }
0x144f   :  { %v1228_v30 = vmul.f32 0.5, %v1226_v28 }
0x1450   :  { %v1229_v26 = vmul.f32 0.5, %v1227_v29 }
0x1451   :  { %v1238_v38 = vmul.f32 %v1234_v36, %v1228_v30 }
0x1452   :  { %v1239_v39 = vmul.f32 %v1235_v37, %v1229_v26 }
0x14bd   :  { %v1243_v31 = vpop.permute.xlu0 %1242 }
0x14be   :  { %v1245_v23 = vpop.permute.xlu1 %1244  ;;  %v1248_v32 = vmul.f32 %v1243_v31, %v1228_v30 }
0x14bf   :  { %v1249_v35 = vmul.f32 %v1245_v23, %v1229_v26 }
0x14c0   :  { %1252 = vrot.lane.b32.xlu0 %v1248_v32, %s1660_s7 }
0x14c1   :  { %1254 = vrot.lane.b32.xlu1 %v1249_v35, %s1660_s7 }
0x1532   :  { %v1253_v42 = vpop.permute.xlu0 %1252 }
0x1533   :  { %v1255_v43 = vpop.permute.xlu1 %1254  ;;  %v1258_v44 = vadd.f32 %v1253_v42, %v1238_v38 }
0x1534   :  { %v1259_v45 = vadd.f32 %v1255_v43, %v1239_v39 }
0x1535   :  { %1629 = vtanh.f32 %v1258_v44 }
0x1536   :  { %1631 = vtanh.f32 %v1259_v45 }
0x153f   :  { %v1630_v46 = vpop.eup %1629 }
0x1540   :  { %v1632_v47 = vpop.eup %1631  ;;  %1264 = vrot.lane.b32.xlu0 %v1630_v46, %s1661_s9 }
0x1541   :  { %1266 = vrot.lane.b32.xlu1 %v1632_v47, %s1661_s9 }
0x1544   :  { %263 = vrot.lane.b32.xlu0 %v1767_v54, %s1660_s7 }
0x1545   :  { %261 = vrot.lane.b32.xlu1 %v1770_v57, %s1660_s7 }
0x1548   :  { %407 = vrot.lane.b32.xlu0 %v1792_v34, %s1660_s7 }
0x1549   :  { %405 = vrot.lane.b32.xlu1 %v1790_v33, %s1660_s7 }
0x154c   :  { %551 = vrot.lane.b32.xlu0 %v1815_v12, %s1660_s7 }
0x154d   :  { %549 = vrot.lane.b32.xlu1 %v1813_v11, %s1660_s7 }
0x1550   :  { %696 = vrot.lane.b32.xlu0 %v1838_v56, %s1660_s7 }
0x1551   :  { %694 = vrot.lane.b32.xlu1 %v1836_v55, %s1660_s7 }
0x1554   :  { %841 = vrot.lane.b32.xlu0 %v1860_v41, %s1660_s7 }
0x1555   :  { %839 = vrot.lane.b32.xlu1 %v1858_v40, %s1660_s7  ;;  %v1291_v40 = vrot.slane %v1259_v45, 7 }
0x1558   :  { %986 = vrot.lane.b32.xlu0 %v1882_v21, %s1660_s7 }
0x1559   :  { %984 = vrot.lane.b32.xlu1 %v1880_v20, %s1660_s7 }
0x155c   :  { %1131 = vrot.lane.b32.xlu0 %v1126_v1, %s1660_s7 }
0x155d   :  { %1129 = vrot.lane.b32.xlu1 %v1125_v0, %s1660_s7 }
0x15b2   :  { %v1265_v54 = vpop.permute.xlu0 %1264 }
0x15b3   :  { %v1267_v57 = vpop.permute.xlu1 %1266  ;;  %v1270_v33 = vmul.f32 %v1265_v54, %v1228_v30 }
0x15b4   :  { %v1271_v34 = vmul.f32 %v1267_v57, %v1229_v26 }
0x15b5   :  { %1274 = vrot.lane.b32.xlu1 %v1270_v33, %s1660_s7 }
0x15b6   :  { %1276 = vrot.lane.b32.xlu0 %v1271_v34, %s1660_s7  ;;  %v264_v11 = vpop.permute.xlu0 %263  ;;  %v1283_v12 = vrot.slane %v1271_v34, 7 }
0x15b7   :  { %v262_v55 = vpop.permute.xlu1 %261  ;;  %269 = vst.msk [vmem:[#allocation4 + $0x8] sm:$0x1] %vm267_vm4, %v264_v11 }
0x15b8   :  { %268 = vst.msk [vmem:[#allocation4] sm:$0x1] %vm267_vm4, %v262_v55 }
0x15b9   :  { %1284 = vrot.lane.b32.xlu1 %v1283_v12, %s1660_s7 }
0x15ba   :  { %1292 = vrot.lane.b32.xlu0 %v1258_v44, %s1662_s3  ;;  %v408_v56 = vpop.permute.xlu0 %407 }
0x15bb   :  { %v406_v41 = vpop.permute.xlu1 %405  ;;  %413 = vst.msk [vmem:[#allocation4 + $0x8] sm:$0x2] %vm411_vm5, %v408_v56 }
0x15bc   :  { %412 = vst.msk [vmem:[#allocation4] sm:$0x2] %vm411_vm5, %v406_v41 }
0x15bd   :  { %1294 = vrot.lane.b32.xlu1 %v1291_v40, %s1662_s3 }
0x15be   :  { %v552_v20 = vpop.permute.xlu0 %551 }
0x15bf   :  { %v550_v21 = vpop.permute.xlu1 %549  ;;  %557 = vst.msk [vmem:[#allocation4 + $0x8] sm:$0x4] %vm555_vm6, %v552_v20 }
0x15c0   :  { %556 = vst.msk [vmem:[#allocation4] sm:$0x4] %vm555_vm6, %v550_v21 }
0x15c2   :  { %v697_v48 = vpop.permute.xlu0 %696 }
0x15c3   :  { %v695_v49 = vpop.permute.xlu1 %694  ;;  %702 = vst.msk [vmem:[#allocation4 + $0x8] sm:$0x8] %vm700_vm7, %v697_v48 }
0x15c4   :  { %701 = vst.msk [vmem:[#allocation4] sm:$0x8] %vm700_vm7, %v695_v49 }
0x15c6   :  { %v842_v50 = vpop.permute.xlu0 %841 }
0x15c7   :  { %v840_v51 = vpop.permute.xlu1 %839  ;;  %847 = vst.msk [vmem:[#allocation4 + $0x8] sm:$0x10] %vm845_vm8, %v842_v50 }
0x15c8   :  { %846 = vst.msk [vmem:[#allocation4] sm:$0x10] %vm845_vm8, %v840_v51 }
0x15ca   :  { %v987_v52 = vpop.permute.xlu0 %986 }
0x15cb   :  { %v985_v53 = vpop.permute.xlu1 %984  ;;  %992 = vst.msk [vmem:[#allocation4 + $0x8] sm:$0x20] %vm990_vm9, %v987_v52 }
0x15cc   :  { %991 = vst.msk [vmem:[#allocation4] sm:$0x20] %vm990_vm9, %v985_v53 }
0x15ce   :  { %v1132_v8 = vpop.permute.xlu0 %1131 }
0x15cf   :  { %v1130_v3 = vpop.permute.xlu1 %1129  ;;  %1137 = vst.msk [vmem:[#allocation4 + $0x8] sm:$0x40] %vm1135_vm10, %v1132_v8 }
0x15d0   :  { %1136 = vst.msk [vmem:[#allocation4] sm:$0x40] %vm1135_vm10, %v1130_v3 }
0x1627   :  { %v1275_v9 = vpop.permute.xlu1 %1274 }
0x1628   :  { %1281 = vst.msk [vmem:[#allocation4] sm:$0x80] %vm1280_vm11, %v1275_v9  ;;  %1287 = vst.msk [vmem:[#allocation2 - $0x7] sm:$0x80] %vm1280_vm11, %v1275_v9  ;;  %v1277_v14 = vpop.permute.xlu0 %1276 }
0x1629   :  { %1282 = vst.msk [vmem:[#allocation4 + $0x8] sm:$0x80] %vm1280_vm11, %v1277_v14 }
0x162a   :  { %1644 = shalt.err (!%p1641_p4)
}
0x162b   :  { %s1645_s15 = scalar_lea.hbm %s1961_s4, 256 }
0x162c   :  { %p1646_p5 = scmp.ne.s32.totalorder %s1961_s4, %s1645_s15  ;;  %p1649_p6 = scmp.lt.u32.totalorder %s1645_s15, %s1961_s4 }
0x162e   :  { %p1651_p7 = pnand %p1649_p6, %p1646_p5 }
0x1630   :  { %1654 = shalt.err (!%p1651_p7)
}
0x1631   :  { %s1664_s20 = smov 128   ;;  %s1665_s21 = smov 8   ;;  %v1285_v58 = vpop.permute.xlu1 %1284  ;;  %v1293_v59 = vpop.permute.xlu0 %1292 }
0x1632   :  { %1311 = dma.vmem_to_hbm [thread:$0]  %s1306_s11, 256, %s1961_s4, [#allocation5], %s1664_s20, %s1664_s20, %s1665_s21   ;;  %1288 = vst.msk [vmem:[#allocation2 + $0x1] sm:$0x1] %vm267_vm4, %v1285_v58 }
0x1633   :  { %1298 = vst.msk [vmem:[#allocation3 - $0x7] sm:$0x80] %vm1280_vm11, %v1293_v59 }
0x1635   :  { %v1295_v60 = vpop.permute.xlu1 %1294 }
0x1636   :  { %1299 = vst.msk [vmem:[#allocation3 + $0x1] sm:$0x1] %vm267_vm4, %v1295_v60 }
0x1637   :  { %1655 = dma.done.wait [#allocation5], 256  }
0x1638   :  { %1656 = vsyncadd [#allocation5], 4294967040 }
0x1639   :  { %1315 = vsyncpa [#allocation5], 1 }

// kernel: speaker_encoder_forward.3
= control target key start
LH: loop header
LB: loop body
LE: loop exit
PB: predicated region body
PF: predicated region fallthrough
CT: control target
= control target key end

     0   :  { %9 = vsyncpa [#allocation5], 0  ;;  %s2038_s0 = inlined_call_operand.hbm [shape: f32[2,8,32], index: 0, kind: input, shape index: {}]   ;;  %s2039_s1 = inlined_call_operand.hbm [shape: f32[32,128], index: 1, kind: input, shape index: {}]   ;;  %s2040_s2 = inlined_call_operand.vmem [shape: f32[32,128], index: 2, kind: input, shape index: {}]   ;;  %s2041_s3 = inlined_call_operand.vmem [shape: f32[1,128], index: 3, kind: input, shape index: {}]   ;;  %s2042_s4 = inlined_call_operand.vmem [shape: f32[2,8,32], index: 4, kind: output, shape index: {}]  }
   0x1   :  { %10 = vsyncpa [#allocation7], 0  ;;  %s1699_s15 = smov [#allocation4]   ;;  %s1651_s19 = scalar_lea.hbm %s2038_s0, 256 }
   0x2   :  { %s16_s16 = sshll.u32 %s1699_s15, 4  ;;  %p1652_p0 = scmp.ne.s32.totalorder %s2038_s0, %s1651_s19  ;;  %s17_s16 = int_to_ptr.vmem [resolvable:$true] %s16_s16 }
   0x3   :  { %p1655_p1 = scmp.lt.u32.totalorder %s1651_s19, %s2038_s0 }
   0x5   :  { %p1657_p2 = pnand %p1655_p1, %p1652_p0 }
   0x7   :  { %1660 = shalt.err (!%p1657_p2)
}
   0x8   :  { %s1661_s24 = scalar_lea.vmem %s17_s16, 256  ;;  %p1666_p4 = scmp.lt.s32.totalorder %s17_s16, %s17_s16 }
   0x9   :  { %p1662_p3 = scmp.ne.s32.totalorder %s17_s16, %s1661_s24  ;;  %p1667_p5 = scmp.lt.s32.totalorder %s1661_s24, %s1661_s24 }
   0xb   :  { %p1668_p6 = por %p1667_p5, %p1666_p4 }
   0xd   :  { %p1669_p7 = pnand %p1668_p6, %p1662_p3 }
   0xf   :  { %1672 = shalt.err (!%p1669_p7)
}
  0x10   :  { %s1700_s25 = smov 128   ;;  %s1701_s26 = smov 8  }
  0x11   :  { %22 = dma.hbm_to_vmem [thread:$0]  %s2038_s0, 256, %s17_s16, [#allocation5], %s1700_s25, %s1700_s25, %s1701_s26  }
  0x12   :  { %s1702_s29 = smov [#allocation6]   ;;  %s1673_s7 = scalar_lea.hbm %s2039_s1, 512 }
  0x13   :  { %s28_s30 = sshll.u32 %s1702_s29, 4  ;;  %p1674_p8 = scmp.ne.s32.totalorder %s2039_s1, %s1673_s7  ;;  %s29_s30 = int_to_ptr.vmem [resolvable:$true] %s28_s30 }
  0x14   :  { %p1677_p9 = scmp.lt.u32.totalorder %s1673_s7, %s2039_s1 }
  0x16   :  { %p1679_p10 = pnand %p1677_p9, %p1674_p8 }
  0x18   :  { %1682 = shalt.err (!%p1679_p10)
}
  0x19   :  { %s1683_s12 = scalar_lea.vmem %s29_s30, 512  ;;  %p1688_p12 = scmp.lt.s32.totalorder %s29_s30, %s29_s30 }
  0x1a   :  { %p1684_p11 = scmp.ne.s32.totalorder %s29_s30, %s1683_s12  ;;  %p1689_p13 = scmp.lt.s32.totalorder %s1683_s12, %s1683_s12 }
  0x1c   :  { %p1690_p0 = por %p1689_p13, %p1688_p12 }
  0x1e   :  { %p1691_p1 = pnand %p1690_p0, %p1684_p11 }
  0x20   :  { %1694 = shalt.err (!%p1691_p1)
}
  0x21   :  { %34 = dma.hbm_to_vmem [thread:$0]  %s2039_s1, 512, %s29_s30, [#allocation7], %s1700_s25, %s1700_s25, %s1701_s26  }
  0x22   :  { %1695 = dma.done.wait [#allocation5], 256  }
  0x23   :  { %1696 = vsyncadd [#allocation5], 4294967040 }
  0x24   :  { %1697 = dma.done.wait [#allocation7], 512  }
  0x25   :  { %1698 = vsyncadd [#allocation7], 4294966784  ;;  %v1703_v0 = vmov 0.0|0.0   ;;  %vm1704_vm0 = vmmov 0   ;;  %v1705_v1 = vmov 0.0   ;;  %vm49_vm1 = vcmask 254976  }
  0x26   :  { %1497 = vmatprep.subr.bf16.mxu1 %v1703_v0  ;;  %1409 = vmatprep.mubr.msk.f32.mxu1 %vm1704_vm0, %v1705_v1  ;;  %50 = vst.msk [vmem:[#allocation2] sm:$0x3] %vm49_vm1, %v1705_v1  ;;  %51 = vst.msk [vmem:[#allocation3] sm:$0x3] %vm49_vm1, %v1705_v1  ;;  %v52_v2 = vld [vmem:[#allocation6] sm:$0xff]  ;;  %v53_v3 = vld [vmem:[#allocation6 + $0x8] sm:$0xff] }
  0x27   :  { %v56_v4 = vld [vmem:[%s2040_s2] sm:$0xff]  ;;  %vm62_vm2 = vcmask 261120   ;;  %v1489_v5 = vpack.c.bf16 %v53_v3, %v52_v2  ;;  %v57_v6 = vld [vmem:[%s2040_s2 + $0x8] sm:$0xff]  ;;  %v58_v11 = vld [vmem:[%s2040_s2 + $0x10] sm:$0xff]  ;;  %s1706_s21 = smov 32   ;;  %s1707_s23 = smov 64  }
  0x28   :  { %v54_v7 = vld [vmem:[#allocation6 + $0x10] sm:$0xff]  ;;  %v55_v8 = vld [vmem:[#allocation6 + $0x18] sm:$0xff]  ;;  %v1769_v9 = vpack.c.bf16 %v57_v6, %v56_v4  ;;  %v59_v12 = vld [vmem:[%s2040_s2 + $0x18] sm:$0xff]  ;;  %vm298_vm3 = vcmask 1041409   ;;  %vm294_vm4 = vcmask 253952   ;;  %vm438_vm5 = vcmask 254977  }
  0x29   :  { %v1493_v10 = vpack.c.bf16 %v55_v8, %v54_v7  ;;  %v60_v13 = vld [vmem:[#allocation4] sm:$0xff]  ;;  %1490 = vmatprep.subr.bf16.mxu0 %v1489_v5  ;;  %v1779_v15 = vpack.c.bf16 %v59_v12, %v58_v11  ;;  %v61_v18 = vld [vmem:[#allocation4 + $0x8] sm:$0xff]  ;;  %v1335_v19 = vld [vmem:[%s2041_s3] ss:$0 sm:$0xff]  ;;  %s1708_s27 = smov 96   ;;  %vm582_vm6 = vcmask 256002  }
  0x2a   :  { %1398 = vmatprep.mubr.msk.f32.mxu0 %vm62_vm2, %v60_v13  ;;  %1499 = vmatpush3.bf16.msra.mxu1 %v1769_v9  ;;  %vm727_vm7 = vcmask 257027   ;;  %vm872_vm8 = vcmask 258052   ;;  %vm1017_vm9 = vcmask 259077   ;;  %vm1162_vm10 = vcmask 260102  }
  0x2b   :  { %1492 = vmatpush3.bf16.msra.mxu0 %v1489_v5  ;;  %1500 = vmatprep.subr.bf16.mxu1 %v1703_v0  ;;  %vm1307_vm11 = vcmask 261127  }
  0x2c   :  { %1494 = vmatprep.subr.bf16.mxu0 %v1493_v10 }
  0x2d   :  { %v154_v14 = vld [vmem:[#allocation3] sm:$0x3]  ;;  %v153_v17 = vld [vmem:[#allocation2] sm:$0x3] }
  0x2e   :  { %v245_v16 = vrot.slane %v154_v14, 1  ;;  %1502 = vmatpush3.bf16.msra.mxu1 %v1779_v15 }
  0x2f   :  { %1496 = vmatpush3.bf16.msra.mxu0 %v1493_v10  ;;  %1509 = vmatprep.subr.bf16.mxu1 %v1703_v0 }
  0x30   :  { %248 = vrot.lane.b32.xlu1 %v245_v16, %s1706_s21  ;;  %1503 = vmatprep.subr.bf16.mxu0 %v1703_v0 }
  0x31   :  { %1410 = vmatmul.mubr.msk.f32.vlgmr.msra.gmra.mrb[0].mxu1 %vm62_vm2, %v153_v17 }
  0x32   :  { %1399 = vmatmul.mubr.msk.f32.vlgmr.msra.gmra.mrb[0].mxu0 %vm62_vm2, %v61_v18  ;;  %1511 = vmatpush3.bf16.msra.mxu1 %v1769_v9 }
  0x33   :  { %1505 = vmatpush3.bf16.msra.mxu0 %v1769_v9  ;;  %1420 = vmatprep.mubr.msk.f32.mxu0 %vm1704_vm0, %v1705_v1 }
  0x34   :  { %246 = vrot.lane.b32.xlu1 %v154_v14, %s1706_s21  ;;  %1506 = vmatprep.subr.bf16.mxu0 %v1703_v0 }
  0x35   :  { %1512 = vmatprep.subr.bf16.mxu1 %v1703_v0  ;;  %1431 = vmatprep.mubr.msk.f32.mxu1 %vm1704_vm0, %v1705_v1 }
  0x36   :  { %1514 = vmatpush3.bf16.msra.mxu1 %v1779_v15 }
  0x37   :  { %1508 = vmatpush3.bf16.msra.mxu0 %v1779_v15  ;;  %1521 = vmatprep.subr.bf16.mxu1 %v1703_v0 }
  0x38   :  { %1515 = vmatprep.subr.bf16.mxu0 %v1703_v0 }
  0xa2   :  { %v249_v43 = vpop.permute.xlu1 %248 }
  0xa6   :  { %v247_v45 = vpop.permute.xlu1 %246 }
 0x104   :  { %v224_v20 = vpop.f32.mrb[0].mxu1 }
 0x105   :  { %v1400_v21 = vpop.f32.mrb[0].mxu0  ;;  %v229_v22 = vrot.slane %v224_v20, 1  ;;  %v1411_v24 = vpop.f32.mrb[1].mxu1 }
 0x106   :  { %v1804_v23 = vadd.f32 %v1400_v21, %v1335_v19  ;;  %v135_v25 = vpop.f32.mrb[1].mxu0 }
 0x107   :  { %v1806_v26 = vadd.f32 %v1335_v19, %v135_v25 }
 0x108   :  { %v233_v27 = vadd.f32 %v229_v22, %v1804_v23 }
 0x109   :  { %v232_v28 = vadd.f32 %v224_v20, %v1806_v26 }
 0x10a   :  { %1555 = vtanh.f32 %v233_v27  ;;  %v235_v31 = vmul.f32 0.5, %v233_v27 }
 0x10b   :  { %1557 = vtanh.f32 %v232_v28  ;;  %v234_v32 = vmul.f32 0.5, %v232_v28 }
 0x10c   :  { %1559 = vtanh.f32 %v235_v31 }
 0x10d   :  { %1561 = vtanh.f32 %v234_v32 }
 0x114   :  { %v1556_v29 = vpop.eup %1555 }
 0x115   :  { %258 = vrot.lane.b32.xlu0 %v1556_v29, %s1707_s23  ;;  %v1558_v30 = vpop.eup %1557 }
 0x116   :  { %v1560_v33 = vpop.eup %1559 }
 0x117   :  { %v239_v34 = vadd.f32 1.0, %v1560_v33  ;;  %v1562_v35 = vpop.eup %1561 }
 0x118   :  { %v238_v37 = vadd.f32 1.0, %v1562_v35 }
 0x119   :  { %256 = vrot.lane.b32.xlu0 %v1558_v30, %s1707_s23  ;;  %v241_v36 = vmul.f32 0.5, %v239_v34 }
 0x11a   :  { %v240_v40 = vmul.f32 0.5, %v238_v37 }
 0x11b   :  { %v253_v44 = vmul.f32 %v249_v43, %v241_v36 }
 0x11c   :  { %v252_v48 = vmul.f32 %v247_v45, %v240_v40 }
 0x187   :  { %v259_v38 = vpop.permute.xlu0 %258 }
 0x188   :  { %v263_v39 = vmul.f32 %v259_v38, %v241_v36 }
 0x18a   :  { %268 = vrot.lane.b32.xlu0 %v263_v39, %s1706_s21 }
 0x18b   :  { %v257_v41 = vpop.permute.xlu0 %256 }
 0x18c   :  { %v262_v42 = vmul.f32 %v257_v41, %v240_v40 }
 0x18e   :  { %266 = vrot.lane.b32.xlu1 %v262_v42, %s1706_s21 }
 0x1fc   :  { %v269_v46 = vpop.permute.xlu0 %268 }
 0x1fd   :  { %v273_v47 = vadd.f32 %v269_v46, %v253_v44 }
 0x1ff   :  { %1563 = vtanh.f32 %v273_v47  ;;  %v393_v19 = vrot.slane %v273_v47, 7 }
 0x200   :  { %v267_v49 = vpop.permute.xlu1 %266 }
 0x201   :  { %v272_v50 = vadd.f32 %v267_v49, %v252_v48 }
 0x203   :  { %1565 = vtanh.f32 %v272_v50  ;;  %v392_v21 = vrot.slane %v272_v50, 7 }
 0x209   :  { %v1564_v51 = vpop.eup %1563 }
 0x20a   :  { %280 = vrot.lane.b32.xlu0 %v1564_v51, %s1707_s23 }
 0x20d   :  { %v1566_v52 = vpop.eup %1565 }
 0x20e   :  { %278 = vrot.lane.b32.xlu1 %v1566_v52, %s1707_s23 }
 0x27c   :  { %v281_v53 = vpop.permute.xlu0 %280 }
 0x27d   :  { %v1816_v54 = vmul.f32 %v281_v53, %v241_v36 }
 0x27f   :  { %v297_v56 = vrot.slane %v1816_v54, 7 }
 0x280   :  { %v279_v55 = vpop.permute.xlu1 %278 }
 0x281   :  { %v1819_v57 = vmul.f32 %v279_v55, %v240_v40 }
 0x283   :  { %v299_v58 = vsel %vm298_vm3, %v297_v56, %v1819_v57 }
 0x284   :  { %300 = vrot.lane.b32.xlu0 %v299_v58, %s1706_s21 }
 0x2f6   :  { %v301_v59 = vpop.permute.xlu0 %300 }
 0x2f7   :  { %1421 = vmatmul.mubr.msk.f32.vlgmr.msra.gmra.mrb[2].mxu0 %vm62_vm2, %v301_v59 }
 0x2f8   :  { %1517 = vmatpush3.bf16.msra.mxu0 %v1769_v9  ;;  %1442 = vmatprep.mubr.msk.f32.mxu0 %vm1704_vm0, %v1705_v1 }
 0x2f9   :  { %1518 = vmatprep.subr.bf16.mxu0 %v1703_v0 }
 0x2fc   :  { %1520 = vmatpush3.bf16.msra.mxu0 %v1779_v15 }
 0x2fd   :  { %1527 = vmatprep.subr.bf16.mxu0 %v1703_v0 }
 0x3ca   :  { %v370_v60 = vpop.f32.mrb[2].mxu0 }
 0x3cb   :  { %v375_v61 = vrot.slane %v370_v60, 7  ;;  %v379_v62 = vadd.f32 %v370_v60, %v1804_v23  ;;  %v1422_v63 = vpop.f32.mrb[3].mxu0 }
 0x3cd   :  { %v378_v2 = vadd.f32 %v375_v61, %v1806_v26  ;;  %1567 = vtanh.f32 %v379_v62  ;;  %v381_v5 = vmul.f32 0.5, %v379_v62 }
 0x3cf   :  { %1569 = vtanh.f32 %v378_v2  ;;  %v380_v6 = vmul.f32 0.5, %v378_v2 }
 0x3d0   :  { %1571 = vtanh.f32 %v381_v5 }
 0x3d1   :  { %1573 = vtanh.f32 %v380_v6 }
 0x3d7   :  { %v1568_v3 = vpop.eup %1567 }
 0x3d8   :  { %402 = vrot.lane.b32.xlu0 %v1568_v3, %s1707_s23 }
 0x3d9   :  { %v1570_v4 = vpop.eup %1569 }
 0x3da   :  { %400 = vrot.lane.b32.xlu1 %v1570_v4, %s1707_s23  ;;  %v1572_v7 = vpop.eup %1571 }
 0x3db   :  { %v1574_v8 = vpop.eup %1573  ;;  %v385_v10 = vadd.f32 1.0, %v1572_v7 }
 0x3dc   :  { %v384_v11 = vadd.f32 1.0, %v1574_v8 }
 0x3dd   :  { %v387_v12 = vmul.f32 0.5, %v385_v10 }
 0x3de   :  { %v386_v16 = vmul.f32 0.5, %v384_v11 }
 0x3df   :  { %v397_v20 = vmul.f32 %v393_v19, %v387_v12 }
 0x3e0   :  { %v396_v25 = vmul.f32 %v392_v21, %v386_v16 }
 0x44a   :  { %v403_v13 = vpop.permute.xlu0 %402 }
 0x44b   :  { %v407_v14 = vmul.f32 %v403_v13, %v387_v12 }
 0x44c   :  { %v401_v17 = vpop.permute.xlu1 %400 }
 0x44d   :  { %412 = vrot.lane.b32.xlu0 %v407_v14, %s1706_s21  ;;  %v406_v18 = vmul.f32 %v401_v17, %v386_v16 }
 0x44f   :  { %410 = vrot.lane.b32.xlu1 %v406_v18, %s1706_s21 }
 0x4bf   :  { %v413_v22 = vpop.permute.xlu0 %412 }
 0x4c0   :  { %v417_v24 = vadd.f32 %v413_v22, %v397_v20 }
 0x4c1   :  { %v411_v27 = vpop.permute.xlu1 %410 }
 0x4c2   :  { %1575 = vtanh.f32 %v417_v24  ;;  %v416_v28 = vadd.f32 %v411_v27, %v396_v25  ;;  %v537_v61 = vrot.slane %v417_v24, 7 }
 0x4c4   :  { %1577 = vtanh.f32 %v416_v28  ;;  %v536_v60 = vrot.slane %v416_v28, 7 }
 0x4cc   :  { %v1576_v29 = vpop.eup %1575 }
 0x4cd   :  { %424 = vrot.lane.b32.xlu0 %v1576_v29, %s1707_s23 }
 0x4ce   :  { %v1578_v30 = vpop.eup %1577 }
 0x4cf   :  { %422 = vrot.lane.b32.xlu1 %v1578_v30, %s1707_s23 }
 0x53f   :  { %v425_v31 = vpop.permute.xlu0 %424 }
 0x540   :  { %v1841_v34 = vmul.f32 %v425_v31, %v387_v12 }
 0x541   :  { %v423_v32 = vpop.permute.xlu1 %422 }
 0x542   :  { %v1839_v33 = vmul.f32 %v423_v32, %v386_v16 }
 0x544   :  { %v441_v35 = vrot.slane %v1839_v33, 1 }
 0x546   :  { %v442_v36 = vsel %vm298_vm3, %v1841_v34, %v441_v35 }
 0x547   :  { %443 = vrot.lane.b32.xlu1 %v442_v36, %s1706_s21 }
 0x5b9   :  { %v444_v37 = vpop.permute.xlu1 %443 }
 0x5ba   :  { %1432 = vmatmul.mubr.msk.f32.vlgmr.msra.gmra.mrb[2].mxu1 %vm62_vm2, %v444_v37 }
 0x5bb   :  { %1523 = vmatpush3.bf16.msra.mxu1 %v1769_v9  ;;  %1453 = vmatprep.mubr.msk.f32.mxu1 %vm1704_vm0, %v1705_v1 }
 0x5bc   :  { %1524 = vmatprep.subr.bf16.mxu1 %v1703_v0 }
 0x5bf   :  { %1526 = vmatpush3.bf16.msra.mxu1 %v1779_v15 }
 0x5c0   :  { %1533 = vmatprep.subr.bf16.mxu1 %v1703_v0 }
 0x68d   :  { %v513_v38 = vpop.f32.mrb[2].mxu1 }
 0x68e   :  { %v518_v39 = vrot.slane %v513_v38, 6  ;;  %v519_v40 = vrot.slane %v513_v38, 7  ;;  %v1433_v41 = vpop.f32.mrb[3].mxu1 }
 0x690   :  { %v522_v42 = vadd.f32 %v518_v39, %v1806_v26  ;;  %v523_v43 = vadd.f32 %v519_v40, %v1804_v23 }
 0x692   :  { %1579 = vtanh.f32 %v522_v42  ;;  %v524_v46 = vmul.f32 0.5, %v522_v42  ;;  %v525_v47 = vmul.f32 0.5, %v523_v43 }
 0x693   :  { %1581 = vtanh.f32 %v523_v43 }
 0x694   :  { %1583 = vtanh.f32 %v524_v46 }
 0x695   :  { %1585 = vtanh.f32 %v525_v47 }
 0x69c   :  { %v1580_v44 = vpop.eup %1579 }
 0x69d   :  { %v1582_v45 = vpop.eup %1581  ;;  %544 = vrot.lane.b32.xlu0 %v1580_v44, %s1707_s23 }
 0x69e   :  { %546 = vrot.lane.b32.xlu1 %v1582_v45, %s1707_s23  ;;  %v1584_v48 = vpop.eup %1583 }
 0x69f   :  { %v1586_v49 = vpop.eup %1585  ;;  %v528_v50 = vadd.f32 1.0, %v1584_v48 }
 0x6a0   :  { %v529_v51 = vadd.f32 1.0, %v1586_v49 }
 0x6a1   :  { %v530_v52 = vmul.f32 0.5, %v528_v50 }
 0x6a2   :  { %v531_v53 = vmul.f32 0.5, %v529_v51 }
 0x6a3   :  { %v540_v62 = vmul.f32 %v536_v60, %v530_v52 }
 0x6a4   :  { %v541_v63 = vmul.f32 %v537_v61, %v531_v53 }
 0x70f   :  { %v545_v55 = vpop.permute.xlu0 %544 }
 0x710   :  { %v547_v56 = vpop.permute.xlu1 %546  ;;  %v550_v58 = vmul.f32 %v545_v55, %v530_v52 }
 0x711   :  { %v551_v59 = vmul.f32 %v547_v56, %v531_v53 }
 0x712   :  { %554 = vrot.lane.b32.xlu0 %v550_v58, %s1706_s21 }
 0x713   :  { %556 = vrot.lane.b32.xlu1 %v551_v59, %s1706_s21 }
 0x784   :  { %v555_v2 = vpop.permute.xlu0 %554 }
 0x785   :  { %v557_v3 = vpop.permute.xlu1 %556  ;;  %v560_v4 = vadd.f32 %v555_v2, %v540_v62 }
 0x786   :  { %v561_v5 = vadd.f32 %v557_v3, %v541_v63 }
 0x787   :  { %1587 = vtanh.f32 %v560_v4  ;;  %v681_v42 = vrot.slane %v560_v4, 7 }
 0x788   :  { %1589 = vtanh.f32 %v561_v5  ;;  %v682_v43 = vrot.slane %v561_v5, 7 }
 0x791   :  { %v1588_v6 = vpop.eup %1587 }
 0x792   :  { %v1590_v7 = vpop.eup %1589  ;;  %566 = vrot.lane.b32.xlu0 %v1588_v6, %s1707_s23 }
 0x793   :  { %568 = vrot.lane.b32.xlu1 %v1590_v7, %s1707_s23 }
 0x804   :  { %v567_v8 = vpop.permute.xlu0 %566 }
 0x805   :  { %v569_v10 = vpop.permute.xlu1 %568  ;;  %v1862_v11 = vmul.f32 %v567_v8, %v530_v52 }
 0x806   :  { %v1864_v12 = vmul.f32 %v569_v10, %v531_v53 }
 0x807   :  { %v585_v13 = vrot.slane %v1862_v11, 2 }
 0x808   :  { %v586_v14 = vrot.slane %v1864_v12, 1 }
 0x80a   :  { %v587_v16 = vsel %vm298_vm3, %v586_v14, %v585_v13 }
 0x80b   :  { %588 = vrot.lane.b32.xlu0 %v587_v16, %s1706_s21 }
 0x87d   :  { %v589_v17 = vpop.permute.xlu0 %588 }
 0x87e   :  { %1443 = vmatmul.mubr.msk.f32.vlgmr.msra.gmra.mrb[4].mxu0 %vm62_vm2, %v589_v17 }
 0x87f   :  { %1529 = vmatpush3.bf16.msra.mxu0 %v1769_v9  ;;  %1464 = vmatprep.mubr.msk.f32.mxu0 %vm1704_vm0, %v1705_v1 }
 0x880   :  { %1530 = vmatprep.subr.bf16.mxu0 %v1703_v0 }
 0x883   :  { %1532 = vmatpush3.bf16.msra.mxu0 %v1779_v15 }
 0x884   :  { %1539 = vmatprep.subr.bf16.mxu0 %v1703_v0 }
 0x951   :  { %v658_v18 = vpop.f32.mrb[4].mxu0 }
 0x952   :  { %v663_v19 = vrot.slane %v658_v18, 5  ;;  %v664_v20 = vrot.slane %v658_v18, 6  ;;  %v1444_v21 = vpop.f32.mrb[5].mxu0 }
 0x954   :  { %v667_v22 = vadd.f32 %v663_v19, %v1806_v26  ;;  %v668_v24 = vadd.f32 %v664_v20, %v1804_v23 }
 0x956   :  { %1591 = vtanh.f32 %v667_v22  ;;  %v669_v28 = vmul.f32 0.5, %v667_v22  ;;  %v670_v29 = vmul.f32 0.5, %v668_v24 }
 0x957   :  { %1593 = vtanh.f32 %v668_v24 }
 0x958   :  { %1595 = vtanh.f32 %v669_v28 }
 0x959   :  { %1597 = vtanh.f32 %v670_v29 }
 0x960   :  { %v1592_v25 = vpop.eup %1591 }
 0x961   :  { %v1594_v27 = vpop.eup %1593  ;;  %689 = vrot.lane.b32.xlu1 %v1592_v25, %s1707_s23 }
 0x962   :  { %691 = vrot.lane.b32.xlu0 %v1594_v27, %s1707_s23  ;;  %v1596_v30 = vpop.eup %1595 }
 0x963   :  { %v1598_v31 = vpop.eup %1597  ;;  %v673_v32 = vadd.f32 1.0, %v1596_v30 }
 0x964   :  { %v674_v35 = vadd.f32 1.0, %v1598_v31 }
 0x965   :  { %v675_v36 = vmul.f32 0.5, %v673_v32 }
 0x966   :  { %v676_v37 = vmul.f32 0.5, %v674_v35 }
 0x967   :  { %v685_v44 = vmul.f32 %v681_v42, %v675_v36 }
 0x968   :  { %v686_v45 = vmul.f32 %v682_v43, %v676_v37 }
 0x9d3   :  { %v690_v38 = vpop.permute.xlu1 %689 }
 0x9d4   :  { %v692_v39 = vpop.permute.xlu0 %691  ;;  %v695_v40 = vmul.f32 %v690_v38, %v675_v36 }
 0x9d5   :  { %v696_v41 = vmul.f32 %v692_v39, %v676_v37 }
 0x9d6   :  { %699 = vrot.lane.b32.xlu1 %v695_v40, %s1706_s21 }
 0x9d7   :  { %701 = vrot.lane.b32.xlu0 %v696_v41, %s1706_s21 }
 0xa48   :  { %v700_v46 = vpop.permute.xlu1 %699 }
 0xa49   :  { %v702_v47 = vpop.permute.xlu0 %701  ;;  %v705_v48 = vadd.f32 %v700_v46, %v685_v44 }
 0xa4a   :  { %v706_v49 = vadd.f32 %v702_v47, %v686_v45 }
 0xa4b   :  { %1599 = vtanh.f32 %v705_v48  ;;  %v826_v25 = vrot.slane %v705_v48, 7 }
 0xa4c   :  { %1601 = vtanh.f32 %v706_v49  ;;  %v827_v27 = vrot.slane %v706_v49, 7 }
 0xa55   :  { %v1600_v50 = vpop.eup %1599 }
 0xa56   :  { %v1602_v51 = vpop.eup %1601  ;;  %711 = vrot.lane.b32.xlu1 %v1600_v50, %s1707_s23 }
 0xa57   :  { %713 = vrot.lane.b32.xlu0 %v1602_v51, %s1707_s23 }
 0xac8   :  { %v712_v52 = vpop.permute.xlu1 %711 }
 0xac9   :  { %v714_v53 = vpop.permute.xlu0 %713  ;;  %v1885_v55 = vmul.f32 %v712_v52, %v675_v36 }
 0xaca   :  { %v1887_v56 = vmul.f32 %v714_v53, %v676_v37 }
 0xacb   :  { %v730_v58 = vrot.slane %v1885_v55, 3 }
 0xacc   :  { %v731_v59 = vrot.slane %v1887_v56, 2 }
 0xace   :  { %v732_v60 = vsel %vm298_vm3, %v731_v59, %v730_v58 }
 0xacf   :  { %733 = vrot.lane.b32.xlu1 %v732_v60, %s1706_s21 }
 0xb41   :  { %v734_v61 = vpop.permute.xlu1 %733 }
 0xb42   :  { %1454 = vmatmul.mubr.msk.f32.vlgmr.msra.gmra.mrb[4].mxu1 %vm62_vm2, %v734_v61 }
 0xb43   :  { %1535 = vmatpush3.bf16.msra.mxu1 %v1769_v9  ;;  %1475 = vmatprep.mubr.msk.f32.mxu1 %vm1704_vm0, %v1705_v1 }
 0xb44   :  { %1536 = vmatprep.subr.bf16.mxu1 %v1703_v0 }
 0xb47   :  { %1538 = vmatpush3.bf16.msra.mxu1 %v1779_v15 }
 0xc15   :  { %v803_v62 = vpop.f32.mrb[4].mxu1 }
 0xc16   :  { %v808_v63 = vrot.slane %v803_v62, 4  ;;  %v809_v2 = vrot.slane %v803_v62, 5  ;;  %v1455_v3 = vpop.f32.mrb[5].mxu1 }
 0xc18   :  { %v812_v4 = vadd.f32 %v808_v63, %v1806_v26  ;;  %v813_v5 = vadd.f32 %v809_v2, %v1804_v23 }
 0xc1a   :  { %1603 = vtanh.f32 %v812_v4  ;;  %v814_v8 = vmul.f32 0.5, %v812_v4  ;;  %v815_v10 = vmul.f32 0.5, %v813_v5 }
 0xc1b   :  { %1605 = vtanh.f32 %v813_v5 }
 0xc1c   :  { %1607 = vtanh.f32 %v814_v8 }
 0xc1d   :  { %1609 = vtanh.f32 %v815_v10 }
 0xc24   :  { %v1604_v6 = vpop.eup %1603 }
 0xc25   :  { %v1606_v7 = vpop.eup %1605  ;;  %834 = vrot.lane.b32.xlu0 %v1604_v6, %s1707_s23 }
 0xc26   :  { %836 = vrot.lane.b32.xlu1 %v1606_v7, %s1707_s23  ;;  %v1608_v13 = vpop.eup %1607 }
 0xc27   :  { %v1610_v14 = vpop.eup %1609  ;;  %v818_v16 = vadd.f32 1.0, %v1608_v13 }
 0xc28   :  { %v819_v17 = vadd.f32 1.0, %v1610_v14 }
 0xc29   :  { %v820_v18 = vmul.f32 0.5, %v818_v16 }
 0xc2a   :  { %v821_v19 = vmul.f32 0.5, %v819_v17 }
 0xc2b   :  { %v830_v28 = vmul.f32 %v826_v25, %v820_v18 }
 0xc2c   :  { %v831_v29 = vmul.f32 %v827_v27, %v821_v19 }
 0xc97   :  { %v835_v20 = vpop.permute.xlu0 %834 }
 0xc98   :  { %v837_v21 = vpop.permute.xlu1 %836  ;;  %v840_v22 = vmul.f32 %v835_v20, %v820_v18 }
 0xc99   :  { %v841_v24 = vmul.f32 %v837_v21, %v821_v19 }
 0xc9a   :  { %844 = vrot.lane.b32.xlu0 %v840_v22, %s1706_s21 }
 0xc9b   :  { %846 = vrot.lane.b32.xlu1 %v841_v24, %s1706_s21 }
 0xd0c   :  { %v845_v30 = vpop.permute.xlu0 %844 }
 0xd0d   :  { %v847_v31 = vpop.permute.xlu1 %846  ;;  %v850_v32 = vadd.f32 %v845_v30, %v830_v28 }
 0xd0e   :  { %v851_v35 = vadd.f32 %v847_v31, %v831_v29 }
 0xd0f   :  { %1611 = vtanh.f32 %v850_v32  ;;  %v971_v4 = vrot.slane %v850_v32, 7 }
 0xd10   :  { %1613 = vtanh.f32 %v851_v35  ;;  %v972_v5 = vrot.slane %v851_v35, 7 }
 0xd19   :  { %v1612_v36 = vpop.eup %1611 }
 0xd1a   :  { %v1614_v37 = vpop.eup %1613  ;;  %856 = vrot.lane.b32.xlu0 %v1612_v36, %s1707_s23 }
 0xd1b   :  { %858 = vrot.lane.b32.xlu1 %v1614_v37, %s1707_s23 }
 0xd8c   :  { %v857_v38 = vpop.permute.xlu0 %856 }
 0xd8d   :  { %v859_v39 = vpop.permute.xlu1 %858  ;;  %v1907_v40 = vmul.f32 %v857_v38, %v820_v18 }
 0xd8e   :  { %v1909_v41 = vmul.f32 %v859_v39, %v821_v19 }
 0xd8f   :  { %v875_v42 = vrot.slane %v1907_v40, 4 }
 0xd90   :  { %v876_v43 = vrot.slane %v1909_v41, 3 }
 0xd92   :  { %v877_v44 = vsel %vm298_vm3, %v876_v43, %v875_v42 }
 0xd93   :  { %878 = vrot.lane.b32.xlu0 %v877_v44, %s1706_s21 }
 0xe05   :  { %v879_v45 = vpop.permute.xlu0 %878 }
 0xe06   :  { %1465 = vmatmul.mubr.msk.f32.vlgmr.msra.gmra.mrb[6].mxu0 %vm62_vm2, %v879_v45 }
 0xe07   :  { %1541 = vmatpush3.bf16.msra.mxu0 %v1769_v9  ;;  %1486 = vmatprep.mubr.msk.f32.mxu0 %vm1704_vm0, %v1705_v1 }
 0xe08   :  { %1542 = vmatprep.subr.bf16.mxu0 %v1703_v0 }
 0xe0b   :  { %1544 = vmatpush3.bf16.msra.mxu0 %v1779_v15 }
 0xed9   :  { %v948_v46 = vpop.f32.mrb[6].mxu0 }
 0xeda   :  { %v953_v47 = vrot.slane %v948_v46, 3  ;;  %v954_v48 = vrot.slane %v948_v46, 4  ;;  %v1466_v49 = vpop.f32.mrb[7].mxu0 }
 0xedc   :  { %v957_v50 = vadd.f32 %v953_v47, %v1806_v26  ;;  %v958_v51 = vadd.f32 %v954_v48, %v1804_v23 }
 0xede   :  { %1615 = vtanh.f32 %v957_v50  ;;  %v959_v1 = vmul.f32 0.5, %v957_v50  ;;  %v960_v0 = vmul.f32 0.5, %v958_v51 }
 0xedf   :  { %1617 = vtanh.f32 %v958_v51 }
 0xee0   :  { %1619 = vtanh.f32 %v959_v1 }
 0xee1   :  { %1621 = vtanh.f32 %v960_v0 }
 0xee8   :  { %v1616_v52 = vpop.eup %1615 }
 0xee9   :  { %v1618_v53 = vpop.eup %1617  ;;  %979 = vrot.lane.b32.xlu1 %v1616_v52, %s1707_s23 }
 0xeea   :  { %981 = vrot.lane.b32.xlu0 %v1618_v53, %s1707_s23  ;;  %v1620_v9 = vpop.eup %1619 }
 0xeeb   :  { %v1622_v15 = vpop.eup %1621  ;;  %v963_v58 = vadd.f32 1.0, %v1620_v9 }
 0xeec   :  { %v964_v59 = vadd.f32 1.0, %v1622_v15 }
 0xeed   :  { %v965_v60 = vmul.f32 0.5, %v963_v58 }
 0xeee   :  { %v966_v61 = vmul.f32 0.5, %v964_v59 }
 0xeef   :  { %v975_v6 = vmul.f32 %v971_v4, %v965_v60 }
 0xef0   :  { %v976_v7 = vmul.f32 %v972_v5, %v966_v61 }
 0xf5b   :  { %v980_v62 = vpop.permute.xlu1 %979 }
 0xf5c   :  { %v982_v63 = vpop.permute.xlu0 %981  ;;  %v985_v2 = vmul.f32 %v980_v62, %v965_v60 }
 0xf5d   :  { %v986_v3 = vmul.f32 %v982_v63, %v966_v61 }
 0xf5e   :  { %989 = vrot.lane.b32.xlu1 %v985_v2, %s1706_s21 }
 0xf5f   :  { %991 = vrot.lane.b32.xlu0 %v986_v3, %s1706_s21 }
 0xfd0   :  { %v990_v8 = vpop.permute.xlu1 %989 }
 0xfd1   :  { %v992_v10 = vpop.permute.xlu0 %991  ;;  %v995_v13 = vadd.f32 %v990_v8, %v975_v6 }
 0xfd2   :  { %v996_v14 = vadd.f32 %v992_v10, %v976_v7 }
 0xfd3   :  { %1623 = vtanh.f32 %v995_v13  ;;  %v1116_v52 = vrot.slane %v995_v13, 7 }
 0xfd4   :  { %1625 = vtanh.f32 %v996_v14  ;;  %v1117_v53 = vrot.slane %v996_v14, 7 }
 0xfdd   :  { %v1624_v16 = vpop.eup %1623 }
 0xfde   :  { %v1626_v17 = vpop.eup %1625  ;;  %1001 = vrot.lane.b32.xlu1 %v1624_v16, %s1707_s23 }
 0xfdf   :  { %1003 = vrot.lane.b32.xlu0 %v1626_v17, %s1707_s23 }
0x1050   :  { %v1002_v18 = vpop.permute.xlu1 %1001 }
0x1051   :  { %v1004_v19 = vpop.permute.xlu0 %1003  ;;  %v1929_v20 = vmul.f32 %v1002_v18, %v965_v60 }
0x1052   :  { %v1931_v21 = vmul.f32 %v1004_v19, %v966_v61 }
0x1053   :  { %v1020_v22 = vrot.slane %v1929_v20, 5 }
0x1054   :  { %v1021_v24 = vrot.slane %v1931_v21, 4 }
0x1056   :  { %v1022_v25 = vsel %vm298_vm3, %v1021_v24, %v1020_v22 }
0x1057   :  { %1023 = vrot.lane.b32.xlu1 %v1022_v25, %s1706_s21 }
0x10c9   :  { %v1024_v27 = vpop.permute.xlu1 %1023 }
0x10ca   :  { %1476 = vmatmul.mubr.msk.f32.vlgmr.msra.gmra.mrb[6].mxu1 %vm62_vm2, %v1024_v27 }
0x119d   :  { %v1093_v28 = vpop.f32.mrb[6].mxu1 }
0x119e   :  { %v1098_v29 = vrot.slane %v1093_v28, 2  ;;  %v1099_v30 = vrot.slane %v1093_v28, 3  ;;  %v1477_v31 = vpop.f32.mrb[7].mxu1 }
0x11a0   :  { %v1102_v32 = vadd.f32 %v1098_v29, %v1806_v26  ;;  %v1103_v35 = vadd.f32 %v1099_v30, %v1804_v23 }
0x11a2   :  { %1627 = vtanh.f32 %v1102_v32  ;;  %v1104_v38 = vmul.f32 0.5, %v1102_v32  ;;  %v1105_v39 = vmul.f32 0.5, %v1103_v35 }
0x11a3   :  { %1629 = vtanh.f32 %v1103_v35 }
0x11a4   :  { %1631 = vtanh.f32 %v1104_v38 }
0x11a5   :  { %1633 = vtanh.f32 %v1105_v39 }
0x11ac   :  { %v1628_v36 = vpop.eup %1627 }
0x11ad   :  { %v1630_v37 = vpop.eup %1629  ;;  %1124 = vrot.lane.b32.xlu0 %v1628_v36, %s1707_s23 }
0x11ae   :  { %1126 = vrot.lane.b32.xlu1 %v1630_v37, %s1707_s23  ;;  %v1632_v42 = vpop.eup %1631 }
0x11af   :  { %v1634_v43 = vpop.eup %1633  ;;  %v1108_v44 = vadd.f32 1.0, %v1632_v42 }
0x11b0   :  { %v1109_v45 = vadd.f32 1.0, %v1634_v43 }
0x11b1   :  { %v1110_v46 = vmul.f32 0.5, %v1108_v44 }
0x11b2   :  { %v1111_v47 = vmul.f32 0.5, %v1109_v45 }
0x11b3   :  { %v1120_v1 = vmul.f32 %v1116_v52, %v1110_v46 }
0x11b4   :  { %v1121_v0 = vmul.f32 %v1117_v53, %v1111_v47 }
0x121f   :  { %v1125_v48 = vpop.permute.xlu0 %1124 }
0x1220   :  { %v1127_v49 = vpop.permute.xlu1 %1126  ;;  %v1130_v50 = vmul.f32 %v1125_v48, %v1110_v46 }
0x1221   :  { %v1131_v51 = vmul.f32 %v1127_v49, %v1111_v47 }
0x1222   :  { %1134 = vrot.lane.b32.xlu0 %v1130_v50, %s1706_s21 }
0x1223   :  { %1136 = vrot.lane.b32.xlu1 %v1131_v51, %s1706_s21 }
0x1294   :  { %v1135_v9 = vpop.permute.xlu0 %1134 }
0x1295   :  { %v1137_v15 = vpop.permute.xlu1 %1136  ;;  %v1140_v58 = vadd.f32 %v1135_v9, %v1120_v1 }
0x1296   :  { %v1141_v59 = vadd.f32 %v1137_v15, %v1121_v0 }
0x1297   :  { %1635 = vtanh.f32 %v1140_v58  ;;  %v1261_v36 = vrot.slane %v1140_v58, 7 }
0x1298   :  { %1637 = vtanh.f32 %v1141_v59  ;;  %v1262_v37 = vrot.slane %v1141_v59, 7 }
0x12a1   :  { %v1636_v60 = vpop.eup %1635 }
0x12a2   :  { %v1638_v61 = vpop.eup %1637  ;;  %1146 = vrot.lane.b32.xlu0 %v1636_v60, %s1707_s23 }
0x12a3   :  { %1148 = vrot.lane.b32.xlu1 %v1638_v61, %s1707_s23 }
0x1314   :  { %v1147_v62 = vpop.permute.xlu0 %1146 }
0x1315   :  { %v1149_v63 = vpop.permute.xlu1 %1148  ;;  %v1152_v2 = vmul.f32 %v1147_v62, %v1110_v46 }
0x1316   :  { %v1153_v3 = vmul.f32 %v1149_v63, %v1111_v47 }
0x1317   :  { %v1165_v4 = vrot.slane %v1152_v2, 6 }
0x1318   :  { %v1166_v5 = vrot.slane %v1153_v3, 5 }
0x131a   :  { %v1167_v6 = vsel %vm298_vm3, %v1166_v5, %v1165_v4 }
0x131b   :  { %1168 = vrot.lane.b32.xlu0 %v1167_v6, %s1706_s21 }
0x138d   :  { %v1169_v7 = vpop.permute.xlu0 %1168 }
0x138e   :  { %1487 = vmatmul.mubr.msk.f32.vlgmr.msra.gmra.mrb[8].mxu0 %vm62_vm2, %v1169_v7 }
0x1461   :  { %v1238_v8 = vpop.f32.mrb[8].mxu0 }
0x1462   :  { %v1243_v10 = vrot.slane %v1238_v8, 1  ;;  %v1244_v13 = vrot.slane %v1238_v8, 2  ;;  %v1488_v14 = vpop.f32.mrb[9].mxu0 }
0x1464   :  { %v1247_v16 = vadd.f32 %v1243_v10, %v1806_v26  ;;  %v1248_v17 = vadd.f32 %v1244_v13, %v1804_v23 }
0x1466   :  { %1639 = vtanh.f32 %v1247_v16  ;;  %v1249_v22 = vmul.f32 0.5, %v1247_v16  ;;  %v1250_v24 = vmul.f32 0.5, %v1248_v17 }
0x1467   :  { %1641 = vtanh.f32 %v1248_v17 }
0x1468   :  { %1643 = vtanh.f32 %v1249_v22 }
0x1469   :  { %1645 = vtanh.f32 %v1250_v24 }
0x1470   :  { %v1640_v18 = vpop.eup %1639 }
0x1471   :  { %v1642_v19 = vpop.eup %1641  ;;  %1269 = vrot.lane.b32.xlu0 %v1640_v18, %s1707_s23 }
0x1472   :  { %1271 = vrot.lane.b32.xlu1 %v1642_v19, %s1707_s23  ;;  %v1644_v25 = vpop.eup %1643 }
0x1473   :  { %v1646_v27 = vpop.eup %1645  ;;  %v1253_v28 = vadd.f32 1.0, %v1644_v25 }
0x1474   :  { %v1254_v29 = vadd.f32 1.0, %v1646_v27 }
0x1475   :  { %v1255_v30 = vmul.f32 0.5, %v1253_v28 }
0x1476   :  { %v1256_v26 = vmul.f32 0.5, %v1254_v29 }
0x1477   :  { %v1265_v38 = vmul.f32 %v1261_v36, %v1255_v30 }
0x1478   :  { %v1266_v39 = vmul.f32 %v1262_v37, %v1256_v26 }
0x14e3   :  { %v1270_v31 = vpop.permute.xlu0 %1269 }
0x14e4   :  { %v1272_v23 = vpop.permute.xlu1 %1271  ;;  %v1275_v32 = vmul.f32 %v1270_v31, %v1255_v30 }
0x14e5   :  { %v1276_v35 = vmul.f32 %v1272_v23, %v1256_v26 }
0x14e6   :  { %1279 = vrot.lane.b32.xlu0 %v1275_v32, %s1706_s21 }
0x14e7   :  { %1281 = vrot.lane.b32.xlu1 %v1276_v35, %s1706_s21 }
0x1558   :  { %v1280_v42 = vpop.permute.xlu0 %1279 }
0x1559   :  { %v1282_v43 = vpop.permute.xlu1 %1281  ;;  %v1285_v44 = vadd.f32 %v1280_v42, %v1265_v38 }
0x155a   :  { %v1286_v45 = vadd.f32 %v1282_v43, %v1266_v39 }
0x155b   :  { %1647 = vtanh.f32 %v1285_v44 }
0x155c   :  { %1649 = vtanh.f32 %v1286_v45 }
0x1565   :  { %v1648_v46 = vpop.eup %1647 }
0x1566   :  { %v1650_v47 = vpop.eup %1649  ;;  %1291 = vrot.lane.b32.xlu0 %v1648_v46, %s1707_s23 }
0x1567   :  { %1293 = vrot.lane.b32.xlu1 %v1650_v47, %s1707_s23 }
0x156a   :  { %290 = vrot.lane.b32.xlu0 %v1816_v54, %s1706_s21 }
0x156b   :  { %288 = vrot.lane.b32.xlu1 %v1819_v57, %s1706_s21 }
0x156e   :  { %434 = vrot.lane.b32.xlu0 %v1841_v34, %s1706_s21 }
0x156f   :  { %432 = vrot.lane.b32.xlu1 %v1839_v33, %s1706_s21 }
0x1572   :  { %578 = vrot.lane.b32.xlu0 %v1864_v12, %s1706_s21 }
0x1573   :  { %576 = vrot.lane.b32.xlu1 %v1862_v11, %s1706_s21 }
0x1576   :  { %723 = vrot.lane.b32.xlu0 %v1887_v56, %s1706_s21 }
0x1577   :  { %721 = vrot.lane.b32.xlu1 %v1885_v55, %s1706_s21 }
0x157a   :  { %868 = vrot.lane.b32.xlu0 %v1909_v41, %s1706_s21 }
0x157b   :  { %866 = vrot.lane.b32.xlu1 %v1907_v40, %s1706_s21  ;;  %v1318_v40 = vrot.slane %v1286_v45, 7 }
0x157e   :  { %1013 = vrot.lane.b32.xlu0 %v1931_v21, %s1706_s21 }
0x157f   :  { %1011 = vrot.lane.b32.xlu1 %v1929_v20, %s1706_s21 }
0x1582   :  { %1158 = vrot.lane.b32.xlu0 %v1153_v3, %s1706_s21 }
0x1583   :  { %1156 = vrot.lane.b32.xlu1 %v1152_v2, %s1706_s21 }
0x15d8   :  { %v1292_v54 = vpop.permute.xlu0 %1291 }
0x15d9   :  { %v1294_v57 = vpop.permute.xlu1 %1293  ;;  %v1297_v33 = vmul.f32 %v1292_v54, %v1255_v30 }
0x15da   :  { %v1298_v34 = vmul.f32 %v1294_v57, %v1256_v26 }
0x15db   :  { %1301 = vrot.lane.b32.xlu1 %v1297_v33, %s1706_s21 }
0x15dc   :  { %1303 = vrot.lane.b32.xlu0 %v1298_v34, %s1706_s21  ;;  %v291_v11 = vpop.permute.xlu0 %290  ;;  %v1310_v12 = vrot.slane %v1298_v34, 7 }
0x15dd   :  { %v289_v55 = vpop.permute.xlu1 %288  ;;  %296 = vst.msk [vmem:[%s2042_s4 + $0x8] sm:$0x1] %vm294_vm4, %v291_v11 }
0x15de   :  { %295 = vst.msk [vmem:[%s2042_s4] sm:$0x1] %vm294_vm4, %v289_v55 }
0x15df   :  { %1311 = vrot.lane.b32.xlu1 %v1310_v12, %s1706_s21 }
0x15e0   :  { %1319 = vrot.lane.b32.xlu0 %v1285_v44, %s1708_s27  ;;  %v435_v56 = vpop.permute.xlu0 %434 }
0x15e1   :  { %v433_v41 = vpop.permute.xlu1 %432  ;;  %440 = vst.msk [vmem:[%s2042_s4 + $0x8] sm:$0x2] %vm438_vm5, %v435_v56 }
0x15e2   :  { %439 = vst.msk [vmem:[%s2042_s4] sm:$0x2] %vm438_vm5, %v433_v41 }
0x15e3   :  { %1321 = vrot.lane.b32.xlu1 %v1318_v40, %s1708_s27 }
0x15e4   :  { %v579_v20 = vpop.permute.xlu0 %578 }
0x15e5   :  { %v577_v21 = vpop.permute.xlu1 %576  ;;  %584 = vst.msk [vmem:[%s2042_s4 + $0x8] sm:$0x4] %vm582_vm6, %v579_v20 }
0x15e6   :  { %583 = vst.msk [vmem:[%s2042_s4] sm:$0x4] %vm582_vm6, %v577_v21 }
0x15e8   :  { %v724_v48 = vpop.permute.xlu0 %723 }
0x15e9   :  { %v722_v49 = vpop.permute.xlu1 %721  ;;  %729 = vst.msk [vmem:[%s2042_s4 + $0x8] sm:$0x8] %vm727_vm7, %v724_v48 }
0x15ea   :  { %728 = vst.msk [vmem:[%s2042_s4] sm:$0x8] %vm727_vm7, %v722_v49 }
0x15ec   :  { %v869_v50 = vpop.permute.xlu0 %868 }
0x15ed   :  { %v867_v51 = vpop.permute.xlu1 %866  ;;  %874 = vst.msk [vmem:[%s2042_s4 + $0x8] sm:$0x10] %vm872_vm8, %v869_v50 }
0x15ee   :  { %873 = vst.msk [vmem:[%s2042_s4] sm:$0x10] %vm872_vm8, %v867_v51 }
0x15f0   :  { %v1014_v52 = vpop.permute.xlu0 %1013 }
0x15f1   :  { %v1012_v53 = vpop.permute.xlu1 %1011  ;;  %1019 = vst.msk [vmem:[%s2042_s4 + $0x8] sm:$0x20] %vm1017_vm9, %v1014_v52 }
0x15f2   :  { %1018 = vst.msk [vmem:[%s2042_s4] sm:$0x20] %vm1017_vm9, %v1012_v53 }
0x15f4   :  { %v1159_v1 = vpop.permute.xlu0 %1158 }
0x15f5   :  { %v1157_v0 = vpop.permute.xlu1 %1156  ;;  %1164 = vst.msk [vmem:[%s2042_s4 + $0x8] sm:$0x40] %vm1162_vm10, %v1159_v1 }
0x15f6   :  { %1163 = vst.msk [vmem:[%s2042_s4] sm:$0x40] %vm1162_vm10, %v1157_v0 }
0x164d   :  { %v1302_v9 = vpop.permute.xlu1 %1301 }
0x164e   :  { %1308 = vst.msk [vmem:[%s2042_s4] sm:$0x80] %vm1307_vm11, %v1302_v9  ;;  %1314 = vst.msk [vmem:[#allocation2 - $0x7] sm:$0x80] %vm1307_vm11, %v1302_v9  ;;  %v1304_v15 = vpop.permute.xlu0 %1303 }
0x164f   :  { %1309 = vst.msk [vmem:[%s2042_s4 + $0x8] sm:$0x80] %vm1307_vm11, %v1304_v15 }
0x1651   :  { %v1312_v58 = vpop.permute.xlu1 %1311 }
0x1652   :  { %1315 = vst.msk [vmem:[#allocation2 + $0x1] sm:$0x1] %vm294_vm4, %v1312_v58  ;;  %v1320_v59 = vpop.permute.xlu0 %1319 }
0x1653   :  { %1325 = vst.msk [vmem:[#allocation3 - $0x7] sm:$0x80] %vm1307_vm11, %v1320_v59 }
0x1655   :  { %v1322_v60 = vpop.permute.xlu1 %1321 }
0x1656   :  { %1326 = vst.msk [vmem:[#allocation3 + $0x1] sm:$0x1] %vm294_vm4, %v1322_v60 }
0x1657   :  { %1331 = vsyncpa [#allocation5], 1 }
0x1658   :  { %1332 = vsyncpa [#allocation7], 1 }

</bundles_post_ra>
